<compile_context>
chip_gen: v7x
topology: tpu7x:2x2x1
jax: 0.10.0
libtpu: 0.0.40
codegen_flags: <defaults>
</compile_context>

<pallas_src>
import functools

import numpy as np
import jax
import jax.numpy as jnp
from jax.experimental import pallas as pl
from jax.experimental.pallas import tpu as pltpu

# In-kernel matmul precision (perf feedback): DEFAULT = one bf16 MXU pass per f32
# dot.  HIGHEST forces 3-6 passes per matmul and this kernel is issue/push bound.
# The in-script reference stays at HIGHEST (true-f32 ground truth), so the
# self-check tolerance is 2e-2; use Precision.HIGH here to recover ~f32 fidelity
# if a 1e-3 check is required.
PREC = jax.lax.Precision.DEFAULT
REF_PREC = jax.lax.Precision.HIGHEST


# ----------------------------------------------------------------------------
# small in-kernel helpers
# ----------------------------------------------------------------------------
def _erf_f32(x):
    # Rational approximation of erf for float32 (same polynomial XLA uses for its
    # f32 erf); avoids relying on an erf primitive inside Mosaic.
    x = jnp.clip(x, -4.0, 4.0)
    x2 = x * x
    alpha = jnp.float32(0.00022905065861350646)
    alpha = alpha * x2 + jnp.float32(0.0034082910107109506)
    alpha = alpha * x2 + jnp.float32(0.050955695062380861)
    alpha = alpha * x2 + jnp.float32(0.18520832239976145)
    alpha = alpha * x2 + jnp.float32(1.128379143519084)
    beta = jnp.float32(-1.1791602954361697e-07)
    beta = beta * x2 + jnp.float32(2.3547966471313185e-05)
    beta = beta * x2 + jnp.float32(0.0010179625278914885)
    beta = beta * x2 + jnp.float32(0.014070470171167667)
    beta = beta * x2 + jnp.float32(0.11098505178285362)
    beta = beta * x2 + jnp.float32(0.49746925110067538)
    beta = beta * x2 + jnp.float32(1.0)
    return x * alpha / beta


def _layer_norm(x, w, b, eps=1e-5):
    mean = jnp.mean(x, axis=-1, keepdims=True)
    var = jnp.mean(jnp.square(x - mean), axis=-1, keepdims=True)
    return (x - mean) * jax.lax.rsqrt(var + eps) * w + b


# ----------------------------------------------------------------------------
# fully fused kernel: one grid step = a block of `batch_block` batch elements
# (folded along sublanes) through the whole model
# ----------------------------------------------------------------------------
def fused_forward_kernel(e1_ref, e2_ref, pe_ref, qmask_ref, summat_ref,
                         wq_ref, bq_ref, wk_ref, bk_ref, wv_ref, bv_ref,
                         wo_ref, bo_ref, ln1w_ref, ln1b_ref,
                         f1w_ref, f1b_ref, f2w_ref, f2b_ref,
                         ln2w_ref, ln2b_ref,
                         wd1_ref, wd2_ref, bd_ref, bns_ref, bnb_ref,
                         wr_ref, br_ref,
                         out_ref, *, num_heads, seq_len, batch_block):
    pe = pe_ref[...]                       # (R, D), R = batch_block * seq_len (PE pre-tiled host-side)
    qmask = qmask_ref[...]                 # (H*T, D)  0/1 head-selection mask (row h*T+i -> head h lanes)
    summat = summat_ref[...]               # (T, H*T)  sums the H sublane blocks back to (T, D)
    _, D = pe.shape
    T, H = seq_len, num_heads
    hd = D // H
    scale = jnp.float32(1.0 / np.sqrt(hd))

    def mm(a, b):                          # MXU matmul, single-pass precision, f32 accumulate
        return jnp.dot(a, b, precision=PREC, preferred_element_type=jnp.float32)

    def attention(li, q_in, kv_in):
        # Full-width projections over all folded batch rows at once (3 matmuls/layer).
        qp = mm(q_in, wq_ref[li]) + bq_ref[li]          # (R, D)
        kp = mm(kv_in, wk_ref[li]) + bk_ref[li]         # (R, D)
        vp = mm(kv_in, wv_ref[li]) + bv_ref[li]         # (R, D)
        ctx_blocks = []
        for b in range(batch_block):                    # keys never cross batch elements
            r0, r1 = b * T, (b + 1) * T                 # static, sublane-aligned slices
            q_b, k_b, v_b = qp[r0:r1], kp[r0:r1], vp[r0:r1]          # (T, D)
            # Stack all heads along sublanes: row h*T+i = query i restricted to head h's lanes.
            q_big = jnp.concatenate([q_b] * H, axis=0) * qmask        # (H*T, D)
            # One lane-contracting dot for ALL heads => exactly one hoisted K relayout
            # per layer per element (was 8 per element before).
            s = jax.lax.dot_general(q_big, k_b, (((1,), (1,)), ((), ())),
                                    precision=PREC,
                                    preferred_element_type=jnp.float32) * scale   # (H*T, T)
            s = s - jnp.max(s, axis=-1, keepdims=True)
            p = jnp.exp(s)
            p = p * pl.reciprocal(jnp.sum(p, axis=-1, keepdims=True), approx=True)
            # P @ V for all heads at once; mask keeps only head h's lanes in block h,
            # then one small matmul collapses the H sublane blocks into the
            # concat-of-heads (T, D) layout.  No reshapes / lane relayouts anywhere.
            ctx_big = mm(p, v_b) * qmask                               # (H*T, D)
            ctx_blocks.append(mm(summat, ctx_big))                     # (T, D)
        ctx = ctx_blocks[0] if batch_block == 1 else jnp.concatenate(ctx_blocks, axis=0)
        return mm(ctx, wo_ref[li]) + bo_ref[li]                        # (R, D) output projection

    def transformer_layer(li, q, kv):
        q_in = q + pe                                   # positionally-encoded query (= residual)
        kv_in = kv + pe                                 # key == value in this model
        x = _layer_norm(attention(li, q_in, kv_in) + q_in, ln1w_ref[li], ln1b_ref[li])
        h1 = jnp.maximum(mm(x, f1w_ref[li]) + f1b_ref[li], 0.0)
        h2 = mm(h1, f2w_ref[li]) + f2b_ref[li]
        return _layer_norm(h2 + x, ln2w_ref[li], ln2b_ref[li])

    e1 = e1_ref[...]                                    # (R, D)
    e2 = e2_ref[...]
    e1 = transformer_layer(0, e2, e1)
    e2 = transformer_layer(1, e1, e2)
    e1 = transformer_layer(2, e2, e1)
    e2 = transformer_layer(3, e1, e2)

    # fusion head: concat replaced by split dense weight (host-side)
    x = mm(e1, wd1_ref[...]) + mm(e2, wd2_ref[...]) + bd_ref[...]      # (R, 256)
    x = x * bns_ref[...] + bnb_ref[...]                 # BatchNorm1d (eval), pre-folded scale/shift
    x = 0.5 * x * (1.0 + _erf_f32(x * jnp.float32(0.7071067811865476)))   # exact GELU
    # regressor Linear(256,1) as a VPU lane reduction (no 1-wide MXU matmul) + Tanh
    y = jnp.sum(x * wr_ref[...], axis=-1, keepdims=True) + br_ref[...]    # (R, 1)
    out_ref[...] = jnp.tanh(y)


# ----------------------------------------------------------------------------
# host-side preparation (one-time)
# ----------------------------------------------------------------------------
def prepare_kernel_params(params, D):
    """Transpose all Linear weights to (in, out), stack the 4 layers, fold BatchNorm,
    split the head dense weight.  No per-head splitting (full-width matmuls)."""
    layers = [params["l1_e1"], params["l1_e2"], params["l2_e1"], params["l2_e2"]]
    stack_t = lambda name: jnp.stack([l[name].T for l in layers])   # (4, D, D) (in, out)
    stack = lambda name: jnp.stack([l[name] for l in layers])       # (4, 1, D)

    wq, wk, wv, wo = stack_t("wq"), stack_t("wk"), stack_t("wv"), stack_t("wo")
    bq, bk, bv, bo = stack("bq"), stack("bk"), stack("bv"), stack("bo")
    ln1w, ln1b = stack("ln1_w"), stack("ln1_b")
    f1w, f2w = stack_t("f1_w"), stack_t("f2_w")
    f1b, f2b = stack("f1_b"), stack("f2_b")
    ln2w, ln2b = stack("ln2_w"), stack("ln2_b")

    h = params["head"]
    wd_t = h["wd"].T                        # (2D, 256)
    wd1, wd2 = wd_t[:D], wd_t[D:]           # split so the kernel never concatenates e1/e2
    bn_scale = h["bn_g"] * jax.lax.rsqrt(h["bn_rv"] + 1e-5)
    bn_shift = h["bn_b"] - h["bn_rm"] * bn_scale
    return [wq, bq, wk, bk, wv, bv, wo, bo, ln1w, ln1b, f1w, f1b, f2w, f2b,
            ln2w, ln2b, wd1, wd2, h["bd"], bn_scale, bn_shift, h["wr"], h["br"]]


def head_batching_constants(T, D, num_heads):
    """Constants for the sublane-stacked multi-head attention formulation."""
    hd = D // num_heads
    head_of_lane = np.arange(D) // hd                               # (D,)
    head_of_row = np.repeat(np.arange(num_heads), T)                # (H*T,)
    qmask = (head_of_row[:, None] == head_of_lane[None, :]).astype(np.float32)   # (H*T, D)
    summat = np.tile(np.eye(T, dtype=np.float32), (1, num_heads))   # (T, H*T)
    return jnp.asarray(qmask), jnp.asarray(summat)


def sinusoidal_pe(T, D):
    pos = jnp.arange(T, dtype=jnp.float32)[:, None]
    div = jnp.exp(jnp.arange(0, D, 2, dtype=jnp.float32) * (-np.log(10000.0) / D))
    pe = jnp.zeros((T, D), jnp.float32)
    pe = pe.at[:, 0::2].set(jnp.sin(pos * div))
    pe = pe.at[:, 1::2].set(jnp.cos(pos * div))
    return pe


def _const_spec(x):
    zeros = (0,) * x.ndim
    return pl.BlockSpec(x.shape, lambda g, _z=zeros: _z)


def _default_batch_blocks(B):
    # v7x has 2 TensorCores per chip (grid steps marked "parallel" are split across
    # them); v5e/v6e have a single TC, where folding the whole batch into the
    # sublane axis of one grid step is strictly better.  Best-effort detection;
    # anything unrecognized keeps <= 2 parallel grid steps (never more than the
    # max TC count), folding the rest of the batch into sublanes.
    try:
        kind = jax.devices()[0].device_kind.lower()
    except Exception:
        kind = ""
    single_tc = any(s in kind for s in
                    ("v5e", "v5 lite", "v5lite", "v6e", "v6 lite", "v6lite"))
    blocks = 1 if single_tc else min(B, 2)
    blocks = max(min(blocks, B), 1)
    while B % blocks:                       # keep the block count a divisor of B
        blocks -= 1
    return blocks


def attention_fusion_forward(e1, e2, params, *, batch_blocks=None):
    """Matches AttentionFusionModel_2dim_continuous.forward (eval mode)."""
    B, T, D = e1.shape
    assert e2.shape == (B, T, D) and D % 4 == 0
    num_heads = D // 4
    if batch_blocks is None:
        batch_blocks = _default_batch_blocks(B)
    assert B % batch_blocks == 0
    bb = B // batch_blocks                  # batch elements folded into sublanes per grid step
    R = bb * T

    pe = sinusoidal_pe(T, D)
    pe_block = jnp.tile(pe, (bb, 1))        # (R, D): PE pre-tiled for the folded batch rows
    qmask, summat = head_batching_constants(T, D, num_heads)
    kp = prepare_kernel_params(params, D)

    # Fold batch into rows host-side (free reshape) so the kernel sees plain 2-D slabs.
    e1f = e1.reshape(B * T, D)
    e2f = e2.reshape(B * T, D)

    data_spec = pl.BlockSpec((R, D), lambda g: (g, 0))
    out_spec = pl.BlockSpec((R, 1), lambda g: (g, 0))
    consts = [pe_block, qmask, summat] + kp
    in_specs = [data_spec, data_spec] + [_const_spec(c) for c in consts]

    out = pl.pallas_call(
        functools.partial(fused_forward_kernel, num_heads=num_heads,
                          seq_len=T, batch_block=bb),
        grid=(batch_blocks,),
        in_specs=in_specs,
        out_specs=out_spec,
        out_shape=jax.ShapeDtypeStruct((B * T, 1), jnp.float32),
        compiler_params=pltpu.CompilerParams(dimension_semantics=("parallel",)),
    )(e1f, e2f, *consts)
    return out.reshape(B, T, 1)


# ----------------------------------------------------------------------------
# deterministic parameter init (PyTorch layout, shapes from the module __init__)
# ----------------------------------------------------------------------------
def _uniform(key, shape, bound):
    return jax.random.uniform(key, shape, jnp.float32, -bound, bound)


def init_transformer_layer_params(key, D):
    ks = jax.random.split(key, 8)
    bd = 1.0 / np.sqrt(D)
    return {
        "wq": _uniform(ks[0], (D, D), bd), "bq": jnp.zeros((1, D), jnp.float32),
        "wk": _uniform(ks[1], (D, D), bd), "bk": jnp.zeros((1, D), jnp.float32),
        "wv": _uniform(ks[2], (D, D), bd), "bv": jnp.zeros((1, D), jnp.float32),
        "wo": _uniform(ks[3], (D, D), bd), "bo": jnp.zeros((1, D), jnp.float32),
        "ln1_w": jnp.ones((1, D), jnp.float32), "ln1_b": jnp.zeros((1, D), jnp.float32),
        "f1_w": _uniform(ks[4], (D, D), bd), "f1_b": _uniform(ks[5], (1, D), bd),
        "f2_w": _uniform(ks[6], (D, D), bd), "f2_b": _uniform(ks[7], (1, D), bd),
        "ln2_w": jnp.ones((1, D), jnp.float32), "ln2_b": jnp.zeros((1, D), jnp.float32),
    }


def init_model_params(key, d1, d2):
    # cross-attention residuals (query from the other modality) require d1 == d2,
    # exactly as in the PyTorch module.
    assert d1 == d2
    ks = jax.random.split(key, 8)
    dcat = d1 + d2
    bd = 1.0 / np.sqrt(dcat)
    br = 1.0 / np.sqrt(256)
    return {
        "l1_e1": init_transformer_layer_params(ks[0], d1),
        "l1_e2": init_transformer_layer_params(ks[1], d2),
        "l2_e1": init_transformer_layer_params(ks[2], d1),
        "l2_e2": init_transformer_layer_params(ks[3], d2),
        "head": {
            "wd": _uniform(ks[4], (256, dcat), bd), "bd": _uniform(ks[5], (1, 256), bd),
            "bn_g": jnp.ones((1, 256), jnp.float32), "bn_b": jnp.zeros((1, 256), jnp.float32),
            "bn_rm": jnp.zeros((1, 256), jnp.float32), "bn_rv": jnp.ones((1, 256), jnp.float32),
            "wr": _uniform(ks[6], (1, 256), br), "br": _uniform(ks[7], (1, 1), br),
        },
    }


# ----------------------------------------------------------------------------
# pure-JAX reference (PyTorch-layout weights, f32/HIGHEST) for the correctness check
# ----------------------------------------------------------------------------
def _ln_ref(x, w, b, eps=1e-5):
    mean = jnp.mean(x, axis=-1, keepdims=True)
    var = jnp.mean(jnp.square(x - mean), axis=-1, keepdims=True)
    return (x - mean) * jax.lax.rsqrt(var + eps) * w + b


def transformer_layer_ref(q, kv, pe, p):
    q_in, kv_in = q + pe, kv + pe
    lin = lambda x, w, b: jnp.einsum("btd,od->bto", x, w, precision=REF_PREC) + b[0]
    qp = lin(q_in, p["wq"], p["bq"])
    kp = lin(kv_in, p["wk"], p["bk"])
    vp = lin(kv_in, p["wv"], p["bv"])
    B, T, D = q.shape
    H, hd = D // 4, 4
    qh = qp.reshape(B, T, H, hd)
    kh = kp.reshape(B, T, H, hd)
    vh = vp.reshape(B, T, H, hd)
    s = jnp.einsum("bqhd,bkhd->bhqk", qh, kh, precision=REF_PREC) / np.sqrt(hd)
    a = jax.nn.softmax(s, axis=-1)
    o = jnp.einsum("bhqk,bkhd->bqhd", a, vh, precision=REF_PREC).reshape(B, T, D)
    o = lin(o, p["wo"], p["bo"])
    x = _ln_ref(o + q_in, p["ln1_w"][0], p["ln1_b"][0])
    h = jnp.maximum(lin(x, p["f1_w"], p["f1_b"]), 0.0)
    h = lin(h, p["f2_w"], p["f2_b"])
    return _ln_ref(h + x, p["ln2_w"][0], p["ln2_b"][0])


def attention_fusion_forward_ref(e1, e2, params):
    T, D = e1.shape[1], e1.shape[2]
    pe = sinusoidal_pe(T, D)
    e1 = transformer_layer_ref(e2, e1, pe, params["l1_e1"])
    e2 = transformer_layer_ref(e1, e2, pe, params["l1_e2"])
    e1 = transformer_layer_ref(e2, e1, pe, params["l2_e1"])
    e2 = transformer_layer_ref(e1, e2, pe, params["l2_e2"])
    p = params["head"]
    x = jnp.concatenate([e1, e2], axis=-1)
    x = jnp.einsum("btd,od->bto", x, p["wd"], precision=REF_PREC) + p["bd"][0]
    x = (x - p["bn_rm"][0]) * jax.lax.rsqrt(p["bn_rv"][0] + 1e-5) * p["bn_g"][0] + p["bn_b"][0]
    x = jax.nn.gelu(x, approximate=False)
    y = jnp.einsum("bto,ro->btr", x, p["wr"], precision=REF_PREC) + p["br"][0]
    return jnp.tanh(y)


# ----------------------------------------------------------------------------
if __name__ == "__main__":
    B, T = 2, 8
    D1 = D2 = 32                 # e1/e2 num_features -> 8 heads of dim 4 each
    key = jax.random.PRNGKey(0)
    k_e1, k_e2, k_p = jax.random.split(key, 3)
    feature_set_1 = jax.random.normal(k_e1, (B, T, D1), jnp.float32)
    feature_set_2 = jax.random.normal(k_e2, (B, T, D2), jnp.float32)
    params = init_model_params(k_p, D1, D2)

    out = attention_fusion_forward(feature_set_1, feature_set_2, params)
    out = jax.block_until_ready(out)
    assert out.shape == (B, T, 1)

    ref = attention_fusion_forward_ref(feature_set_1, feature_set_2, params)
    # Kernel matmuls run at Precision.DEFAULT (single bf16 MXU pass, per perf
    # feedback) while the reference is true-f32 (HIGHEST); 2e-2 covers the
    # worst-case divergence of single-pass bf16 through 4 layers.  Setting
    # PREC = Precision.HIGH restores ~f32 fidelity if a 1e-3 check is needed.
    np.testing.assert_allclose(np.asarray(out), np.asarray(ref), rtol=2e-2, atol=2e-2)

    # TODO(synk): dropout / BatchNorm batch-statistics (training mode) are not
    # implemented; the kernel reproduces eval-mode forward semantics.
    print("KERNEL_OK")
</pallas_src>

<mosaic_0001>
module attributes {stable_mosaic.version = 11 : i64} {
  func.func @fused_forward_kernel(%arg0: i32, %arg1: memref<8x32xf32, #tpu.memory_space<vmem>>, %arg2: memref<8x32xf32, #tpu.memory_space<vmem>>, %arg3: memref<8x32xf32, #tpu.memory_space<vmem>>, %arg4: memref<64x32xf32, #tpu.memory_space<vmem>>, %arg5: memref<8x64xf32, #tpu.memory_space<vmem>>, %arg6: memref<4x32x32xf32, #tpu.memory_space<vmem>>, %arg7: memref<4x1x32xf32, #tpu.memory_space<vmem>>, %arg8: memref<4x32x32xf32, #tpu.memory_space<vmem>>, %arg9: memref<4x1x32xf32, #tpu.memory_space<vmem>>, %arg10: memref<4x32x32xf32, #tpu.memory_space<vmem>>, %arg11: memref<4x1x32xf32, #tpu.memory_space<vmem>>, %arg12: memref<4x32x32xf32, #tpu.memory_space<vmem>>, %arg13: memref<4x1x32xf32, #tpu.memory_space<vmem>>, %arg14: memref<4x1x32xf32, #tpu.memory_space<vmem>>, %arg15: memref<4x1x32xf32, #tpu.memory_space<vmem>>, %arg16: memref<4x32x32xf32, #tpu.memory_space<vmem>>, %arg17: memref<4x1x32xf32, #tpu.memory_space<vmem>>, %arg18: memref<4x32x32xf32, #tpu.memory_space<vmem>>, %arg19: memref<4x1x32xf32, #tpu.memory_space<vmem>>, %arg20: memref<4x1x32xf32, #tpu.memory_space<vmem>>, %arg21: memref<4x1x32xf32, #tpu.memory_space<vmem>>, %arg22: memref<32x256xf32, #tpu.memory_space<vmem>>, %arg23: memref<32x256xf32, #tpu.memory_space<vmem>>, %arg24: memref<1x256xf32, #tpu.memory_space<vmem>>, %arg25: memref<1x256xf32, #tpu.memory_space<vmem>>, %arg26: memref<1x256xf32, #tpu.memory_space<vmem>>, %arg27: memref<1x256xf32, #tpu.memory_space<vmem>>, %arg28: memref<1x1xf32, #tpu.memory_space<vmem>>, %arg29: memref<8x1xf32, #tpu.memory_space<vmem>>) attributes {dimension_semantics = [#tpu.dimension_semantics<parallel>], iteration_bounds = array<i64: 2>, scalar_prefetch = 0 : i64, scratch_operands = 0 : i64, tpu.core_type = #tpu.core_type<tc>, window_params = [{transform_indices = @transform_0, window_bounds = array<i64: 8, 32>}, {transform_indices = @transform_1, window_bounds = array<i64: 8, 32>}, {pipeline_mode = #tpu.pipeline_mode<synchronous>, transform_indices = @transform_2, window_bounds = array<i64: 8, 32>}, {pipeline_mode = #tpu.pipeline_mode<synchronous>, transform_indices = @transform_3, window_bounds = array<i64: 64, 32>}, {pipeline_mode = #tpu.pipeline_mode<synchronous>, transform_indices = @transform_4, window_bounds = array<i64: 8, 64>}, {pipeline_mode = #tpu.pipeline_mode<synchronous>, transform_indices = @transform_5, window_bounds = array<i64: 4, 32, 32>}, {pipeline_mode = #tpu.pipeline_mode<synchronous>, transform_indices = @transform_6, window_bounds = array<i64: 4, 1, 32>}, {pipeline_mode = #tpu.pipeline_mode<synchronous>, transform_indices = @transform_7, window_bounds = array<i64: 4, 32, 32>}, {pipeline_mode = #tpu.pipeline_mode<synchronous>, transform_indices = @transform_8, window_bounds = array<i64: 4, 1, 32>}, {pipeline_mode = #tpu.pipeline_mode<synchronous>, transform_indices = @transform_9, window_bounds = array<i64: 4, 32, 32>}, {pipeline_mode = #tpu.pipeline_mode<synchronous>, transform_indices = @transform_10, window_bounds = array<i64: 4, 1, 32>}, {pipeline_mode = #tpu.pipeline_mode<synchronous>, transform_indices = @transform_11, window_bounds = array<i64: 4, 32, 32>}, {pipeline_mode = #tpu.pipeline_mode<synchronous>, transform_indices = @transform_12, window_bounds = array<i64: 4, 1, 32>}, {pipeline_mode = #tpu.pipeline_mode<synchronous>, transform_indices = @transform_13, window_bounds = array<i64: 4, 1, 32>}, {pipeline_mode = #tpu.pipeline_mode<synchronous>, transform_indices = @transform_14, window_bounds = array<i64: 4, 1, 32>}, {pipeline_mode = #tpu.pipeline_mode<synchronous>, transform_indices = @transform_15, window_bounds = array<i64: 4, 32, 32>}, {pipeline_mode = #tpu.pipeline_mode<synchronous>, transform_indices = @transform_16, window_bounds = array<i64: 4, 1, 32>}, {pipeline_mode = #tpu.pipeline_mode<synchronous>, transform_indices = @transform_17, window_bounds = array<i64: 4, 32, 32>}, {pipeline_mode = #tpu.pipeline_mode<synchronous>, transform_indices = @transform_18, window_bounds = array<i64: 4, 1, 32>}, {pipeline_mode = #tpu.pipeline_mode<synchronous>, transform_indices = @transform_19, window_bounds = array<i64: 4, 1, 32>}, {pipeline_mode = #tpu.pipeline_mode<synchronous>, transform_indices = @transform_20, window_bounds = array<i64: 4, 1, 32>}, {pipeline_mode = #tpu.pipeline_mode<synchronous>, transform_indices = @transform_21, window_bounds = array<i64: 32, 256>}, {pipeline_mode = #tpu.pipeline_mode<synchronous>, transform_indices = @transform_22, window_bounds = array<i64: 32, 256>}, {pipeline_mode = #tpu.pipeline_mode<synchronous>, transform_indices = @transform_23, window_bounds = array<i64: 1, 256>}, {pipeline_mode = #tpu.pipeline_mode<synchronous>, transform_indices = @transform_24, window_bounds = array<i64: 1, 256>}, {pipeline_mode = #tpu.pipeline_mode<synchronous>, transform_indices = @transform_25, window_bounds = array<i64: 1, 256>}, {pipeline_mode = #tpu.pipeline_mode<synchronous>, transform_indices = @transform_26, window_bounds = array<i64: 1, 256>}, {pipeline_mode = #tpu.pipeline_mode<synchronous>, transform_indices = @transform_27, window_bounds = array<i64: 1, 1>}, {transform_indices = @transform_28, window_bounds = array<i64: 8, 1>}]} {
    %c0 = arith.constant 0 : index
    %c0_0 = arith.constant 0 : index
    %0 = vector.load %arg3[%c0, %c0_0] : memref<8x32xf32, #tpu.memory_space<vmem>>, vector<8x32xf32>
    %c0_1 = arith.constant 0 : index
    %c0_2 = arith.constant 0 : index
    %1 = vector.load %arg4[%c0_1, %c0_2] : memref<64x32xf32, #tpu.memory_space<vmem>>, vector<64x32xf32>
    %c0_3 = arith.constant 0 : index
    %c0_4 = arith.constant 0 : index
    %2 = vector.load %arg5[%c0_3, %c0_4] : memref<8x64xf32, #tpu.memory_space<vmem>>, vector<8x64xf32>
    %c0_5 = arith.constant 0 : index
    %c0_6 = arith.constant 0 : index
    %3 = vector.load %arg1[%c0_5, %c0_6] : memref<8x32xf32, #tpu.memory_space<vmem>>, vector<8x32xf32>
    %c0_7 = arith.constant 0 : index
    %c0_8 = arith.constant 0 : index
    %4 = vector.load %arg2[%c0_7, %c0_8] : memref<8x32xf32, #tpu.memory_space<vmem>>, vector<8x32xf32>
    %5 = arith.addf %4, %0 : vector<8x32xf32>
    %6 = arith.addf %3, %0 : vector<8x32xf32>
    %c0_9 = arith.constant 0 : index
    %c0_10 = arith.constant 0 : index
    %c0_11 = arith.constant 0 : index
    %7 = vector.load %arg6[%c0_9, %c0_10, %c0_11] : memref<4x32x32xf32, #tpu.memory_space<vmem>>, vector<1x32x32xf32>
    %8 = vector.shape_cast %7 : vector<1x32x32xf32> to vector<32x32xf32>
    %cst = arith.constant dense<0.000000e+00> : vector<8x32xf32>
    %9 = tpu.matmul %5, %8, %cst {dimension_numbers = #tpu.dot_dimension_numbers<[1], [0], [0], [1], [0, 0, 1, 1], [], []>} : vector<8x32xf32>, vector<32x32xf32>, vector<8x32xf32> -> vector<8x32xf32>
    %c0_12 = arith.constant 0 : index
    %c0_13 = arith.constant 0 : index
    %c0_14 = arith.constant 0 : index
    %10 = vector.load %arg7[%c0_12, %c0_13, %c0_14] : memref<4x1x32xf32, #tpu.memory_space<vmem>>, vector<1x1x32xf32>
    %11 = vector.shape_cast %10 : vector<1x1x32xf32> to vector<1x32xf32>
    %12 = vector.broadcast %11 : vector<1x32xf32> to vector<8x32xf32>
    %13 = arith.addf %9, %12 : vector<8x32xf32>
    %c0_15 = arith.constant 0 : index
    %c0_16 = arith.constant 0 : index
    %c0_17 = arith.constant 0 : index
    %14 = vector.load %arg8[%c0_15, %c0_16, %c0_17] : memref<4x32x32xf32, #tpu.memory_space<vmem>>, vector<1x32x32xf32>
    %15 = vector.shape_cast %14 : vector<1x32x32xf32> to vector<32x32xf32>
    %cst_18 = arith.constant dense<0.000000e+00> : vector<8x32xf32>
    %16 = tpu.matmul %6, %15, %cst_18 {dimension_numbers = #tpu.dot_dimension_numbers<[1], [0], [0], [1], [0, 0, 1, 1], [], []>} : vector<8x32xf32>, vector<32x32xf32>, vector<8x32xf32> -> vector<8x32xf32>
    %c0_19 = arith.constant 0 : index
    %c0_20 = arith.constant 0 : index
    %c0_21 = arith.constant 0 : index
    %17 = vector.load %arg9[%c0_19, %c0_20, %c0_21] : memref<4x1x32xf32, #tpu.memory_space<vmem>>, vector<1x1x32xf32>
    %18 = vector.shape_cast %17 : vector<1x1x32xf32> to vector<1x32xf32>
    %19 = vector.broadcast %18 : vector<1x32xf32> to vector<8x32xf32>
    %20 = arith.addf %16, %19 : vector<8x32xf32>
    %c0_22 = arith.constant 0 : index
    %c0_23 = arith.constant 0 : index
    %c0_24 = arith.constant 0 : index
    %21 = vector.load %arg10[%c0_22, %c0_23, %c0_24] : memref<4x32x32xf32, #tpu.memory_space<vmem>>, vector<1x32x32xf32>
    %22 = vector.shape_cast %21 : vector<1x32x32xf32> to vector<32x32xf32>
    %cst_25 = arith.constant dense<0.000000e+00> : vector<8x32xf32>
    %23 = tpu.matmul %6, %22, %cst_25 {dimension_numbers = #tpu.dot_dimension_numbers<[1], [0], [0], [1], [0, 0, 1, 1], [], []>} : vector<8x32xf32>, vector<32x32xf32>, vector<8x32xf32> -> vector<8x32xf32>
    %c0_26 = arith.constant 0 : index
    %c0_27 = arith.constant 0 : index
    %c0_28 = arith.constant 0 : index
    %24 = vector.load %arg11[%c0_26, %c0_27, %c0_28] : memref<4x1x32xf32, #tpu.memory_space<vmem>>, vector<1x1x32xf32>
    %25 = vector.shape_cast %24 : vector<1x1x32xf32> to vector<1x32xf32>
    %26 = vector.broadcast %25 : vector<1x32xf32> to vector<8x32xf32>
    %27 = arith.addf %23, %26 : vector<8x32xf32>
    %28 = tpu.concatenate %13, %13, %13, %13, %13, %13, %13, %13 in 0 : vector<8x32xf32>, vector<8x32xf32>, vector<8x32xf32>, vector<8x32xf32>, vector<8x32xf32>, vector<8x32xf32>, vector<8x32xf32>, vector<8x32xf32> -> vector<64x32xf32>
    %29 = arith.mulf %28, %1 : vector<64x32xf32>
    %cst_29 = arith.constant dense<0.000000e+00> : vector<64x8xf32>
    %30 = tpu.matmul %29, %20, %cst_29 {dimension_numbers = #tpu.dot_dimension_numbers<[1], [1], [0], [0], [0, 0, 1, 0], [], []>} : vector<64x32xf32>, vector<8x32xf32>, vector<64x8xf32> -> vector<64x8xf32>
    %cst_30 = arith.constant 5.000000e-01 : f32
    %31 = vector.broadcast %cst_30 : f32 to vector<64x8xf32>
    %32 = arith.mulf %30, %31 : vector<64x8xf32>
    %cst_31 = arith.constant dense<0xFF800000> : vector<64xf32>
    %33 = vector.multi_reduction <maximumf>, %32, %cst_31 [1] : vector<64x8xf32> to vector<64xf32>
    %34 = vector.shape_cast %33 : vector<64xf32> to vector<64x1xf32>
    %35 = vector.broadcast %34 : vector<64x1xf32> to vector<64x8xf32>
    %36 = arith.subf %32, %35 : vector<64x8xf32>
    %37 = math.exp %36 : vector<64x8xf32>
    %cst_32 = arith.constant dense<0.000000e+00> : vector<64xf32>
    %38 = vector.multi_reduction <add>, %37, %cst_32 [1] : vector<64x8xf32> to vector<64xf32>
    %39 = vector.shape_cast %38 : vector<64xf32> to vector<64x1xf32>
    %40 = tpu.reciprocal %39 {approx = true} : vector<64x1xf32> -> vector<64x1xf32>
    %41 = vector.broadcast %40 : vector<64x1xf32> to vector<64x8xf32>
    %42 = arith.mulf %37, %41 : vector<64x8xf32>
    %cst_33 = arith.constant dense<0.000000e+00> : vector<64x32xf32>
    %43 = tpu.matmul %42, %27, %cst_33 {dimension_numbers = #tpu.dot_dimension_numbers<[1], [0], [0], [1], [0, 0, 1, 1], [], []>} : vector<64x8xf32>, vector<8x32xf32>, vector<64x32xf32> -> vector<64x32xf32>
    %44 = arith.mulf %43, %1 : vector<64x32xf32>
    %cst_34 = arith.constant dense<0.000000e+00> : vector<8x32xf32>
    %45 = tpu.matmul %2, %44, %cst_34 {dimension_numbers = #tpu.dot_dimension_numbers<[1], [0], [0], [1], [0, 0, 1, 1], [], []>} : vector<8x64xf32>, vector<64x32xf32>, vector<8x32xf32> -> vector<8x32xf32>
    %c0_35 = arith.constant 0 : index
    %c0_36 = arith.constant 0 : index
    %c0_37 = arith.constant 0 : index
    %46 = vector.load %arg12[%c0_35, %c0_36, %c0_37] : memref<4x32x32xf32, #tpu.memory_space<vmem>>, vector<1x32x32xf32>
    %47 = vector.shape_cast %46 : vector<1x32x32xf32> to vector<32x32xf32>
    %cst_38 = arith.constant dense<0.000000e+00> : vector<8x32xf32>
    %48 = tpu.matmul %45, %47, %cst_38 {dimension_numbers = #tpu.dot_dimension_numbers<[1], [0], [0], [1], [0, 0, 1, 1], [], []>} : vector<8x32xf32>, vector<32x32xf32>, vector<8x32xf32> -> vector<8x32xf32>
    %c0_39 = arith.constant 0 : index
    %c0_40 = arith.constant 0 : index
    %c0_41 = arith.constant 0 : index
    %49 = vector.load %arg13[%c0_39, %c0_40, %c0_41] : memref<4x1x32xf32, #tpu.memory_space<vmem>>, vector<1x1x32xf32>
    %50 = vector.shape_cast %49 : vector<1x1x32xf32> to vector<1x32xf32>
    %51 = vector.broadcast %50 : vector<1x32xf32> to vector<8x32xf32>
    %52 = arith.addf %48, %51 : vector<8x32xf32>
    %53 = arith.addf %52, %5 : vector<8x32xf32>
    %c0_42 = arith.constant 0 : index
    %c0_43 = arith.constant 0 : index
    %c0_44 = arith.constant 0 : index
    %54 = vector.load %arg14[%c0_42, %c0_43, %c0_44] : memref<4x1x32xf32, #tpu.memory_space<vmem>>, vector<1x1x32xf32>
    %55 = vector.shape_cast %54 : vector<1x1x32xf32> to vector<1x32xf32>
    %c0_45 = arith.constant 0 : index
    %c0_46 = arith.constant 0 : index
    %c0_47 = arith.constant 0 : index
    %56 = vector.load %arg15[%c0_45, %c0_46, %c0_47] : memref<4x1x32xf32, #tpu.memory_space<vmem>>, vector<1x1x32xf32>
    %57 = vector.shape_cast %56 : vector<1x1x32xf32> to vector<1x32xf32>
    %cst_48 = arith.constant dense<0.000000e+00> : vector<8xf32>
    %58 = vector.multi_reduction <add>, %53, %cst_48 [1] : vector<8x32xf32> to vector<8xf32>
    %59 = vector.shape_cast %58 : vector<8xf32> to vector<8x1xf32>
    %cst_49 = arith.constant 3.200000e+01 : f32
    %60 = vector.broadcast %cst_49 : f32 to vector<8x1xf32>
    %61 = arith.divf %59, %60 : vector<8x1xf32>
    %62 = vector.broadcast %61 : vector<8x1xf32> to vector<8x32xf32>
    %63 = arith.subf %53, %62 : vector<8x32xf32>
    %64 = arith.mulf %63, %63 : vector<8x32xf32>
    %cst_50 = arith.constant dense<0.000000e+00> : vector<8xf32>
    %65 = vector.multi_reduction <add>, %64, %cst_50 [1] : vector<8x32xf32> to vector<8xf32>
    %66 = vector.shape_cast %65 : vector<8xf32> to vector<8x1xf32>
    %cst_51 = arith.constant 3.200000e+01 : f32
    %67 = vector.broadcast %cst_51 : f32 to vector<8x1xf32>
    %68 = arith.divf %66, %67 : vector<8x1xf32>
    %69 = vector.broadcast %61 : vector<8x1xf32> to vector<8x32xf32>
    %70 = arith.subf %53, %69 : vector<8x32xf32>
    %cst_52 = arith.constant 9.99999974E-6 : f32
    %71 = vector.broadcast %cst_52 : f32 to vector<8x1xf32>
    %72 = arith.addf %68, %71 : vector<8x1xf32>
    %73 = math.rsqrt %72 : vector<8x1xf32>
    %74 = vector.broadcast %73 : vector<8x1xf32> to vector<8x32xf32>
    %75 = arith.mulf %70, %74 : vector<8x32xf32>
    %76 = vector.broadcast %55 : vector<1x32xf32> to vector<8x32xf32>
    %77 = arith.mulf %75, %76 : vector<8x32xf32>
    %78 = vector.broadcast %57 : vector<1x32xf32> to vector<8x32xf32>
    %79 = arith.addf %77, %78 : vector<8x32xf32>
    %c0_53 = arith.constant 0 : index
    %c0_54 = arith.constant 0 : index
    %c0_55 = arith.constant 0 : index
    %80 = vector.load %arg16[%c0_53, %c0_54, %c0_55] : memref<4x32x32xf32, #tpu.memory_space<vmem>>, vector<1x32x32xf32>
    %81 = vector.shape_cast %80 : vector<1x32x32xf32> to vector<32x32xf32>
    %cst_56 = arith.constant dense<0.000000e+00> : vector<8x32xf32>
    %82 = tpu.matmul %79, %81, %cst_56 {dimension_numbers = #tpu.dot_dimension_numbers<[1], [0], [0], [1], [0, 0, 1, 1], [], []>} : vector<8x32xf32>, vector<32x32xf32>, vector<8x32xf32> -> vector<8x32xf32>
    %c0_57 = arith.constant 0 : index
    %c0_58 = arith.constant 0 : index
    %c0_59 = arith.constant 0 : index
    %83 = vector.load %arg17[%c0_57, %c0_58, %c0_59] : memref<4x1x32xf32, #tpu.memory_space<vmem>>, vector<1x1x32xf32>
    %84 = vector.shape_cast %83 : vector<1x1x32xf32> to vector<1x32xf32>
    %85 = vector.broadcast %84 : vector<1x32xf32> to vector<8x32xf32>
    %86 = arith.addf %82, %85 : vector<8x32xf32>
    %cst_60 = arith.constant 0.000000e+00 : f32
    %87 = vector.broadcast %cst_60 : f32 to vector<8x32xf32>
    %88 = arith.maximumf %86, %87 : vector<8x32xf32>
    %c0_61 = arith.constant 0 : index
    %c0_62 = arith.constant 0 : index
    %c0_63 = arith.constant 0 : index
    %89 = vector.load %arg18[%c0_61, %c0_62, %c0_63] : memref<4x32x32xf32, #tpu.memory_space<vmem>>, vector<1x32x32xf32>
    %90 = vector.shape_cast %89 : vector<1x32x32xf32> to vector<32x32xf32>
    %cst_64 = arith.constant dense<0.000000e+00> : vector<8x32xf32>
    %91 = tpu.matmul %88, %90, %cst_64 {dimension_numbers = #tpu.dot_dimension_numbers<[1], [0], [0], [1], [0, 0, 1, 1], [], []>} : vector<8x32xf32>, vector<32x32xf32>, vector<8x32xf32> -> vector<8x32xf32>
    %c0_65 = arith.constant 0 : index
    %c0_66 = arith.constant 0 : index
    %c0_67 = arith.constant 0 : index
    %92 = vector.load %arg19[%c0_65, %c0_66, %c0_67] : memref<4x1x32xf32, #tpu.memory_space<vmem>>, vector<1x1x32xf32>
    %93 = vector.shape_cast %92 : vector<1x1x32xf32> to vector<1x32xf32>
    %94 = vector.broadcast %93 : vector<1x32xf32> to vector<8x32xf32>
    %95 = arith.addf %91, %94 : vector<8x32xf32>
    %96 = arith.addf %95, %79 : vector<8x32xf32>
    %c0_68 = arith.constant 0 : index
    %c0_69 = arith.constant 0 : index
    %c0_70 = arith.constant 0 : index
    %97 = vector.load %arg20[%c0_68, %c0_69, %c0_70] : memref<4x1x32xf32, #tpu.memory_space<vmem>>, vector<1x1x32xf32>
    %98 = vector.shape_cast %97 : vector<1x1x32xf32> to vector<1x32xf32>
    %c0_71 = arith.constant 0 : index
    %c0_72 = arith.constant 0 : index
    %c0_73 = arith.constant 0 : index
    %99 = vector.load %arg21[%c0_71, %c0_72, %c0_73] : memref<4x1x32xf32, #tpu.memory_space<vmem>>, vector<1x1x32xf32>
    %100 = vector.shape_cast %99 : vector<1x1x32xf32> to vector<1x32xf32>
    %cst_74 = arith.constant dense<0.000000e+00> : vector<8xf32>
    %101 = vector.multi_reduction <add>, %96, %cst_74 [1] : vector<8x32xf32> to vector<8xf32>
    %102 = vector.shape_cast %101 : vector<8xf32> to vector<8x1xf32>
    %cst_75 = arith.constant 3.200000e+01 : f32
    %103 = vector.broadcast %cst_75 : f32 to vector<8x1xf32>
    %104 = arith.divf %102, %103 : vector<8x1xf32>
    %105 = vector.broadcast %104 : vector<8x1xf32> to vector<8x32xf32>
    %106 = arith.subf %96, %105 : vector<8x32xf32>
    %107 = arith.mulf %106, %106 : vector<8x32xf32>
    %cst_76 = arith.constant dense<0.000000e+00> : vector<8xf32>
    %108 = vector.multi_reduction <add>, %107, %cst_76 [1] : vector<8x32xf32> to vector<8xf32>
    %109 = vector.shape_cast %108 : vector<8xf32> to vector<8x1xf32>
    %cst_77 = arith.constant 3.200000e+01 : f32
    %110 = vector.broadcast %cst_77 : f32 to vector<8x1xf32>
    %111 = arith.divf %109, %110 : vector<8x1xf32>
    %112 = vector.broadcast %104 : vector<8x1xf32> to vector<8x32xf32>
    %113 = arith.subf %96, %112 : vector<8x32xf32>
    %cst_78 = arith.constant 9.99999974E-6 : f32
    %114 = vector.broadcast %cst_78 : f32 to vector<8x1xf32>
    %115 = arith.addf %111, %114 : vector<8x1xf32>
    %116 = math.rsqrt %115 : vector<8x1xf32>
    %117 = vector.broadcast %116 : vector<8x1xf32> to vector<8x32xf32>
    %118 = arith.mulf %113, %117 : vector<8x32xf32>
    %119 = vector.broadcast %98 : vector<1x32xf32> to vector<8x32xf32>
    %120 = arith.mulf %118, %119 : vector<8x32xf32>
    %121 = vector.broadcast %100 : vector<1x32xf32> to vector<8x32xf32>
    %122 = arith.addf %120, %121 : vector<8x32xf32>
    %123 = arith.addf %122, %0 : vector<8x32xf32>
    %124 = arith.addf %4, %0 : vector<8x32xf32>
    %c1 = arith.constant 1 : index
    %c0_79 = arith.constant 0 : index
    %c0_80 = arith.constant 0 : index
    %125 = vector.load %arg6[%c1, %c0_79, %c0_80] : memref<4x32x32xf32, #tpu.memory_space<vmem>>, vector<1x32x32xf32>
    %126 = vector.shape_cast %125 : vector<1x32x32xf32> to vector<32x32xf32>
    %cst_81 = arith.constant dense<0.000000e+00> : vector<8x32xf32>
    %127 = tpu.matmul %123, %126, %cst_81 {dimension_numbers = #tpu.dot_dimension_numbers<[1], [0], [0], [1], [0, 0, 1, 1], [], []>} : vector<8x32xf32>, vector<32x32xf32>, vector<8x32xf32> -> vector<8x32xf32>
    %c1_82 = arith.constant 1 : index
    %c0_83 = arith.constant 0 : index
    %c0_84 = arith.constant 0 : index
    %128 = vector.load %arg7[%c1_82, %c0_83, %c0_84] : memref<4x1x32xf32, #tpu.memory_space<vmem>>, vector<1x1x32xf32>
    %129 = vector.shape_cast %128 : vector<1x1x32xf32> to vector<1x32xf32>
    %130 = vector.broadcast %129 : vector<1x32xf32> to vector<8x32xf32>
    %131 = arith.addf %127, %130 : vector<8x32xf32>
    %c1_85 = arith.constant 1 : index
    %c0_86 = arith.constant 0 : index
    %c0_87 = arith.constant 0 : index
    %132 = vector.load %arg8[%c1_85, %c0_86, %c0_87] : memref<4x32x32xf32, #tpu.memory_space<vmem>>, vector<1x32x32xf32>
    %133 = vector.shape_cast %132 : vector<1x32x32xf32> to vector<32x32xf32>
    %cst_88 = arith.constant dense<0.000000e+00> : vector<8x32xf32>
    %134 = tpu.matmul %124, %133, %cst_88 {dimension_numbers = #tpu.dot_dimension_numbers<[1], [0], [0], [1], [0, 0, 1, 1], [], []>} : vector<8x32xf32>, vector<32x32xf32>, vector<8x32xf32> -> vector<8x32xf32>
    %c1_89 = arith.constant 1 : index
    %c0_90 = arith.constant 0 : index
    %c0_91 = arith.constant 0 : index
    %135 = vector.load %arg9[%c1_89, %c0_90, %c0_91] : memref<4x1x32xf32, #tpu.memory_space<vmem>>, vector<1x1x32xf32>
    %136 = vector.shape_cast %135 : vector<1x1x32xf32> to vector<1x32xf32>
    %137 = vector.broadcast %136 : vector<1x32xf32> to vector<8x32xf32>
    %138 = arith.addf %134, %137 : vector<8x32xf32>
    %c1_92 = arith.constant 1 : index
    %c0_93 = arith.constant 0 : index
    %c0_94 = arith.constant 0 : index
    %139 = vector.load %arg10[%c1_92, %c0_93, %c0_94] : memref<4x32x32xf32, #tpu.memory_space<vmem>>, vector<1x32x32xf32>
    %140 = vector.shape_cast %139 : vector<1x32x32xf32> to vector<32x32xf32>
    %cst_95 = arith.constant dense<0.000000e+00> : vector<8x32xf32>
    %141 = tpu.matmul %124, %140, %cst_95 {dimension_numbers = #tpu.dot_dimension_numbers<[1], [0], [0], [1], [0, 0, 1, 1], [], []>} : vector<8x32xf32>, vector<32x32xf32>, vector<8x32xf32> -> vector<8x32xf32>
    %c1_96 = arith.constant 1 : index
    %c0_97 = arith.constant 0 : index
    %c0_98 = arith.constant 0 : index
    %142 = vector.load %arg11[%c1_96, %c0_97, %c0_98] : memref<4x1x32xf32, #tpu.memory_space<vmem>>, vector<1x1x32xf32>
    %143 = vector.shape_cast %142 : vector<1x1x32xf32> to vector<1x32xf32>
    %144 = vector.broadcast %143 : vector<1x32xf32> to vector<8x32xf32>
    %145 = arith.addf %141, %144 : vector<8x32xf32>
    %146 = tpu.concatenate %131, %131, %131, %131, %131, %131, %131, %131 in 0 : vector<8x32xf32>, vector<8x32xf32>, vector<8x32xf32>, vector<8x32xf32>, vector<8x32xf32>, vector<8x32xf32>, vector<8x32xf32>, vector<8x32xf32> -> vector<64x32xf32>
    %147 = arith.mulf %146, %1 : vector<64x32xf32>
    %cst_99 = arith.constant dense<0.000000e+00> : vector<64x8xf32>
    %148 = tpu.matmul %147, %138, %cst_99 {dimension_numbers = #tpu.dot_dimension_numbers<[1], [1], [0], [0], [0, 0, 1, 0], [], []>} : vector<64x32xf32>, vector<8x32xf32>, vector<64x8xf32> -> vector<64x8xf32>
    %cst_100 = arith.constant 5.000000e-01 : f32
    %149 = vector.broadcast %cst_100 : f32 to vector<64x8xf32>
    %150 = arith.mulf %148, %149 : vector<64x8xf32>
    %cst_101 = arith.constant dense<0xFF800000> : vector<64xf32>
    %151 = vector.multi_reduction <maximumf>, %150, %cst_101 [1] : vector<64x8xf32> to vector<64xf32>
    %152 = vector.shape_cast %151 : vector<64xf32> to vector<64x1xf32>
    %153 = vector.broadcast %152 : vector<64x1xf32> to vector<64x8xf32>
    %154 = arith.subf %150, %153 : vector<64x8xf32>
    %155 = math.exp %154 : vector<64x8xf32>
    %cst_102 = arith.constant dense<0.000000e+00> : vector<64xf32>
    %156 = vector.multi_reduction <add>, %155, %cst_102 [1] : vector<64x8xf32> to vector<64xf32>
    %157 = vector.shape_cast %156 : vector<64xf32> to vector<64x1xf32>
    %158 = tpu.reciprocal %157 {approx = true} : vector<64x1xf32> -> vector<64x1xf32>
    %159 = vector.broadcast %158 : vector<64x1xf32> to vector<64x8xf32>
    %160 = arith.mulf %155, %159 : vector<64x8xf32>
    %cst_103 = arith.constant dense<0.000000e+00> : vector<64x32xf32>
    %161 = tpu.matmul %160, %145, %cst_103 {dimension_numbers = #tpu.dot_dimension_numbers<[1], [0], [0], [1], [0, 0, 1, 1], [], []>} : vector<64x8xf32>, vector<8x32xf32>, vector<64x32xf32> -> vector<64x32xf32>
    %162 = arith.mulf %161, %1 : vector<64x32xf32>
    %cst_104 = arith.constant dense<0.000000e+00> : vector<8x32xf32>
    %163 = tpu.matmul %2, %162, %cst_104 {dimension_numbers = #tpu.dot_dimension_numbers<[1], [0], [0], [1], [0, 0, 1, 1], [], []>} : vector<8x64xf32>, vector<64x32xf32>, vector<8x32xf32> -> vector<8x32xf32>
    %c1_105 = arith.constant 1 : index
    %c0_106 = arith.constant 0 : index
    %c0_107 = arith.constant 0 : index
    %164 = vector.load %arg12[%c1_105, %c0_106, %c0_107] : memref<4x32x32xf32, #tpu.memory_space<vmem>>, vector<1x32x32xf32>
    %165 = vector.shape_cast %164 : vector<1x32x32xf32> to vector<32x32xf32>
    %cst_108 = arith.constant dense<0.000000e+00> : vector<8x32xf32>
    %166 = tpu.matmul %163, %165, %cst_108 {dimension_numbers = #tpu.dot_dimension_numbers<[1], [0], [0], [1], [0, 0, 1, 1], [], []>} : vector<8x32xf32>, vector<32x32xf32>, vector<8x32xf32> -> vector<8x32xf32>
    %c1_109 = arith.constant 1 : index
    %c0_110 = arith.constant 0 : index
    %c0_111 = arith.constant 0 : index
    %167 = vector.load %arg13[%c1_109, %c0_110, %c0_111] : memref<4x1x32xf32, #tpu.memory_space<vmem>>, vector<1x1x32xf32>
    %168 = vector.shape_cast %167 : vector<1x1x32xf32> to vector<1x32xf32>
    %169 = vector.broadcast %168 : vector<1x32xf32> to vector<8x32xf32>
    %170 = arith.addf %166, %169 : vector<8x32xf32>
    %171 = arith.addf %170, %123 : vector<8x32xf32>
    %c1_112 = arith.constant 1 : index
    %c0_113 = arith.constant 0 : index
    %c0_114 = arith.constant 0 : index
    %172 = vector.load %arg14[%c1_112, %c0_113, %c0_114] : memref<4x1x32xf32, #tpu.memory_space<vmem>>, vector<1x1x32xf32>
    %173 = vector.shape_cast %172 : vector<1x1x32xf32> to vector<1x32xf32>
    %c1_115 = arith.constant 1 : index
    %c0_116 = arith.constant 0 : index
    %c0_117 = arith.constant 0 : index
    %174 = vector.load %arg15[%c1_115, %c0_116, %c0_117] : memref<4x1x32xf32, #tpu.memory_space<vmem>>, vector<1x1x32xf32>
    %175 = vector.shape_cast %174 : vector<1x1x32xf32> to vector<1x32xf32>
    %cst_118 = arith.constant dense<0.000000e+00> : vector<8xf32>
    %176 = vector.multi_reduction <add>, %171, %cst_118 [1] : vector<8x32xf32> to vector<8xf32>
    %177 = vector.shape_cast %176 : vector<8xf32> to vector<8x1xf32>
    %cst_119 = arith.constant 3.200000e+01 : f32
    %178 = vector.broadcast %cst_119 : f32 to vector<8x1xf32>
    %179 = arith.divf %177, %178 : vector<8x1xf32>
    %180 = vector.broadcast %179 : vector<8x1xf32> to vector<8x32xf32>
    %181 = arith.subf %171, %180 : vector<8x32xf32>
    %182 = arith.mulf %181, %181 : vector<8x32xf32>
    %cst_120 = arith.constant dense<0.000000e+00> : vector<8xf32>
    %183 = vector.multi_reduction <add>, %182, %cst_120 [1] : vector<8x32xf32> to vector<8xf32>
    %184 = vector.shape_cast %183 : vector<8xf32> to vector<8x1xf32>
    %cst_121 = arith.constant 3.200000e+01 : f32
    %185 = vector.broadcast %cst_121 : f32 to vector<8x1xf32>
    %186 = arith.divf %184, %185 : vector<8x1xf32>
    %187 = vector.broadcast %179 : vector<8x1xf32> to vector<8x32xf32>
    %188 = arith.subf %171, %187 : vector<8x32xf32>
    %cst_122 = arith.constant 9.99999974E-6 : f32
    %189 = vector.broadcast %cst_122 : f32 to vector<8x1xf32>
    %190 = arith.addf %186, %189 : vector<8x1xf32>
    %191 = math.rsqrt %190 : vector<8x1xf32>
    %192 = vector.broadcast %191 : vector<8x1xf32> to vector<8x32xf32>
    %193 = arith.mulf %188, %192 : vector<8x32xf32>
    %194 = vector.broadcast %173 : vector<1x32xf32> to vector<8x32xf32>
    %195 = arith.mulf %193, %194 : vector<8x32xf32>
    %196 = vector.broadcast %175 : vector<1x32xf32> to vector<8x32xf32>
    %197 = arith.addf %195, %196 : vector<8x32xf32>
    %c1_123 = arith.constant 1 : index
    %c0_124 = arith.constant 0 : index
    %c0_125 = arith.constant 0 : index
    %198 = vector.load %arg16[%c1_123, %c0_124, %c0_125] : memref<4x32x32xf32, #tpu.memory_space<vmem>>, vector<1x32x32xf32>
    %199 = vector.shape_cast %198 : vector<1x32x32xf32> to vector<32x32xf32>
    %cst_126 = arith.constant dense<0.000000e+00> : vector<8x32xf32>
    %200 = tpu.matmul %197, %199, %cst_126 {dimension_numbers = #tpu.dot_dimension_numbers<[1], [0], [0], [1], [0, 0, 1, 1], [], []>} : vector<8x32xf32>, vector<32x32xf32>, vector<8x32xf32> -> vector<8x32xf32>
    %c1_127 = arith.constant 1 : index
    %c0_128 = arith.constant 0 : index
    %c0_129 = arith.constant 0 : index
    %201 = vector.load %arg17[%c1_127, %c0_128, %c0_129] : memref<4x1x32xf32, #tpu.memory_space<vmem>>, vector<1x1x32xf32>
    %202 = vector.shape_cast %201 : vector<1x1x32xf32> to vector<1x32xf32>
    %203 = vector.broadcast %202 : vector<1x32xf32> to vector<8x32xf32>
    %204 = arith.addf %200, %203 : vector<8x32xf32>
    %cst_130 = arith.constant 0.000000e+00 : f32
    %205 = vector.broadcast %cst_130 : f32 to vector<8x32xf32>
    %206 = arith.maximumf %204, %205 : vector<8x32xf32>
    %c1_131 = arith.constant 1 : index
    %c0_132 = arith.constant 0 : index
    %c0_133 = arith.constant 0 : index
    %207 = vector.load %arg18[%c1_131, %c0_132, %c0_133] : memref<4x32x32xf32, #tpu.memory_space<vmem>>, vector<1x32x32xf32>
    %208 = vector.shape_cast %207 : vector<1x32x32xf32> to vector<32x32xf32>
    %cst_134 = arith.constant dense<0.000000e+00> : vector<8x32xf32>
    %209 = tpu.matmul %206, %208, %cst_134 {dimension_numbers = #tpu.dot_dimension_numbers<[1], [0], [0], [1], [0, 0, 1, 1], [], []>} : vector<8x32xf32>, vector<32x32xf32>, vector<8x32xf32> -> vector<8x32xf32>
    %c1_135 = arith.constant 1 : index
    %c0_136 = arith.constant 0 : index
    %c0_137 = arith.constant 0 : index
    %210 = vector.load %arg19[%c1_135, %c0_136, %c0_137] : memref<4x1x32xf32, #tpu.memory_space<vmem>>, vector<1x1x32xf32>
    %211 = vector.shape_cast %210 : vector<1x1x32xf32> to vector<1x32xf32>
    %212 = vector.broadcast %211 : vector<1x32xf32> to vector<8x32xf32>
    %213 = arith.addf %209, %212 : vector<8x32xf32>
    %214 = arith.addf %213, %197 : vector<8x32xf32>
    %c1_138 = arith.constant 1 : index
    %c0_139 = arith.constant 0 : index
    %c0_140 = arith.constant 0 : index
    %215 = vector.load %arg20[%c1_138, %c0_139, %c0_140] : memref<4x1x32xf32, #tpu.memory_space<vmem>>, vector<1x1x32xf32>
    %216 = vector.shape_cast %215 : vector<1x1x32xf32> to vector<1x32xf32>
    %c1_141 = arith.constant 1 : index
    %c0_142 = arith.constant 0 : index
    %c0_143 = arith.constant 0 : index
    %217 = vector.load %arg21[%c1_141, %c0_142, %c0_143] : memref<4x1x32xf32, #tpu.memory_space<vmem>>, vector<1x1x32xf32>
    %218 = vector.shape_cast %217 : vector<1x1x32xf32> to vector<1x32xf32>
    %cst_144 = arith.constant dense<0.000000e+00> : vector<8xf32>
    %219 = vector.multi_reduction <add>, %214, %cst_144 [1] : vector<8x32xf32> to vector<8xf32>
    %220 = vector.shape_cast %219 : vector<8xf32> to vector<8x1xf32>
    %cst_145 = arith.constant 3.200000e+01 : f32
    %221 = vector.broadcast %cst_145 : f32 to vector<8x1xf32>
    %222 = arith.divf %220, %221 : vector<8x1xf32>
    %223 = vector.broadcast %222 : vector<8x1xf32> to vector<8x32xf32>
    %224 = arith.subf %214, %223 : vector<8x32xf32>
    %225 = arith.mulf %224, %224 : vector<8x32xf32>
    %cst_146 = arith.constant dense<0.000000e+00> : vector<8xf32>
    %226 = vector.multi_reduction <add>, %225, %cst_146 [1] : vector<8x32xf32> to vector<8xf32>
    %227 = vector.shape_cast %226 : vector<8xf32> to vector<8x1xf32>
    %cst_147 = arith.constant 3.200000e+01 : f32
    %228 = vector.broadcast %cst_147 : f32 to vector<8x1xf32>
    %229 = arith.divf %227, %228 : vector<8x1xf32>
    %230 = vector.broadcast %222 : vector<8x1xf32> to vector<8x32xf32>
    %231 = arith.subf %214, %230 : vector<8x32xf32>
    %cst_148 = arith.constant 9.99999974E-6 : f32
    %232 = vector.broadcast %cst_148 : f32 to vector<8x1xf32>
    %233 = arith.addf %229, %232 : vector<8x1xf32>
    %234 = math.rsqrt %233 : vector<8x1xf32>
    %235 = vector.broadcast %234 : vector<8x1xf32> to vector<8x32xf32>
    %236 = arith.mulf %231, %235 : vector<8x32xf32>
    %237 = vector.broadcast %216 : vector<1x32xf32> to vector<8x32xf32>
    %238 = arith.mulf %236, %237 : vector<8x32xf32>
    %239 = vector.broadcast %218 : vector<1x32xf32> to vector<8x32xf32>
    %240 = arith.addf %238, %239 : vector<8x32xf32>
    %241 = arith.addf %240, %0 : vector<8x32xf32>
    %242 = arith.addf %122, %0 : vector<8x32xf32>
    %c2 = arith.constant 2 : index
    %c0_149 = arith.constant 0 : index
    %c0_150 = arith.constant 0 : index
    %243 = vector.load %arg6[%c2, %c0_149, %c0_150] : memref<4x32x32xf32, #tpu.memory_space<vmem>>, vector<1x32x32xf32>
    %244 = vector.shape_cast %243 : vector<1x32x32xf32> to vector<32x32xf32>
    %cst_151 = arith.constant dense<0.000000e+00> : vector<8x32xf32>
    %245 = tpu.matmul %241, %244, %cst_151 {dimension_numbers = #tpu.dot_dimension_numbers<[1], [0], [0], [1], [0, 0, 1, 1], [], []>} : vector<8x32xf32>, vector<32x32xf32>, vector<8x32xf32> -> vector<8x32xf32>
    %c2_152 = arith.constant 2 : index
    %c0_153 = arith.constant 0 : index
    %c0_154 = arith.constant 0 : index
    %246 = vector.load %arg7[%c2_152, %c0_153, %c0_154] : memref<4x1x32xf32, #tpu.memory_space<vmem>>, vector<1x1x32xf32>
    %247 = vector.shape_cast %246 : vector<1x1x32xf32> to vector<1x32xf32>
    %248 = vector.broadcast %247 : vector<1x32xf32> to vector<8x32xf32>
    %249 = arith.addf %245, %248 : vector<8x32xf32>
    %c2_155 = arith.constant 2 : index
    %c0_156 = arith.constant 0 : index
    %c0_157 = arith.constant 0 : index
    %250 = vector.load %arg8[%c2_155, %c0_156, %c0_157] : memref<4x32x32xf32, #tpu.memory_space<vmem>>, vector<1x32x32xf32>
    %251 = vector.shape_cast %250 : vector<1x32x32xf32> to vector<32x32xf32>
    %cst_158 = arith.constant dense<0.000000e+00> : vector<8x32xf32>
    %252 = tpu.matmul %242, %251, %cst_158 {dimension_numbers = #tpu.dot_dimension_numbers<[1], [0], [0], [1], [0, 0, 1, 1], [], []>} : vector<8x32xf32>, vector<32x32xf32>, vector<8x32xf32> -> vector<8x32xf32>
    %c2_159 = arith.constant 2 : index
    %c0_160 = arith.constant 0 : index
    %c0_161 = arith.constant 0 : index
    %253 = vector.load %arg9[%c2_159, %c0_160, %c0_161] : memref<4x1x32xf32, #tpu.memory_space<vmem>>, vector<1x1x32xf32>
    %254 = vector.shape_cast %253 : vector<1x1x32xf32> to vector<1x32xf32>
    %255 = vector.broadcast %254 : vector<1x32xf32> to vector<8x32xf32>
    %256 = arith.addf %252, %255 : vector<8x32xf32>
    %c2_162 = arith.constant 2 : index
    %c0_163 = arith.constant 0 : index
    %c0_164 = arith.constant 0 : index
    %257 = vector.load %arg10[%c2_162, %c0_163, %c0_164] : memref<4x32x32xf32, #tpu.memory_space<vmem>>, vector<1x32x32xf32>
    %258 = vector.shape_cast %257 : vector<1x32x32xf32> to vector<32x32xf32>
    %cst_165 = arith.constant dense<0.000000e+00> : vector<8x32xf32>
    %259 = tpu.matmul %242, %258, %cst_165 {dimension_numbers = #tpu.dot_dimension_numbers<[1], [0], [0], [1], [0, 0, 1, 1], [], []>} : vector<8x32xf32>, vector<32x32xf32>, vector<8x32xf32> -> vector<8x32xf32>
    %c2_166 = arith.constant 2 : index
    %c0_167 = arith.constant 0 : index
    %c0_168 = arith.constant 0 : index
    %260 = vector.load %arg11[%c2_166, %c0_167, %c0_168] : memref<4x1x32xf32, #tpu.memory_space<vmem>>, vector<1x1x32xf32>
    %261 = vector.shape_cast %260 : vector<1x1x32xf32> to vector<1x32xf32>
    %262 = vector.broadcast %261 : vector<1x32xf32> to vector<8x32xf32>
    %263 = arith.addf %259, %262 : vector<8x32xf32>
    %264 = tpu.concatenate %249, %249, %249, %249, %249, %249, %249, %249 in 0 : vector<8x32xf32>, vector<8x32xf32>, vector<8x32xf32>, vector<8x32xf32>, vector<8x32xf32>, vector<8x32xf32>, vector<8x32xf32>, vector<8x32xf32> -> vector<64x32xf32>
    %265 = arith.mulf %264, %1 : vector<64x32xf32>
    %cst_169 = arith.constant dense<0.000000e+00> : vector<64x8xf32>
    %266 = tpu.matmul %265, %256, %cst_169 {dimension_numbers = #tpu.dot_dimension_numbers<[1], [1], [0], [0], [0, 0, 1, 0], [], []>} : vector<64x32xf32>, vector<8x32xf32>, vector<64x8xf32> -> vector<64x8xf32>
    %cst_170 = arith.constant 5.000000e-01 : f32
    %267 = vector.broadcast %cst_170 : f32 to vector<64x8xf32>
    %268 = arith.mulf %266, %267 : vector<64x8xf32>
    %cst_171 = arith.constant dense<0xFF800000> : vector<64xf32>
    %269 = vector.multi_reduction <maximumf>, %268, %cst_171 [1] : vector<64x8xf32> to vector<64xf32>
    %270 = vector.shape_cast %269 : vector<64xf32> to vector<64x1xf32>
    %271 = vector.broadcast %270 : vector<64x1xf32> to vector<64x8xf32>
    %272 = arith.subf %268, %271 : vector<64x8xf32>
    %273 = math.exp %272 : vector<64x8xf32>
    %cst_172 = arith.constant dense<0.000000e+00> : vector<64xf32>
    %274 = vector.multi_reduction <add>, %273, %cst_172 [1] : vector<64x8xf32> to vector<64xf32>
    %275 = vector.shape_cast %274 : vector<64xf32> to vector<64x1xf32>
    %276 = tpu.reciprocal %275 {approx = true} : vector<64x1xf32> -> vector<64x1xf32>
    %277 = vector.broadcast %276 : vector<64x1xf32> to vector<64x8xf32>
    %278 = arith.mulf %273, %277 : vector<64x8xf32>
    %cst_173 = arith.constant dense<0.000000e+00> : vector<64x32xf32>
    %279 = tpu.matmul %278, %263, %cst_173 {dimension_numbers = #tpu.dot_dimension_numbers<[1], [0], [0], [1], [0, 0, 1, 1], [], []>} : vector<64x8xf32>, vector<8x32xf32>, vector<64x32xf32> -> vector<64x32xf32>
    %280 = arith.mulf %279, %1 : vector<64x32xf32>
    %cst_174 = arith.constant dense<0.000000e+00> : vector<8x32xf32>
    %281 = tpu.matmul %2, %280, %cst_174 {dimension_numbers = #tpu.dot_dimension_numbers<[1], [0], [0], [1], [0, 0, 1, 1], [], []>} : vector<8x64xf32>, vector<64x32xf32>, vector<8x32xf32> -> vector<8x32xf32>
    %c2_175 = arith.constant 2 : index
    %c0_176 = arith.constant 0 : index
    %c0_177 = arith.constant 0 : index
    %282 = vector.load %arg12[%c2_175, %c0_176, %c0_177] : memref<4x32x32xf32, #tpu.memory_space<vmem>>, vector<1x32x32xf32>
    %283 = vector.shape_cast %282 : vector<1x32x32xf32> to vector<32x32xf32>
    %cst_178 = arith.constant dense<0.000000e+00> : vector<8x32xf32>
    %284 = tpu.matmul %281, %283, %cst_178 {dimension_numbers = #tpu.dot_dimension_numbers<[1], [0], [0], [1], [0, 0, 1, 1], [], []>} : vector<8x32xf32>, vector<32x32xf32>, vector<8x32xf32> -> vector<8x32xf32>
    %c2_179 = arith.constant 2 : index
    %c0_180 = arith.constant 0 : index
    %c0_181 = arith.constant 0 : index
    %285 = vector.load %arg13[%c2_179, %c0_180, %c0_181] : memref<4x1x32xf32, #tpu.memory_space<vmem>>, vector<1x1x32xf32>
    %286 = vector.shape_cast %285 : vector<1x1x32xf32> to vector<1x32xf32>
    %287 = vector.broadcast %286 : vector<1x32xf32> to vector<8x32xf32>
    %288 = arith.addf %284, %287 : vector<8x32xf32>
    %289 = arith.addf %288, %241 : vector<8x32xf32>
    %c2_182 = arith.constant 2 : index
    %c0_183 = arith.constant 0 : index
    %c0_184 = arith.constant 0 : index
    %290 = vector.load %arg14[%c2_182, %c0_183, %c0_184] : memref<4x1x32xf32, #tpu.memory_space<vmem>>, vector<1x1x32xf32>
    %291 = vector.shape_cast %290 : vector<1x1x32xf32> to vector<1x32xf32>
    %c2_185 = arith.constant 2 : index
    %c0_186 = arith.constant 0 : index
    %c0_187 = arith.constant 0 : index
    %292 = vector.load %arg15[%c2_185, %c0_186, %c0_187] : memref<4x1x32xf32, #tpu.memory_space<vmem>>, vector<1x1x32xf32>
    %293 = vector.shape_cast %292 : vector<1x1x32xf32> to vector<1x32xf32>
    %cst_188 = arith.constant dense<0.000000e+00> : vector<8xf32>
    %294 = vector.multi_reduction <add>, %289, %cst_188 [1] : vector<8x32xf32> to vector<8xf32>
    %295 = vector.shape_cast %294 : vector<8xf32> to vector<8x1xf32>
    %cst_189 = arith.constant 3.200000e+01 : f32
    %296 = vector.broadcast %cst_189 : f32 to vector<8x1xf32>
    %297 = arith.divf %295, %296 : vector<8x1xf32>
    %298 = vector.broadcast %297 : vector<8x1xf32> to vector<8x32xf32>
    %299 = arith.subf %289, %298 : vector<8x32xf32>
    %300 = arith.mulf %299, %299 : vector<8x32xf32>
    %cst_190 = arith.constant dense<0.000000e+00> : vector<8xf32>
    %301 = vector.multi_reduction <add>, %300, %cst_190 [1] : vector<8x32xf32> to vector<8xf32>
    %302 = vector.shape_cast %301 : vector<8xf32> to vector<8x1xf32>
    %cst_191 = arith.constant 3.200000e+01 : f32
    %303 = vector.broadcast %cst_191 : f32 to vector<8x1xf32>
    %304 = arith.divf %302, %303 : vector<8x1xf32>
    %305 = vector.broadcast %297 : vector<8x1xf32> to vector<8x32xf32>
    %306 = arith.subf %289, %305 : vector<8x32xf32>
    %cst_192 = arith.constant 9.99999974E-6 : f32
    %307 = vector.broadcast %cst_192 : f32 to vector<8x1xf32>
    %308 = arith.addf %304, %307 : vector<8x1xf32>
    %309 = math.rsqrt %308 : vector<8x1xf32>
    %310 = vector.broadcast %309 : vector<8x1xf32> to vector<8x32xf32>
    %311 = arith.mulf %306, %310 : vector<8x32xf32>
    %312 = vector.broadcast %291 : vector<1x32xf32> to vector<8x32xf32>
    %313 = arith.mulf %311, %312 : vector<8x32xf32>
    %314 = vector.broadcast %293 : vector<1x32xf32> to vector<8x32xf32>
    %315 = arith.addf %313, %314 : vector<8x32xf32>
    %c2_193 = arith.constant 2 : index
    %c0_194 = arith.constant 0 : index
    %c0_195 = arith.constant 0 : index
    %316 = vector.load %arg16[%c2_193, %c0_194, %c0_195] : memref<4x32x32xf32, #tpu.memory_space<vmem>>, vector<1x32x32xf32>
    %317 = vector.shape_cast %316 : vector<1x32x32xf32> to vector<32x32xf32>
    %cst_196 = arith.constant dense<0.000000e+00> : vector<8x32xf32>
    %318 = tpu.matmul %315, %317, %cst_196 {dimension_numbers = #tpu.dot_dimension_numbers<[1], [0], [0], [1], [0, 0, 1, 1], [], []>} : vector<8x32xf32>, vector<32x32xf32>, vector<8x32xf32> -> vector<8x32xf32>
    %c2_197 = arith.constant 2 : index
    %c0_198 = arith.constant 0 : index
    %c0_199 = arith.constant 0 : index
    %319 = vector.load %arg17[%c2_197, %c0_198, %c0_199] : memref<4x1x32xf32, #tpu.memory_space<vmem>>, vector<1x1x32xf32>
    %320 = vector.shape_cast %319 : vector<1x1x32xf32> to vector<1x32xf32>
    %321 = vector.broadcast %320 : vector<1x32xf32> to vector<8x32xf32>
    %322 = arith.addf %318, %321 : vector<8x32xf32>
    %cst_200 = arith.constant 0.000000e+00 : f32
    %323 = vector.broadcast %cst_200 : f32 to vector<8x32xf32>
    %324 = arith.maximumf %322, %323 : vector<8x32xf32>
    %c2_201 = arith.constant 2 : index
    %c0_202 = arith.constant 0 : index
    %c0_203 = arith.constant 0 : index
    %325 = vector.load %arg18[%c2_201, %c0_202, %c0_203] : memref<4x32x32xf32, #tpu.memory_space<vmem>>, vector<1x32x32xf32>
    %326 = vector.shape_cast %325 : vector<1x32x32xf32> to vector<32x32xf32>
    %cst_204 = arith.constant dense<0.000000e+00> : vector<8x32xf32>
    %327 = tpu.matmul %324, %326, %cst_204 {dimension_numbers = #tpu.dot_dimension_numbers<[1], [0], [0], [1], [0, 0, 1, 1], [], []>} : vector<8x32xf32>, vector<32x32xf32>, vector<8x32xf32> -> vector<8x32xf32>
    %c2_205 = arith.constant 2 : index
    %c0_206 = arith.constant 0 : index
    %c0_207 = arith.constant 0 : index
    %328 = vector.load %arg19[%c2_205, %c0_206, %c0_207] : memref<4x1x32xf32, #tpu.memory_space<vmem>>, vector<1x1x32xf32>
    %329 = vector.shape_cast %328 : vector<1x1x32xf32> to vector<1x32xf32>
    %330 = vector.broadcast %329 : vector<1x32xf32> to vector<8x32xf32>
    %331 = arith.addf %327, %330 : vector<8x32xf32>
    %332 = arith.addf %331, %315 : vector<8x32xf32>
    %c2_208 = arith.constant 2 : index
    %c0_209 = arith.constant 0 : index
    %c0_210 = arith.constant 0 : index
    %333 = vector.load %arg20[%c2_208, %c0_209, %c0_210] : memref<4x1x32xf32, #tpu.memory_space<vmem>>, vector<1x1x32xf32>
    %334 = vector.shape_cast %333 : vector<1x1x32xf32> to vector<1x32xf32>
    %c2_211 = arith.constant 2 : index
    %c0_212 = arith.constant 0 : index
    %c0_213 = arith.constant 0 : index
    %335 = vector.load %arg21[%c2_211, %c0_212, %c0_213] : memref<4x1x32xf32, #tpu.memory_space<vmem>>, vector<1x1x32xf32>
    %336 = vector.shape_cast %335 : vector<1x1x32xf32> to vector<1x32xf32>
    %cst_214 = arith.constant dense<0.000000e+00> : vector<8xf32>
    %337 = vector.multi_reduction <add>, %332, %cst_214 [1] : vector<8x32xf32> to vector<8xf32>
    %338 = vector.shape_cast %337 : vector<8xf32> to vector<8x1xf32>
    %cst_215 = arith.constant 3.200000e+01 : f32
    %339 = vector.broadcast %cst_215 : f32 to vector<8x1xf32>
    %340 = arith.divf %338, %339 : vector<8x1xf32>
    %341 = vector.broadcast %340 : vector<8x1xf32> to vector<8x32xf32>
    %342 = arith.subf %332, %341 : vector<8x32xf32>
    %343 = arith.mulf %342, %342 : vector<8x32xf32>
    %cst_216 = arith.constant dense<0.000000e+00> : vector<8xf32>
    %344 = vector.multi_reduction <add>, %343, %cst_216 [1] : vector<8x32xf32> to vector<8xf32>
    %345 = vector.shape_cast %344 : vector<8xf32> to vector<8x1xf32>
    %cst_217 = arith.constant 3.200000e+01 : f32
    %346 = vector.broadcast %cst_217 : f32 to vector<8x1xf32>
    %347 = arith.divf %345, %346 : vector<8x1xf32>
    %348 = vector.broadcast %340 : vector<8x1xf32> to vector<8x32xf32>
    %349 = arith.subf %332, %348 : vector<8x32xf32>
    %cst_218 = arith.constant 9.99999974E-6 : f32
    %350 = vector.broadcast %cst_218 : f32 to vector<8x1xf32>
    %351 = arith.addf %347, %350 : vector<8x1xf32>
    %352 = math.rsqrt %351 : vector<8x1xf32>
    %353 = vector.broadcast %352 : vector<8x1xf32> to vector<8x32xf32>
    %354 = arith.mulf %349, %353 : vector<8x32xf32>
    %355 = vector.broadcast %334 : vector<1x32xf32> to vector<8x32xf32>
    %356 = arith.mulf %354, %355 : vector<8x32xf32>
    %357 = vector.broadcast %336 : vector<1x32xf32> to vector<8x32xf32>
    %358 = arith.addf %356, %357 : vector<8x32xf32>
    %359 = arith.addf %358, %0 : vector<8x32xf32>
    %360 = arith.addf %240, %0 : vector<8x32xf32>
    %c3 = arith.constant 3 : index
    %c0_219 = arith.constant 0 : index
    %c0_220 = arith.constant 0 : index
    %361 = vector.load %arg6[%c3, %c0_219, %c0_220] : memref<4x32x32xf32, #tpu.memory_space<vmem>>, vector<1x32x32xf32>
    %362 = vector.shape_cast %361 : vector<1x32x32xf32> to vector<32x32xf32>
    %cst_221 = arith.constant dense<0.000000e+00> : vector<8x32xf32>
    %363 = tpu.matmul %359, %362, %cst_221 {dimension_numbers = #tpu.dot_dimension_numbers<[1], [0], [0], [1], [0, 0, 1, 1], [], []>} : vector<8x32xf32>, vector<32x32xf32>, vector<8x32xf32> -> vector<8x32xf32>
    %c3_222 = arith.constant 3 : index
    %c0_223 = arith.constant 0 : index
    %c0_224 = arith.constant 0 : index
    %364 = vector.load %arg7[%c3_222, %c0_223, %c0_224] : memref<4x1x32xf32, #tpu.memory_space<vmem>>, vector<1x1x32xf32>
    %365 = vector.shape_cast %364 : vector<1x1x32xf32> to vector<1x32xf32>
    %366 = vector.broadcast %365 : vector<1x32xf32> to vector<8x32xf32>
    %367 = arith.addf %363, %366 : vector<8x32xf32>
    %c3_225 = arith.constant 3 : index
    %c0_226 = arith.constant 0 : index
    %c0_227 = arith.constant 0 : index
    %368 = vector.load %arg8[%c3_225, %c0_226, %c0_227] : memref<4x32x32xf32, #tpu.memory_space<vmem>>, vector<1x32x32xf32>
    %369 = vector.shape_cast %368 : vector<1x32x32xf32> to vector<32x32xf32>
    %cst_228 = arith.constant dense<0.000000e+00> : vector<8x32xf32>
    %370 = tpu.matmul %360, %369, %cst_228 {dimension_numbers = #tpu.dot_dimension_numbers<[1], [0], [0], [1], [0, 0, 1, 1], [], []>} : vector<8x32xf32>, vector<32x32xf32>, vector<8x32xf32> -> vector<8x32xf32>
    %c3_229 = arith.constant 3 : index
    %c0_230 = arith.constant 0 : index
    %c0_231 = arith.constant 0 : index
    %371 = vector.load %arg9[%c3_229, %c0_230, %c0_231] : memref<4x1x32xf32, #tpu.memory_space<vmem>>, vector<1x1x32xf32>
    %372 = vector.shape_cast %371 : vector<1x1x32xf32> to vector<1x32xf32>
    %373 = vector.broadcast %372 : vector<1x32xf32> to vector<8x32xf32>
    %374 = arith.addf %370, %373 : vector<8x32xf32>
    %c3_232 = arith.constant 3 : index
    %c0_233 = arith.constant 0 : index
    %c0_234 = arith.constant 0 : index
    %375 = vector.load %arg10[%c3_232, %c0_233, %c0_234] : memref<4x32x32xf32, #tpu.memory_space<vmem>>, vector<1x32x32xf32>
    %376 = vector.shape_cast %375 : vector<1x32x32xf32> to vector<32x32xf32>
    %cst_235 = arith.constant dense<0.000000e+00> : vector<8x32xf32>
    %377 = tpu.matmul %360, %376, %cst_235 {dimension_numbers = #tpu.dot_dimension_numbers<[1], [0], [0], [1], [0, 0, 1, 1], [], []>} : vector<8x32xf32>, vector<32x32xf32>, vector<8x32xf32> -> vector<8x32xf32>
    %c3_236 = arith.constant 3 : index
    %c0_237 = arith.constant 0 : index
    %c0_238 = arith.constant 0 : index
    %378 = vector.load %arg11[%c3_236, %c0_237, %c0_238] : memref<4x1x32xf32, #tpu.memory_space<vmem>>, vector<1x1x32xf32>
    %379 = vector.shape_cast %378 : vector<1x1x32xf32> to vector<1x32xf32>
    %380 = vector.broadcast %379 : vector<1x32xf32> to vector<8x32xf32>
    %381 = arith.addf %377, %380 : vector<8x32xf32>
    %382 = tpu.concatenate %367, %367, %367, %367, %367, %367, %367, %367 in 0 : vector<8x32xf32>, vector<8x32xf32>, vector<8x32xf32>, vector<8x32xf32>, vector<8x32xf32>, vector<8x32xf32>, vector<8x32xf32>, vector<8x32xf32> -> vector<64x32xf32>
    %383 = arith.mulf %382, %1 : vector<64x32xf32>
    %cst_239 = arith.constant dense<0.000000e+00> : vector<64x8xf32>
    %384 = tpu.matmul %383, %374, %cst_239 {dimension_numbers = #tpu.dot_dimension_numbers<[1], [1], [0], [0], [0, 0, 1, 0], [], []>} : vector<64x32xf32>, vector<8x32xf32>, vector<64x8xf32> -> vector<64x8xf32>
    %cst_240 = arith.constant 5.000000e-01 : f32
    %385 = vector.broadcast %cst_240 : f32 to vector<64x8xf32>
    %386 = arith.mulf %384, %385 : vector<64x8xf32>
    %cst_241 = arith.constant dense<0xFF800000> : vector<64xf32>
    %387 = vector.multi_reduction <maximumf>, %386, %cst_241 [1] : vector<64x8xf32> to vector<64xf32>
    %388 = vector.shape_cast %387 : vector<64xf32> to vector<64x1xf32>
    %389 = vector.broadcast %388 : vector<64x1xf32> to vector<64x8xf32>
    %390 = arith.subf %386, %389 : vector<64x8xf32>
    %391 = math.exp %390 : vector<64x8xf32>
    %cst_242 = arith.constant dense<0.000000e+00> : vector<64xf32>
    %392 = vector.multi_reduction <add>, %391, %cst_242 [1] : vector<64x8xf32> to vector<64xf32>
    %393 = vector.shape_cast %392 : vector<64xf32> to vector<64x1xf32>
    %394 = tpu.reciprocal %393 {approx = true} : vector<64x1xf32> -> vector<64x1xf32>
    %395 = vector.broadcast %394 : vector<64x1xf32> to vector<64x8xf32>
    %396 = arith.mulf %391, %395 : vector<64x8xf32>
    %cst_243 = arith.constant dense<0.000000e+00> : vector<64x32xf32>
    %397 = tpu.matmul %396, %381, %cst_243 {dimension_numbers = #tpu.dot_dimension_numbers<[1], [0], [0], [1], [0, 0, 1, 1], [], []>} : vector<64x8xf32>, vector<8x32xf32>, vector<64x32xf32> -> vector<64x32xf32>
    %398 = arith.mulf %397, %1 : vector<64x32xf32>
    %cst_244 = arith.constant dense<0.000000e+00> : vector<8x32xf32>
    %399 = tpu.matmul %2, %398, %cst_244 {dimension_numbers = #tpu.dot_dimension_numbers<[1], [0], [0], [1], [0, 0, 1, 1], [], []>} : vector<8x64xf32>, vector<64x32xf32>, vector<8x32xf32> -> vector<8x32xf32>
    %c3_245 = arith.constant 3 : index
    %c0_246 = arith.constant 0 : index
    %c0_247 = arith.constant 0 : index
    %400 = vector.load %arg12[%c3_245, %c0_246, %c0_247] : memref<4x32x32xf32, #tpu.memory_space<vmem>>, vector<1x32x32xf32>
    %401 = vector.shape_cast %400 : vector<1x32x32xf32> to vector<32x32xf32>
    %cst_248 = arith.constant dense<0.000000e+00> : vector<8x32xf32>
    %402 = tpu.matmul %399, %401, %cst_248 {dimension_numbers = #tpu.dot_dimension_numbers<[1], [0], [0], [1], [0, 0, 1, 1], [], []>} : vector<8x32xf32>, vector<32x32xf32>, vector<8x32xf32> -> vector<8x32xf32>
    %c3_249 = arith.constant 3 : index
    %c0_250 = arith.constant 0 : index
    %c0_251 = arith.constant 0 : index
    %403 = vector.load %arg13[%c3_249, %c0_250, %c0_251] : memref<4x1x32xf32, #tpu.memory_space<vmem>>, vector<1x1x32xf32>
    %404 = vector.shape_cast %403 : vector<1x1x32xf32> to vector<1x32xf32>
    %405 = vector.broadcast %404 : vector<1x32xf32> to vector<8x32xf32>
    %406 = arith.addf %402, %405 : vector<8x32xf32>
    %407 = arith.addf %406, %359 : vector<8x32xf32>
    %c3_252 = arith.constant 3 : index
    %c0_253 = arith.constant 0 : index
    %c0_254 = arith.constant 0 : index
    %408 = vector.load %arg14[%c3_252, %c0_253, %c0_254] : memref<4x1x32xf32, #tpu.memory_space<vmem>>, vector<1x1x32xf32>
    %409 = vector.shape_cast %408 : vector<1x1x32xf32> to vector<1x32xf32>
    %c3_255 = arith.constant 3 : index
    %c0_256 = arith.constant 0 : index
    %c0_257 = arith.constant 0 : index
    %410 = vector.load %arg15[%c3_255, %c0_256, %c0_257] : memref<4x1x32xf32, #tpu.memory_space<vmem>>, vector<1x1x32xf32>
    %411 = vector.shape_cast %410 : vector<1x1x32xf32> to vector<1x32xf32>
    %cst_258 = arith.constant dense<0.000000e+00> : vector<8xf32>
    %412 = vector.multi_reduction <add>, %407, %cst_258 [1] : vector<8x32xf32> to vector<8xf32>
    %413 = vector.shape_cast %412 : vector<8xf32> to vector<8x1xf32>
    %cst_259 = arith.constant 3.200000e+01 : f32
    %414 = vector.broadcast %cst_259 : f32 to vector<8x1xf32>
    %415 = arith.divf %413, %414 : vector<8x1xf32>
    %416 = vector.broadcast %415 : vector<8x1xf32> to vector<8x32xf32>
    %417 = arith.subf %407, %416 : vector<8x32xf32>
    %418 = arith.mulf %417, %417 : vector<8x32xf32>
    %cst_260 = arith.constant dense<0.000000e+00> : vector<8xf32>
    %419 = vector.multi_reduction <add>, %418, %cst_260 [1] : vector<8x32xf32> to vector<8xf32>
    %420 = vector.shape_cast %419 : vector<8xf32> to vector<8x1xf32>
    %cst_261 = arith.constant 3.200000e+01 : f32
    %421 = vector.broadcast %cst_261 : f32 to vector<8x1xf32>
    %422 = arith.divf %420, %421 : vector<8x1xf32>
    %423 = vector.broadcast %415 : vector<8x1xf32> to vector<8x32xf32>
    %424 = arith.subf %407, %423 : vector<8x32xf32>
    %cst_262 = arith.constant 9.99999974E-6 : f32
    %425 = vector.broadcast %cst_262 : f32 to vector<8x1xf32>
    %426 = arith.addf %422, %425 : vector<8x1xf32>
    %427 = math.rsqrt %426 : vector<8x1xf32>
    %428 = vector.broadcast %427 : vector<8x1xf32> to vector<8x32xf32>
    %429 = arith.mulf %424, %428 : vector<8x32xf32>
    %430 = vector.broadcast %409 : vector<1x32xf32> to vector<8x32xf32>
    %431 = arith.mulf %429, %430 : vector<8x32xf32>
    %432 = vector.broadcast %411 : vector<1x32xf32> to vector<8x32xf32>
    %433 = arith.addf %431, %432 : vector<8x32xf32>
    %c3_263 = arith.constant 3 : index
    %c0_264 = arith.constant 0 : index
    %c0_265 = arith.constant 0 : index
    %434 = vector.load %arg16[%c3_263, %c0_264, %c0_265] : memref<4x32x32xf32, #tpu.memory_space<vmem>>, vector<1x32x32xf32>
    %435 = vector.shape_cast %434 : vector<1x32x32xf32> to vector<32x32xf32>
    %cst_266 = arith.constant dense<0.000000e+00> : vector<8x32xf32>
    %436 = tpu.matmul %433, %435, %cst_266 {dimension_numbers = #tpu.dot_dimension_numbers<[1], [0], [0], [1], [0, 0, 1, 1], [], []>} : vector<8x32xf32>, vector<32x32xf32>, vector<8x32xf32> -> vector<8x32xf32>
    %c3_267 = arith.constant 3 : index
    %c0_268 = arith.constant 0 : index
    %c0_269 = arith.constant 0 : index
    %437 = vector.load %arg17[%c3_267, %c0_268, %c0_269] : memref<4x1x32xf32, #tpu.memory_space<vmem>>, vector<1x1x32xf32>
    %438 = vector.shape_cast %437 : vector<1x1x32xf32> to vector<1x32xf32>
    %439 = vector.broadcast %438 : vector<1x32xf32> to vector<8x32xf32>
    %440 = arith.addf %436, %439 : vector<8x32xf32>
    %cst_270 = arith.constant 0.000000e+00 : f32
    %441 = vector.broadcast %cst_270 : f32 to vector<8x32xf32>
    %442 = arith.maximumf %440, %441 : vector<8x32xf32>
    %c3_271 = arith.constant 3 : index
    %c0_272 = arith.constant 0 : index
    %c0_273 = arith.constant 0 : index
    %443 = vector.load %arg18[%c3_271, %c0_272, %c0_273] : memref<4x32x32xf32, #tpu.memory_space<vmem>>, vector<1x32x32xf32>
    %444 = vector.shape_cast %443 : vector<1x32x32xf32> to vector<32x32xf32>
    %cst_274 = arith.constant dense<0.000000e+00> : vector<8x32xf32>
    %445 = tpu.matmul %442, %444, %cst_274 {dimension_numbers = #tpu.dot_dimension_numbers<[1], [0], [0], [1], [0, 0, 1, 1], [], []>} : vector<8x32xf32>, vector<32x32xf32>, vector<8x32xf32> -> vector<8x32xf32>
    %c3_275 = arith.constant 3 : index
    %c0_276 = arith.constant 0 : index
    %c0_277 = arith.constant 0 : index
    %446 = vector.load %arg19[%c3_275, %c0_276, %c0_277] : memref<4x1x32xf32, #tpu.memory_space<vmem>>, vector<1x1x32xf32>
    %447 = vector.shape_cast %446 : vector<1x1x32xf32> to vector<1x32xf32>
    %448 = vector.broadcast %447 : vector<1x32xf32> to vector<8x32xf32>
    %449 = arith.addf %445, %448 : vector<8x32xf32>
    %450 = arith.addf %449, %433 : vector<8x32xf32>
    %c3_278 = arith.constant 3 : index
    %c0_279 = arith.constant 0 : index
    %c0_280 = arith.constant 0 : index
    %451 = vector.load %arg20[%c3_278, %c0_279, %c0_280] : memref<4x1x32xf32, #tpu.memory_space<vmem>>, vector<1x1x32xf32>
    %452 = vector.shape_cast %451 : vector<1x1x32xf32> to vector<1x32xf32>
    %c3_281 = arith.constant 3 : index
    %c0_282 = arith.constant 0 : index
    %c0_283 = arith.constant 0 : index
    %453 = vector.load %arg21[%c3_281, %c0_282, %c0_283] : memref<4x1x32xf32, #tpu.memory_space<vmem>>, vector<1x1x32xf32>
    %454 = vector.shape_cast %453 : vector<1x1x32xf32> to vector<1x32xf32>
    %cst_284 = arith.constant dense<0.000000e+00> : vector<8xf32>
    %455 = vector.multi_reduction <add>, %450, %cst_284 [1] : vector<8x32xf32> to vector<8xf32>
    %456 = vector.shape_cast %455 : vector<8xf32> to vector<8x1xf32>
    %cst_285 = arith.constant 3.200000e+01 : f32
    %457 = vector.broadcast %cst_285 : f32 to vector<8x1xf32>
    %458 = arith.divf %456, %457 : vector<8x1xf32>
    %459 = vector.broadcast %458 : vector<8x1xf32> to vector<8x32xf32>
    %460 = arith.subf %450, %459 : vector<8x32xf32>
    %461 = arith.mulf %460, %460 : vector<8x32xf32>
    %cst_286 = arith.constant dense<0.000000e+00> : vector<8xf32>
    %462 = vector.multi_reduction <add>, %461, %cst_286 [1] : vector<8x32xf32> to vector<8xf32>
    %463 = vector.shape_cast %462 : vector<8xf32> to vector<8x1xf32>
    %cst_287 = arith.constant 3.200000e+01 : f32
    %464 = vector.broadcast %cst_287 : f32 to vector<8x1xf32>
    %465 = arith.divf %463, %464 : vector<8x1xf32>
    %466 = vector.broadcast %458 : vector<8x1xf32> to vector<8x32xf32>
    %467 = arith.subf %450, %466 : vector<8x32xf32>
    %cst_288 = arith.constant 9.99999974E-6 : f32
    %468 = vector.broadcast %cst_288 : f32 to vector<8x1xf32>
    %469 = arith.addf %465, %468 : vector<8x1xf32>
    %470 = math.rsqrt %469 : vector<8x1xf32>
    %471 = vector.broadcast %470 : vector<8x1xf32> to vector<8x32xf32>
    %472 = arith.mulf %467, %471 : vector<8x32xf32>
    %473 = vector.broadcast %452 : vector<1x32xf32> to vector<8x32xf32>
    %474 = arith.mulf %472, %473 : vector<8x32xf32>
    %475 = vector.broadcast %454 : vector<1x32xf32> to vector<8x32xf32>
    %476 = arith.addf %474, %475 : vector<8x32xf32>
    %c0_289 = arith.constant 0 : index
    %c0_290 = arith.constant 0 : index
    %477 = vector.load %arg22[%c0_289, %c0_290] : memref<32x256xf32, #tpu.memory_space<vmem>>, vector<32x256xf32>
    %cst_291 = arith.constant dense<0.000000e+00> : vector<8x256xf32>
    %478 = tpu.matmul %358, %477, %cst_291 {dimension_numbers = #tpu.dot_dimension_numbers<[1], [0], [0], [1], [0, 0, 1, 1], [], []>} : vector<8x32xf32>, vector<32x256xf32>, vector<8x256xf32> -> vector<8x256xf32>
    %c0_292 = arith.constant 0 : index
    %c0_293 = arith.constant 0 : index
    %479 = vector.load %arg23[%c0_292, %c0_293] : memref<32x256xf32, #tpu.memory_space<vmem>>, vector<32x256xf32>
    %cst_294 = arith.constant dense<0.000000e+00> : vector<8x256xf32>
    %480 = tpu.matmul %476, %479, %cst_294 {dimension_numbers = #tpu.dot_dimension_numbers<[1], [0], [0], [1], [0, 0, 1, 1], [], []>} : vector<8x32xf32>, vector<32x256xf32>, vector<8x256xf32> -> vector<8x256xf32>
    %481 = arith.addf %478, %480 : vector<8x256xf32>
    %c0_295 = arith.constant 0 : index
    %c0_296 = arith.constant 0 : index
    %482 = vector.load %arg24[%c0_295, %c0_296] : memref<1x256xf32, #tpu.memory_space<vmem>>, vector<1x256xf32>
    %483 = vector.broadcast %482 : vector<1x256xf32> to vector<8x256xf32>
    %484 = arith.addf %481, %483 : vector<8x256xf32>
    %c0_297 = arith.constant 0 : index
    %c0_298 = arith.constant 0 : index
    %485 = vector.load %arg25[%c0_297, %c0_298] : memref<1x256xf32, #tpu.memory_space<vmem>>, vector<1x256xf32>
    %486 = vector.broadcast %485 : vector<1x256xf32> to vector<8x256xf32>
    %487 = arith.mulf %484, %486 : vector<8x256xf32>
    %c0_299 = arith.constant 0 : index
    %c0_300 = arith.constant 0 : index
    %488 = vector.load %arg26[%c0_299, %c0_300] : memref<1x256xf32, #tpu.memory_space<vmem>>, vector<1x256xf32>
    %489 = vector.broadcast %488 : vector<1x256xf32> to vector<8x256xf32>
    %490 = arith.addf %487, %489 : vector<8x256xf32>
    %cst_301 = arith.constant 5.000000e-01 : f32
    %491 = vector.broadcast %cst_301 : f32 to vector<8x256xf32>
    %492 = arith.mulf %491, %490 : vector<8x256xf32>
    %cst_302 = arith.constant 0.707106769 : f32
    %493 = vector.broadcast %cst_302 : f32 to vector<8x256xf32>
    %494 = arith.mulf %490, %493 : vector<8x256xf32>
    %cst_303 = arith.constant -4.000000e+00 : f32
    %cst_304 = arith.constant 4.000000e+00 : f32
    %495 = vector.broadcast %cst_303 : f32 to vector<8x256xf32>
    %496 = arith.maximumf %495, %494 : vector<8x256xf32>
    %497 = vector.broadcast %cst_304 : f32 to vector<8x256xf32>
    %498 = arith.minimumf %497, %496 : vector<8x256xf32>
    %499 = arith.mulf %498, %498 : vector<8x256xf32>
    %cst_305 = arith.constant 2.29050653E-4 : f32
    %500 = vector.broadcast %cst_305 : f32 to vector<8x256xf32>
    %501 = arith.mulf %500, %499 : vector<8x256xf32>
    %cst_306 = arith.constant 0.00340829091 : f32
    %502 = vector.broadcast %cst_306 : f32 to vector<8x256xf32>
    %503 = arith.addf %501, %502 : vector<8x256xf32>
    %504 = arith.mulf %503, %499 : vector<8x256xf32>
    %cst_307 = arith.constant 0.0509556942 : f32
    %505 = vector.broadcast %cst_307 : f32 to vector<8x256xf32>
    %506 = arith.addf %504, %505 : vector<8x256xf32>
    %507 = arith.mulf %506, %499 : vector<8x256xf32>
    %cst_308 = arith.constant 0.185208321 : f32
    %508 = vector.broadcast %cst_308 : f32 to vector<8x256xf32>
    %509 = arith.addf %507, %508 : vector<8x256xf32>
    %510 = arith.mulf %509, %499 : vector<8x256xf32>
    %cst_309 = arith.constant 1.12837911 : f32
    %511 = vector.broadcast %cst_309 : f32 to vector<8x256xf32>
    %512 = arith.addf %510, %511 : vector<8x256xf32>
    %cst_310 = arith.constant -1.17916031E-7 : f32
    %513 = vector.broadcast %cst_310 : f32 to vector<8x256xf32>
    %514 = arith.mulf %513, %499 : vector<8x256xf32>
    %cst_311 = arith.constant 2.35479656E-5 : f32
    %515 = vector.broadcast %cst_311 : f32 to vector<8x256xf32>
    %516 = arith.addf %514, %515 : vector<8x256xf32>
    %517 = arith.mulf %516, %499 : vector<8x256xf32>
    %cst_312 = arith.constant 0.00101796258 : f32
    %518 = vector.broadcast %cst_312 : f32 to vector<8x256xf32>
    %519 = arith.addf %517, %518 : vector<8x256xf32>
    %520 = arith.mulf %519, %499 : vector<8x256xf32>
    %cst_313 = arith.constant 0.0140704699 : f32
    %521 = vector.broadcast %cst_313 : f32 to vector<8x256xf32>
    %522 = arith.addf %520, %521 : vector<8x256xf32>
    %523 = arith.mulf %522, %499 : vector<8x256xf32>
    %cst_314 = arith.constant 0.110985048 : f32
    %524 = vector.broadcast %cst_314 : f32 to vector<8x256xf32>
    %525 = arith.addf %523, %524 : vector<8x256xf32>
    %526 = arith.mulf %525, %499 : vector<8x256xf32>
    %cst_315 = arith.constant 0.497469246 : f32
    %527 = vector.broadcast %cst_315 : f32 to vector<8x256xf32>
    %528 = arith.addf %526, %527 : vector<8x256xf32>
    %529 = arith.mulf %528, %499 : vector<8x256xf32>
    %cst_316 = arith.constant 1.000000e+00 : f32
    %530 = vector.broadcast %cst_316 : f32 to vector<8x256xf32>
    %531 = arith.addf %529, %530 : vector<8x256xf32>
    %532 = arith.mulf %498, %512 : vector<8x256xf32>
    %533 = arith.divf %532, %531 : vector<8x256xf32>
    %cst_317 = arith.constant 1.000000e+00 : f32
    %534 = vector.broadcast %cst_317 : f32 to vector<8x256xf32>
    %535 = arith.addf %534, %533 : vector<8x256xf32>
    %536 = arith.mulf %492, %535 : vector<8x256xf32>
    %c0_318 = arith.constant 0 : index
    %c0_319 = arith.constant 0 : index
    %537 = vector.load %arg27[%c0_318, %c0_319] : memref<1x256xf32, #tpu.memory_space<vmem>>, vector<1x256xf32>
    %538 = vector.broadcast %537 : vector<1x256xf32> to vector<8x256xf32>
    %539 = arith.mulf %536, %538 : vector<8x256xf32>
    %cst_320 = arith.constant dense<0.000000e+00> : vector<8xf32>
    %540 = vector.multi_reduction <add>, %539, %cst_320 [1] : vector<8x256xf32> to vector<8xf32>
    %541 = vector.shape_cast %540 : vector<8xf32> to vector<8x1xf32>
    %c0_321 = arith.constant 0 : index
    %c0_322 = arith.constant 0 : index
    %542 = vector.load %arg28[%c0_321, %c0_322] : memref<1x1xf32, #tpu.memory_space<vmem>>, vector<1x1xf32>
    %543 = vector.broadcast %542 : vector<1x1xf32> to vector<8x1xf32>
    %544 = arith.addf %541, %543 : vector<8x1xf32>
    %545 = math.tanh %544 : vector<8x1xf32>
    %c0_323 = arith.constant 0 : index
    %c0_324 = arith.constant 0 : index
    %546 = vector.load %arg29[%c0_323, %c0_324] : memref<8x1xf32, #tpu.memory_space<vmem>>, vector<8x1xf32>
    tpu.vector_store %arg29[%c0_323, %c0_324], %545 {strides = array<i32>} : memref<8x1xf32, #tpu.memory_space<vmem>>, vector<8x1xf32>,
    return
  }
  func.func @transform_0(%arg0: i32) -> (i32, i32) {
    %c0_i32 = arith.constant 0 : i32
    %c0_i32_0 = arith.constant 0 : i32
    return %arg0, %c0_i32 : i32, i32
  }
  func.func @transform_1(%arg0: i32) -> (i32, i32) {
    %c0_i32 = arith.constant 0 : i32
    %c0_i32_0 = arith.constant 0 : i32
    return %arg0, %c0_i32 : i32, i32
  }
  func.func @transform_2(%arg0: i32) -> (i32, i32) {
    %c0_i32 = arith.constant 0 : i32
    %c0_i32_0 = arith.constant 0 : i32
    %c0_i32_1 = arith.constant 0 : i32
    return %c0_i32, %c0_i32_0 : i32, i32
  }
  func.func @transform_3(%arg0: i32) -> (i32, i32) {
    %c0_i32 = arith.constant 0 : i32
    %c0_i32_0 = arith.constant 0 : i32
    %c0_i32_1 = arith.constant 0 : i32
    return %c0_i32, %c0_i32_0 : i32, i32
  }
  func.func @transform_4(%arg0: i32) -> (i32, i32) {
    %c0_i32 = arith.constant 0 : i32
    %c0_i32_0 = arith.constant 0 : i32
    %c0_i32_1 = arith.constant 0 : i32
    return %c0_i32, %c0_i32_0 : i32, i32
  }
  func.func @transform_5(%arg0: i32) -> (i32, i32, i32) {
    %c0_i32 = arith.constant 0 : i32
    %c0_i32_0 = arith.constant 0 : i32
    %c0_i32_1 = arith.constant 0 : i32
    %c0_i32_2 = arith.constant 0 : i32
    return %c0_i32, %c0_i32_0, %c0_i32_1 : i32, i32, i32
  }
  func.func @transform_6(%arg0: i32) -> (i32, i32, i32) {
    %c0_i32 = arith.constant 0 : i32
    %c0_i32_0 = arith.constant 0 : i32
    %c0_i32_1 = arith.constant 0 : i32
    %c0_i32_2 = arith.constant 0 : i32
    return %c0_i32, %c0_i32_0, %c0_i32_1 : i32, i32, i32
  }
  func.func @transform_7(%arg0: i32) -> (i32, i32, i32) {
    %c0_i32 = arith.constant 0 : i32
    %c0_i32_0 = arith.constant 0 : i32
    %c0_i32_1 = arith.constant 0 : i32
    %c0_i32_2 = arith.constant 0 : i32
    return %c0_i32, %c0_i32_0, %c0_i32_1 : i32, i32, i32
  }
  func.func @transform_8(%arg0: i32) -> (i32, i32, i32) {
    %c0_i32 = arith.constant 0 : i32
    %c0_i32_0 = arith.constant 0 : i32
    %c0_i32_1 = arith.constant 0 : i32
    %c0_i32_2 = arith.constant 0 : i32
    return %c0_i32, %c0_i32_0, %c0_i32_1 : i32, i32, i32
  }
  func.func @transform_9(%arg0: i32) -> (i32, i32, i32) {
    %c0_i32 = arith.constant 0 : i32
    %c0_i32_0 = arith.constant 0 : i32
    %c0_i32_1 = arith.constant 0 : i32
    %c0_i32_2 = arith.constant 0 : i32
    return %c0_i32, %c0_i32_0, %c0_i32_1 : i32, i32, i32
  }
  func.func @transform_10(%arg0: i32) -> (i32, i32, i32) {
    %c0_i32 = arith.constant 0 : i32
    %c0_i32_0 = arith.constant 0 : i32
    %c0_i32_1 = arith.constant 0 : i32
    %c0_i32_2 = arith.constant 0 : i32
    return %c0_i32, %c0_i32_0, %c0_i32_1 : i32, i32, i32
  }
  func.func @transform_11(%arg0: i32) -> (i32, i32, i32) {
    %c0_i32 = arith.constant 0 : i32
    %c0_i32_0 = arith.constant 0 : i32
    %c0_i32_1 = arith.constant 0 : i32
    %c0_i32_2 = arith.constant 0 : i32
    return %c0_i32, %c0_i32_0, %c0_i32_1 : i32, i32, i32
  }
  func.func @transform_12(%arg0: i32) -> (i32, i32, i32) {
    %c0_i32 = arith.constant 0 : i32
    %c0_i32_0 = arith.constant 0 : i32
    %c0_i32_1 = arith.constant 0 : i32
    %c0_i32_2 = arith.constant 0 : i32
    return %c0_i32, %c0_i32_0, %c0_i32_1 : i32, i32, i32
  }
  func.func @transform_13(%arg0: i32) -> (i32, i32, i32) {
    %c0_i32 = arith.constant 0 : i32
    %c0_i32_0 = arith.constant 0 : i32
    %c0_i32_1 = arith.constant 0 : i32
    %c0_i32_2 = arith.constant 0 : i32
    return %c0_i32, %c0_i32_0, %c0_i32_1 : i32, i32, i32
  }
  func.func @transform_14(%arg0: i32) -> (i32, i32, i32) {
    %c0_i32 = arith.constant 0 : i32
    %c0_i32_0 = arith.constant 0 : i32
    %c0_i32_1 = arith.constant 0 : i32
    %c0_i32_2 = arith.constant 0 : i32
    return %c0_i32, %c0_i32_0, %c0_i32_1 : i32, i32, i32
  }
  func.func @transform_15(%arg0: i32) -> (i32, i32, i32) {
    %c0_i32 = arith.constant 0 : i32
    %c0_i32_0 = arith.constant 0 : i32
    %c0_i32_1 = arith.constant 0 : i32
    %c0_i32_2 = arith.constant 0 : i32
    return %c0_i32, %c0_i32_0, %c0_i32_1 : i32, i32, i32
  }
  func.func @transform_16(%arg0: i32) -> (i32, i32, i32) {
    %c0_i32 = arith.constant 0 : i32
    %c0_i32_0 = arith.constant 0 : i32
    %c0_i32_1 = arith.constant 0 : i32
    %c0_i32_2 = arith.constant 0 : i32
    return %c0_i32, %c0_i32_0, %c0_i32_1 : i32, i32, i32
  }
  func.func @transform_17(%arg0: i32) -> (i32, i32, i32) {
    %c0_i32 = arith.constant 0 : i32
    %c0_i32_0 = arith.constant 0 : i32
    %c0_i32_1 = arith.constant 0 : i32
    %c0_i32_2 = arith.constant 0 : i32
    return %c0_i32, %c0_i32_0, %c0_i32_1 : i32, i32, i32
  }
  func.func @transform_18(%arg0: i32) -> (i32, i32, i32) {
    %c0_i32 = arith.constant 0 : i32
    %c0_i32_0 = arith.constant 0 : i32
    %c0_i32_1 = arith.constant 0 : i32
    %c0_i32_2 = arith.constant 0 : i32
    return %c0_i32, %c0_i32_0, %c0_i32_1 : i32, i32, i32
  }
  func.func @transform_19(%arg0: i32) -> (i32, i32, i32) {
    %c0_i32 = arith.constant 0 : i32
    %c0_i32_0 = arith.constant 0 : i32
    %c0_i32_1 = arith.constant 0 : i32
    %c0_i32_2 = arith.constant 0 : i32
    return %c0_i32, %c0_i32_0, %c0_i32_1 : i32, i32, i32
  }
  func.func @transform_20(%arg0: i32) -> (i32, i32, i32) {
    %c0_i32 = arith.constant 0 : i32
    %c0_i32_0 = arith.constant 0 : i32
    %c0_i32_1 = arith.constant 0 : i32
    %c0_i32_2 = arith.constant 0 : i32
    return %c0_i32, %c0_i32_0, %c0_i32_1 : i32, i32, i32
  }
  func.func @transform_21(%arg0: i32) -> (i32, i32) {
    %c0_i32 = arith.constant 0 : i32
    %c0_i32_0 = arith.constant 0 : i32
    %c0_i32_1 = arith.constant 0 : i32
    return %c0_i32, %c0_i32_0 : i32, i32
  }
  func.func @transform_22(%arg0: i32) -> (i32, i32) {
    %c0_i32 = arith.constant 0 : i32
    %c0_i32_0 = arith.constant 0 : i32
    %c0_i32_1 = arith.constant 0 : i32
    return %c0_i32, %c0_i32_0 : i32, i32
  }
  func.func @transform_23(%arg0: i32) -> (i32, i32) {
    %c0_i32 = arith.constant 0 : i32
    %c0_i32_0 = arith.constant 0 : i32
    %c0_i32_1 = arith.constant 0 : i32
    return %c0_i32, %c0_i32_0 : i32, i32
  }
  func.func @transform_24(%arg0: i32) -> (i32, i32) {
    %c0_i32 = arith.constant 0 : i32
    %c0_i32_0 = arith.constant 0 : i32
    %c0_i32_1 = arith.constant 0 : i32
    return %c0_i32, %c0_i32_0 : i32, i32
  }
  func.func @transform_25(%arg0: i32) -> (i32, i32) {
    %c0_i32 = arith.constant 0 : i32
    %c0_i32_0 = arith.constant 0 : i32
    %c0_i32_1 = arith.constant 0 : i32
    return %c0_i32, %c0_i32_0 : i32, i32
  }
  func.func @transform_26(%arg0: i32) -> (i32, i32) {
    %c0_i32 = arith.constant 0 : i32
    %c0_i32_0 = arith.constant 0 : i32
    %c0_i32_1 = arith.constant 0 : i32
    return %c0_i32, %c0_i32_0 : i32, i32
  }
  func.func @transform_27(%arg0: i32) -> (i32, i32) {
    %c0_i32 = arith.constant 0 : i32
    %c0_i32_0 = arith.constant 0 : i32
    %c0_i32_1 = arith.constant 0 : i32
    return %c0_i32, %c0_i32_0 : i32, i32
  }
  func.func @transform_28(%arg0: i32) -> (i32, i32) {
    %c0_i32 = arith.constant 0 : i32
    %c0_i32_0 = arith.constant 0 : i32
    return %arg0, %c0_i32 : i32, i32
  }
}

</mosaic_0001>

<bundles_post_ra>
// kernel: tpu_custom_call.1
= control target key start
LH: loop header
LB: loop body
LE: loop exit
PB: predicated region body
PF: predicated region fallthrough
CT: control target
= control target key end

     0   :  { %s8670_s0 = inlined_call_operand.hbm [shape: f32[16,32], index: 0, kind: input, shape index: {}]   ;;  %s8671_s1 = inlined_call_operand.hbm [shape: f32[16,32], index: 1, kind: input, shape index: {}]   ;;  %s8672_s2 = inlined_call_operand.hbm [shape: f32[8,32], index: 2, kind: input, shape index: {}]   ;;  %s8673_s3 = inlined_call_operand.vmem [shape: f32[64,32], index: 3, kind: input, shape index: {}]   ;;  %s8674_s4 = inlined_call_operand.hbm [shape: f32[8,64], index: 4, kind: input, shape index: {}]   ;;  %s8675_s5 = inlined_call_operand.hbm [shape: f32[4,32,32], index: 5, kind: input, shape index: {}]   ;;  %s8676_s6 = inlined_call_operand.vmem [shape: f32[4,1,32], index: 6, kind: input, shape index: {}]   ;;  %s8677_s7 = inlined_call_operand.hbm [shape: f32[4,32,32], index: 7, kind: input, shape index: {}]   ;;  %s8678_s8 = inlined_call_operand.hbm [shape: f32[4,1,32], index: 8, kind: input, shape index: {}]   ;;  %s8679_s9 = inlined_call_operand.vmem [shape: f32[4,32,32], index: 9, kind: input, shape index: {}]   ;;  %s8680_s10 = inlined_call_operand.vmem [shape: f32[4,1,32], index: 10, kind: input, shape index: {}]   ;;  %s8681_s11 = inlined_call_operand.hbm [shape: f32[4,32,32], index: 11, kind: input, shape index: {}]   ;;  %s8682_s12 = inlined_call_operand.vmem [shape: f32[4,1,32], index: 12, kind: input, shape index: {}]   ;;  %s8683_s13 = inlined_call_operand.vmem [shape: f32[4,1,32], index: 13, kind: input, shape index: {}]   ;;  %s8684_s14 = inlined_call_operand.vmem [shape: f32[4,1,32], index: 14, kind: input, shape index: {}]   ;;  %s8685_s15 = inlined_call_operand.hbm [shape: f32[4,32,32], index: 15, kind: input, shape index: {}]   ;;  %s8686_s16 = inlined_call_operand.vmem [shape: f32[4,1,32], index: 16, kind: input, shape index: {}]   ;;  %s8687_s17 = inlined_call_operand.hbm [shape: f32[4,32,32], index: 17, kind: input, shape index: {}]   ;;  %s8688_s18 = inlined_call_operand.vmem [shape: f32[4,1,32], index: 18, kind: input, shape index: {}]   ;;  %s8689_s19 = inlined_call_operand.vmem [shape: f32[4,1,32], index: 19, kind: input, shape index: {}]   ;;  %s8690_s20 = inlined_call_operand.vmem [shape: f32[4,1,32], index: 20, kind: input, shape index: {}]   ;;  %s8691_s21 = inlined_call_operand.hbm [shape: f32[32,256], index: 21, kind: input, shape index: {}]   ;;  %s8692_s22 = inlined_call_operand.hbm [shape: f32[32,256], index: 22, kind: input, shape index: {}]   ;;  %s8693_s23 = inlined_call_operand.vmem [shape: f32[1,256], index: 23, kind: input, shape index: {}]   ;;  %s8694_s24 = inlined_call_operand.vmem [shape: f32[1,256], index: 24, kind: input, shape index: {}]   ;;  %s8695_s25 = inlined_call_operand.vmem [shape: f32[1,256], index: 25, kind: input, shape index: {}]   ;;  %s8696_s26 = inlined_call_operand.vmem [shape: f32[1,256], index: 26, kind: input, shape index: {}]   ;;  %s8697_s27 = inlined_call_operand.<no memory space> [shape: f32[1,1], index: 27, kind: input, shape index: {}]   ;;  %s8698_s28 = inlined_call_operand.vmem [shape: f32[16,1], index: 28, kind: output, shape index: {}]  }
   0x1   :  { %8725 = sst [smem:[#allocation30_spill]] %s8670_s0  ;;  %v33_v0 = vstv %s8697_s27 }
   0x2   :  { %8726 = sst [smem:[#allocation31_spill]] %s8671_s1  ;;  %34 = vst [vmem:[#allocation2] sm:$0x1] %v33_v0 }
   0x3   :  { %8727 = sst [smem:[#allocation32_spill]] %s8672_s2 }
   0x4   :  { %8728 = sst [smem:[#allocation33_spill]] %s8673_s3 }
   0x5   :  { %8729 = sst [smem:[#allocation34_spill]] %s8674_s4 }
   0x6   :  { %8730 = sst [smem:[#allocation35_spill]] %s8675_s5 }
   0x7   :  { %8731 = sst [smem:[#allocation36_spill]] %s8676_s6 }
   0x8   :  { %8732 = sst [smem:[#allocation37_spill]] %s8677_s7 }
   0x9   :  { %8733 = sst [smem:[#allocation38_spill]] %s8678_s8 }
   0xa   :  { %8734 = sst [smem:[#allocation39_spill]] %s8679_s9 }
   0xb   :  { %8735 = sst [smem:[#allocation40_spill]] %s8680_s10 }
   0xc   :  { %8736 = sst [smem:[#allocation41_spill]] %s8681_s11 }
   0xd   :  { %8737 = sst [smem:[#allocation42_spill]] %s8682_s12 }
   0xe   :  { %8738 = sst [smem:[#allocation43_spill]] %s8684_s14 }
   0xf   :  { %8739 = sst [smem:[#allocation44_spill]] %s8685_s15 }
  0x10   :  { %8740 = sst [smem:[#allocation45_spill]] %s8686_s16 }
  0x11   :  { %8741 = sst [smem:[#allocation46_spill]] %s8687_s17 }
  0x12   :  { %8742 = sst [smem:[#allocation47_spill]] %s8688_s18 }
  0x13   :  { %8743 = sst [smem:[#allocation48_spill]] %s8689_s19 }
  0x14   :  { %8744 = sst [smem:[#allocation49_spill]] %s8690_s20 }
  0x15   :  { %8745 = sst [smem:[#allocation50_spill]] %s8691_s21 }
  0x16   :  { %8746 = sst [smem:[#allocation51_spill]] %s8693_s23 }
  0x17   :  { %8747 = sst [smem:[#allocation52_spill]] %s8694_s24 }
  0x18   :  { %8748 = sst [smem:[#allocation53_spill]] %s8695_s25 }
  0x19   :  { %8749 = sst [smem:[#allocation54_spill]] %s8696_s26 }
  0x1a   :  { %8750 = sst [smem:[#allocation55_spill]] %s8698_s28 }
  0x1b   :  { %35 = vsyncpa [#allocation4], 0 }
  0x1c   :  { %37 = vsyncpa [#allocation4 + $0x1], 0 }
  0x1d   :  { %38 = vsyncpa [#allocation6], 0 }
  0x1e   :  { %40 = vsyncpa [#allocation6 + $0x1], 0 }
  0x1f   :  { %41 = vsyncpa [#allocation9], 0 }
  0x20   :  { %42 = vsyncpa [#allocation12], 0 }
  0x21   :  { %43 = vsyncpa [#allocation15], 0 }
  0x22   :  { %44 = vsyncpa [#allocation18], 0 }
  0x23   :  { %45 = vsyncpa [#allocation21], 0  ;;  %s7590_s9 = smov 0   ;;  %s7592_s30 = smov 0  }
  0x24   :  { %s7594_s3 = smov 0   ;;  %s7596_s6 = smov 0  }
  0x25 LB: > { %s7422_s27 = smov [#allocation7]   ;;  %s7611_s0 = sadd.s32 4294967295, %s7420_s6   ;;  %s7420_s6 = sphi %s7596_s6, %s8802_s6   ;;  %s7416_s3 = sphi %s7594_s3, %s8801_s3   ;;  %s7412_s30 = sphi %s7592_s30, %s8800_s30   ;;  %s7408_s9 = sphi %s7590_s9, %s8799_s9  }
  0x26   : > { %s693_s10 = sshll.u32 %s7422_s27, 4  ;;  %p5602_p0 = scmp.ge.s32.totalorder %s7420_s6, 1  ;;  %s694_s10 = int_to_ptr.vmem [resolvable:$true] %s693_s10 }
  0x27   : > { %p8712_p1 = scmp.eq.s32.totalorder %s7611_s0, 0  ;;  %p680_p2 = scmp.lt.s32.totalorder %s7420_s6, 3 }
  0x28   : > { %s7423_s29 = smov [#allocation8]   ;;  %s7424_s12 = smov [#allocation11]  }
  0x29   : > { %p7616_p3 = pnand %p5602_p0, %p680_p2  ;;  %s707_s2 = sshll.u32 %s7423_s29, 4  ;;  %s7622_s2 = int_to_ptr.vmem [resolvable:$true] %s707_s2 }
  0x2a   : > { %s733_s1 = sshll.u32 %s7424_s12, 4  ;;  %s8753_s5 = sld [smem:[#allocation32_spill]]  ;;  %s7630_s1 = int_to_ptr.vmem [resolvable:$true] %s733_s1 }
  0x2b   : > { %s8751_s11 = scalar_select %p7616_p3, 1, 0 }
  0x2c   : > { %p6748_p4 = pneg %p7616_p3 }
  0x2e   : > { %p7626_p5 = pnand %p6748_p4, %p8712_p1 }
  0x30   : > { %s7018_s27 = scalar_lea.hbm %s8753_s5, 128  ;;  %p7640_p7 = pneg %p7626_p5 }
  0x31   : > { %p7019_p6 = scmp.ne.s32.totalorder %s8753_s5, %s7018_s27  ;;  %p7025_p10 = scmp.lt.u32.totalorder %s7018_s27, %s8753_s5 }
  0x33   : > { %p7021_p8 = pnand %p7640_p7, %p7019_p6 }
  0x35   : > { %p7022_p9 = pneg %p7021_p8 }
  0x37   : > { %p7027_p11 = pnand %p7025_p10, %p7022_p9 }
  0x39   : > { %7030 = shalt.err (!%p7027_p11)
}
  0x3a   : > { %s7031_s4 = scalar_lea.vmem %s694_s10, 128  ;;  %p7039_p2 = scmp.lt.s32.totalorder %s694_s10, %s694_s10 }
  0x3b   : > { %p7032_p12 = scmp.ne.s32.totalorder %s694_s10, %s7031_s4  ;;  %p7040_p4 = scmp.lt.s32.totalorder %s7031_s4, %s7031_s4 }
  0x3d   : > { %p7034_p13 = pnand %p7032_p12, %p7640_p7  ;;  %p7041_p1 = por %p7040_p4, %p7039_p2 }
  0x3f   : > { %p7035_p0 = pneg %p7034_p13 }
  0x41   : > { %p7042_p3 = pnand %p7041_p1, %p7035_p0 }
  0x43   : > { %7045 = shalt.err (!%p7042_p3)
}
  0x44   : > { %6751 = dma.hbm_to_vmem [thread:$0]  (!%p7626_p5), %s8753_s5, 128, %s694_s10, [#allocation6]  }
  0x45   : > { %s8755_s27 = sld [smem:[#allocation34_spill]] }
  0x4b   : > { %s7046_s12 = scalar_lea.hbm %s8755_s27, 128 }
  0x4c   : > { %p7047_p6 = scmp.ne.s32.totalorder %s8755_s27, %s7046_s12  ;;  %p7053_p1 = scmp.lt.u32.totalorder %s7046_s12, %s8755_s27 }
  0x4e   : > { %p7049_p8 = pnand %p7047_p6, %p7640_p7 }
  0x50   : > { %p7050_p9 = pneg %p7049_p8 }
  0x52   : > { %p7055_p3 = pnand %p7053_p1, %p7050_p9 }
  0x54   : > { %7058 = shalt.err (!%p7055_p3)
}
  0x55   : > { %s7059_s10 = scalar_lea.vmem %s7622_s2, 128  ;;  %p7067_p13 = scmp.lt.s32.totalorder %s7622_s2, %s7622_s2 }
  0x56   : > { %p7060_p10 = scmp.ne.s32.totalorder %s7622_s2, %s7059_s10  ;;  %p7068_p0 = scmp.lt.s32.totalorder %s7059_s10, %s7059_s10 }
  0x58   : > { %p7062_p11 = pnand %p7060_p10, %p7640_p7  ;;  %p7069_p2 = por %p7068_p0, %p7067_p13 }
  0x5a   : > { %p7063_p12 = pneg %p7062_p11 }
  0x5c   : > { %p7070_p4 = pnand %p7069_p2, %p7063_p12 }
  0x5e   : > { %7073 = shalt.err (!%p7070_p4)
}
  0x5f   : > { %6754 = dma.hbm_to_vmem [thread:$0]  (!%p7626_p5), %s8755_s27, 128, %s7622_s2, [#allocation9]  }
  0x60   : > { %s8756_s28 = sld [smem:[#allocation37_spill]] }
  0x66   : > { %s7074_s25 = scalar_lea.hbm %s8756_s28, 2048 }
  0x67   : > { %p7075_p6 = scmp.ne.s32.totalorder %s8756_s28, %s7074_s25  ;;  %p7081_p1 = scmp.lt.u32.totalorder %s7074_s25, %s8756_s28 }
  0x69   : > { %p7077_p8 = pnand %p7075_p6, %p7640_p7 }
  0x6b   : > { %p7078_p9 = pneg %p7077_p8 }
  0x6d   : > { %p7083_p3 = pnand %p7081_p1, %p7078_p9 }
  0x6f   : > { %7086 = shalt.err (!%p7083_p3)
}
  0x70   : > { %s7087_s2 = scalar_lea.vmem %s7630_s1, 2048  ;;  %p7095_p13 = scmp.lt.s32.totalorder %s7630_s1, %s7630_s1 }
  0x71   : > { %p7088_p10 = scmp.ne.s32.totalorder %s7630_s1, %s7087_s2  ;;  %p7096_p0 = scmp.lt.s32.totalorder %s7087_s2, %s7087_s2 }
  0x73   : > { %p7090_p11 = pnand %p7088_p10, %p7640_p7  ;;  %p7097_p2 = por %p7096_p0, %p7095_p13 }
  0x75   : > { %p7091_p12 = pneg %p7090_p11 }
  0x77   : > { %p7098_p4 = pnand %p7097_p2, %p7091_p12 }
  0x79   : > { %7101 = shalt.err (!%p7098_p4)
}
  0x7a   : > { %s8721_s20 = smov 128   ;;  %s8722_s23 = smov 8  }
  0x7b   : > { %6760 = dma.hbm_to_vmem [thread:$0]  (!%p7626_p5), %s8756_s28, 2048, %s7630_s1, [#allocation12], %s8721_s20, %s8721_s20, %s8722_s23  }
  0x7c   : > { %s7427_s25 = smov [#allocation14]   ;;  %s7428_s12 = smov [#allocation17]  }
  0x7d   : > { %s765_s8 = sshll.u32 %s7427_s25, 4  ;;  %s803_s4 = sshll.u32 %s7428_s12, 4  ;;  %s766_s8 = int_to_ptr.vmem [resolvable:$true] %s765_s8  ;;  %s804_s4 = int_to_ptr.vmem [resolvable:$true] %s803_s4 }
  0x7e   : > { %s8757_s5 = sld [smem:[#allocation41_spill]] }
  0x84   : > { %s7102_s27 = scalar_lea.hbm %s8757_s5, 2048 }
  0x85   : > { %p7103_p6 = scmp.ne.s32.totalorder %s8757_s5, %s7102_s27  ;;  %p7109_p1 = scmp.lt.u32.totalorder %s7102_s27, %s8757_s5 }
  0x87   : > { %p7105_p8 = pnand %p7103_p6, %p7640_p7 }
  0x89   : > { %p7106_p9 = pneg %p7105_p8 }
  0x8b   : > { %p7111_p3 = pnand %p7109_p1, %p7106_p9 }
  0x8d   : > { %7114 = shalt.err (!%p7111_p3)
}
  0x8e   : > { %s7115_s1 = scalar_lea.vmem %s766_s8, 2048  ;;  %p7123_p13 = scmp.lt.s32.totalorder %s766_s8, %s766_s8 }
  0x8f   : > { %p7116_p10 = scmp.ne.s32.totalorder %s766_s8, %s7115_s1  ;;  %p7124_p0 = scmp.lt.s32.totalorder %s7115_s1, %s7115_s1 }
  0x91   : > { %p7118_p11 = pnand %p7116_p10, %p7640_p7  ;;  %p7125_p2 = por %p7124_p0, %p7123_p13 }
  0x93   : > { %p7119_p12 = pneg %p7118_p11 }
  0x95   : > { %p7126_p4 = pnand %p7125_p2, %p7119_p12 }
  0x97   : > { %7129 = shalt.err (!%p7126_p4)
}
  0x98   : > { %6766 = dma.hbm_to_vmem [thread:$0]  (!%p7626_p5), %s8757_s5, 2048, %s766_s8, [#allocation15], %s8721_s20, %s8721_s20, %s8722_s23  }
  0x99   : > { %s8758_s17 = sld [smem:[#allocation46_spill]] }
  0x9f   : > { %s7130_s27 = scalar_lea.hbm %s8758_s17, 2048 }
  0xa0   : > { %p7131_p6 = scmp.ne.s32.totalorder %s8758_s17, %s7130_s27  ;;  %p7137_p1 = scmp.lt.u32.totalorder %s7130_s27, %s8758_s17 }
  0xa2   : > { %p7133_p8 = pnand %p7131_p6, %p7640_p7 }
  0xa4   : > { %p7134_p9 = pneg %p7133_p8 }
  0xa6   : > { %p7139_p3 = pnand %p7137_p1, %p7134_p9 }
  0xa8   : > { %7142 = shalt.err (!%p7139_p3)
}
  0xa9   : > { %s7143_s10 = scalar_lea.vmem %s804_s4, 2048  ;;  %p7151_p13 = scmp.lt.s32.totalorder %s804_s4, %s804_s4 }
  0xaa   : > { %p7144_p10 = scmp.ne.s32.totalorder %s804_s4, %s7143_s10  ;;  %p7152_p0 = scmp.lt.s32.totalorder %s7143_s10, %s7143_s10 }
  0xac   : > { %p7146_p11 = pnand %p7144_p10, %p7640_p7  ;;  %p7153_p2 = por %p7152_p0, %p7151_p13 }
  0xae   : > { %p7147_p12 = pneg %p7146_p11 }
  0xb0   : > { %p7154_p4 = pnand %p7153_p2, %p7147_p12 }
  0xb2   : > { %7157 = shalt.err (!%p7154_p4)
}
  0xb3   : > { %6772 = dma.hbm_to_vmem [thread:$0]  (!%p7626_p5), %s8758_s17, 2048, %s804_s4, [#allocation18], %s8721_s20, %s8721_s20, %s8722_s23  }
  0xb4   : > { %s7429_s1 = smov [#allocation10]   ;;  %s7430_s16 = smov [#allocation13]  }
  0xb5   : > { %s717_s14 = sshll.u32 %s7429_s1, 4  ;;  %s746_s18 = sshll.u32 %s7430_s16, 4  ;;  %s718_s14 = int_to_ptr.vmem [resolvable:$true] %s717_s14  ;;  %s747_s18 = int_to_ptr.vmem [resolvable:$true] %s746_s18 }
  0xb6   : > { %s8759_s24 = sld [smem:[#allocation35_spill]] }
  0xbc   : > { %s7158_s26 = scalar_lea.hbm %s8759_s24, 2048 }
  0xbd   : > { %p7159_p6 = scmp.ne.s32.totalorder %s8759_s24, %s7158_s26  ;;  %p7165_p1 = scmp.lt.u32.totalorder %s7158_s26, %s8759_s24 }
  0xbf   : > { %p7161_p8 = pnand %p7159_p6, %p7640_p7 }
  0xc1   : > { %p7162_p9 = pneg %p7161_p8 }
  0xc3   : > { %p7167_p3 = pnand %p7165_p1, %p7162_p9 }
  0xc5   : > { %7170 = shalt.err (!%p7167_p3)
}
  0xc6   : > { %s7171_s4 = scalar_lea.vmem %s718_s14, 2048  ;;  %p7179_p13 = scmp.lt.s32.totalorder %s718_s14, %s718_s14 }
  0xc7   : > { %p7172_p10 = scmp.ne.s32.totalorder %s718_s14, %s7171_s4  ;;  %p7180_p0 = scmp.lt.s32.totalorder %s7171_s4, %s7171_s4 }
  0xc9   : > { %p7174_p11 = pnand %p7172_p10, %p7640_p7  ;;  %p7181_p2 = por %p7180_p0, %p7179_p13 }
  0xcb   : > { %p7175_p12 = pneg %p7174_p11 }
  0xcd   : > { %p7182_p4 = pnand %p7181_p2, %p7175_p12 }
  0xcf   : > { %7185 = shalt.err (!%p7182_p4)
}
  0xd0   : > { %6757 = dma.hbm_to_vmem [thread:$0]  (!%p7626_p5), %s8759_s24, 2048, %s718_s14, [#allocation9], %s8721_s20, %s8721_s20, %s8722_s23  }
  0xd1   : > { %s8760_s27 = sld [smem:[#allocation38_spill]] }
  0xd7   : > { %s7186_s26 = scalar_lea.hbm %s8760_s27, 64 }
  0xd8   : > { %p7187_p6 = scmp.ne.s32.totalorder %s8760_s27, %s7186_s26  ;;  %p7193_p1 = scmp.lt.u32.totalorder %s7186_s26, %s8760_s27 }
  0xda   : > { %p7189_p8 = pnand %p7187_p6, %p7640_p7 }
  0xdc   : > { %p7190_p9 = pneg %p7189_p8 }
  0xde   : > { %p7195_p3 = pnand %p7193_p1, %p7190_p9 }
  0xe0   : > { %7198 = shalt.err (!%p7195_p3)
}
  0xe1   : > { %s7199_s4 = scalar_lea.vmem %s747_s18, 64  ;;  %p7207_p13 = scmp.lt.s32.totalorder %s747_s18, %s747_s18 }
  0xe2   : > { %p7200_p10 = scmp.ne.s32.totalorder %s747_s18, %s7199_s4  ;;  %p7208_p0 = scmp.lt.s32.totalorder %s7199_s4, %s7199_s4 }
  0xe4   : > { %p7202_p11 = pnand %p7200_p10, %p7640_p7  ;;  %p7209_p2 = por %p7208_p0, %p7207_p13 }
  0xe6   : > { %p7203_p12 = pneg %p7202_p11 }
  0xe8   : > { %p7210_p4 = pnand %p7209_p2, %p7203_p12 }
  0xea   : > { %7213 = shalt.err (!%p7210_p4)
}
  0xeb   : > { %s7431_s14 = smov 16   ;;  %s7432_s2 = smov 1  }
  0xec   : > { %6763 = dma.hbm_to_vmem [thread:$0]  (!%p7626_p5), %s8760_s27, 64, %s747_s18, [#allocation12], %s7431_s14, %s7431_s14, %s7432_s2  }
  0xed   : > { %s7433_s19 = smov [#allocation16]   ;;  %s7434_s25 = smov [#allocation19]  }
  0xee   : > { %s787_s26 = sshll.u32 %s7433_s19, 4  ;;  %s825_s12 = sshll.u32 %s7434_s25, 4  ;;  %s788_s26 = int_to_ptr.vmem [resolvable:$true] %s787_s26  ;;  %s826_s12 = int_to_ptr.vmem [resolvable:$true] %s825_s12 }
  0xef   : > { %s8761_s15 = sld [smem:[#allocation44_spill]] }
  0xf5   : > { %s7214_s4 = scalar_lea.hbm %s8761_s15, 2048 }
  0xf6   : > { %p7215_p6 = scmp.ne.s32.totalorder %s8761_s15, %s7214_s4  ;;  %p7221_p1 = scmp.lt.u32.totalorder %s7214_s4, %s8761_s15 }
  0xf8   : > { %p7217_p8 = pnand %p7215_p6, %p7640_p7 }
  0xfa   : > { %p7218_p9 = pneg %p7217_p8 }
  0xfc   : > { %p7223_p3 = pnand %p7221_p1, %p7218_p9 }
  0xfe   : > { %7226 = shalt.err (!%p7223_p3)
}
  0xff   : > { %s7227_s18 = scalar_lea.vmem %s788_s26, 2048  ;;  %p7235_p13 = scmp.lt.s32.totalorder %s788_s26, %s788_s26 }
 0x100   : > { %p7228_p10 = scmp.ne.s32.totalorder %s788_s26, %s7227_s18  ;;  %p7236_p0 = scmp.lt.s32.totalorder %s7227_s18, %s7227_s18 }
 0x102   : > { %p7230_p11 = pnand %p7228_p10, %p7640_p7  ;;  %p7237_p2 = por %p7236_p0, %p7235_p13 }
 0x104   : > { %p7231_p12 = pneg %p7230_p11 }
 0x106   : > { %p7238_p4 = pnand %p7237_p2, %p7231_p12 }
 0x108   : > { %7241 = shalt.err (!%p7238_p4)
}
 0x109   : > { %s8762_s20 = smov 8   ;;  %s8763_s23 = smov 128  }
 0x10a   : > { %6769 = dma.hbm_to_vmem [thread:$0]  (!%p7626_p5), %s8761_s15, 2048, %s788_s26, [#allocation15], %s8763_s23, %s8763_s23, %s8762_s20  }
 0x10b   : > { %s8764_s21 = sld [smem:[#allocation50_spill]] }
 0x111   : > { %s7242_s16 = scalar_lea.hbm %s8764_s21, 1024 }
 0x112   : > { %p7243_p6 = scmp.ne.s32.totalorder %s8764_s21, %s7242_s16  ;;  %p7249_p1 = scmp.lt.u32.totalorder %s7242_s16, %s8764_s21 }
 0x114   : > { %p7245_p8 = pnand %p7243_p6, %p7640_p7 }
 0x116   : > { %p7246_p9 = pneg %p7245_p8 }
 0x118   : > { %p7251_p3 = pnand %p7249_p1, %p7246_p9 }
 0x11a   : > { %7254 = shalt.err (!%p7251_p3)
}
 0x11b   : > { %s7255_s4 = scalar_lea.vmem %s826_s12, 1024  ;;  %p7263_p13 = scmp.lt.s32.totalorder %s826_s12, %s826_s12 }
 0x11c   : > { %p7256_p10 = scmp.ne.s32.totalorder %s826_s12, %s7255_s4  ;;  %p7264_p0 = scmp.lt.s32.totalorder %s7255_s4, %s7255_s4 }
 0x11e   : > { %p7258_p11 = pnand %p7256_p10, %p7640_p7  ;;  %p7265_p2 = por %p7264_p0, %p7263_p13 }
 0x120   : > { %p7259_p12 = pneg %p7258_p11 }
 0x122   : > { %p7266_p4 = pnand %p7265_p2, %p7259_p12 }
 0x124   : > { %7269 = shalt.err (!%p7266_p4)
}
 0x125   : > { %s7435_s26 = smov 256   ;;  %s7436_s23 = smov [#allocation20]  }
 0x126   : > { %6775 = dma.hbm_to_vmem [thread:$0]  (!%p7626_p5), %s8764_s21, 1024, %s826_s12, [#allocation18], %s7435_s26, %s7435_s26, %s7431_s14  }
 0x127   : > { %s838_s17 = sshll.u32 %s7436_s23, 4  ;;  %s7270_s1 = scalar_lea.hbm %s8692_s22, 1024  ;;  %s839_s17 = int_to_ptr.vmem [resolvable:$true] %s838_s17 }
 0x128   : > { %p7271_p6 = scmp.ne.s32.totalorder %s8692_s22, %s7270_s1  ;;  %p7277_p1 = scmp.lt.u32.totalorder %s7270_s1, %s8692_s22 }
 0x12a   : > { %p7273_p8 = pnand %p7271_p6, %p7640_p7 }
 0x12c   : > { %p7274_p9 = pneg %p7273_p8 }
 0x12e   : > { %p7279_p3 = pnand %p7277_p1, %p7274_p9 }
 0x130   : > { %7282 = shalt.err (!%p7279_p3)
}
 0x131   : > { %s7283_s12 = scalar_lea.vmem %s839_s17, 1024  ;;  %p7291_p13 = scmp.lt.s32.totalorder %s839_s17, %s839_s17 }
 0x132   : > { %p7284_p10 = scmp.ne.s32.totalorder %s839_s17, %s7283_s12  ;;  %p7292_p0 = scmp.lt.s32.totalorder %s7283_s12, %s7283_s12 }
 0x134   : > { %p7286_p11 = pnand %p7284_p10, %p7640_p7  ;;  %p7293_p2 = por %p7292_p0, %p7291_p13 }
 0x136   : > { %p7287_p12 = pneg %p7286_p11 }
 0x138   : > { %p7294_p4 = pnand %p7293_p2, %p7287_p12 }
 0x13a   : > { %7297 = shalt.err (!%p7294_p4)
}
 0x13b   : > { %6778 = dma.hbm_to_vmem [thread:$0]  (!%p7626_p5), %s8692_s22, 1024, %s839_s17, [#allocation21], %s7435_s26, %s7435_s26, %s7431_s14  }
 0x13c   : > { %s7848_s29 = sadd.s32 1, %s7420_s6   ;;  %s58_s18 = sadd.s32 1, %s7416_s3 }
 0x13d   : > { %s55_s7 = ssub.s32 %s7420_s6, %s7848_s29  ;;  %p65_p6 = scmp.ne.s32.totalorder %s7416_s3, %s7412_s30 }
 0x13e   : > { %p56_p7 = scmp.eq.s32.totalorder %s55_s7, 0  ;;  %p66_p8 = scmp.eq.s32.totalorder %s7420_s6, 0 }
 0x13f   : > { %p71_p9 = scmp.ne.s32.totalorder %s7412_s30, %s7408_s9  ;;  %p8765_p3 = scmp.eq.s32.totalorder %s7611_s0, 0 }
 0x140   : > { %s7859_s20 = scalar_select %p56_p7, %s7416_s3, %s58_s18  }
 0x141   : > { %p67_p1 = por %p66_p8, %p65_p6  ;;  %p7863_p10 = por %p8765_p3, %p71_p9 }
 0x142   : > { %p6796_p11 = scmp.lt.s32.totalorder %s7420_s6, 2  ;;  %s867_s14 = sand.u32 1, %s7416_s3  }
 0x143   : > { %s8766_s23 = scalar_select %p7863_p10, 1, 0 }
 0x144   : > { %s7869_s26 = sshll.u32 %s867_s14, 3  ;;  %s5615_s17 = sshll.u32 %s7420_s6, 7 }
 0x145   : > { %s8767_s1 = sld [smem:[#allocation30_spill]]  ;;  %s871_s9 = scalar_lea.vmem [#allocation3], %s7869_s26 }
 0x146   : > { %s878_s19 = sshll.u32 %s871_s9, 4  ;;  %p7880_p5 = pnand %p6796_p11, %p67_p1  ;;  %s7878_s19 = int_to_ptr.vmem [resolvable:$true] %s878_s19 }
 0x147   : > { %s8769_s8 = sld [smem:[#allocation31_spill]]  ;;  %s885_s7 = sand.u32 1, %s7420_s6  }
 0x148   : > { %s868_s18 = scalar_lea.sflag [#allocation4], %s867_s14  ;;  %p7300_p13 = pneg %p7880_p5 }
 0x14b   : > { %s7875_s16 = scalar_lea.hbm %s8767_s1, %s5615_s17  ;;  %s7303_s15 = scalar_lea.hbm %s8767_s1, 256 }
 0x14c   : > { %s7298_s5 = scalar_lea.hbm %s7875_s16, 128  ;;  %p7304_p4 = scmp.lt.u32.totalorder %s7875_s16, %s8767_s1 }
 0x14d   : > { %s7887_s4 = scalar_lea.hbm %s8769_s8, %s5615_s17  ;;  %p7299_p12 = scmp.ne.s32.totalorder %s7875_s16, %s7298_s5 }
 0x14e   : > { %p7305_p7 = scmp.lt.u32.totalorder %s7303_s15, %s7298_s5  ;;  %p7307_p8 = scmp.lt.u32.totalorder %s7298_s5, %s7875_s16 }
 0x14f   : > { %p7301_p0 = pnand %p7300_p13, %p7299_p12 }
 0x150   : > { %p7306_p6 = por %p7305_p7, %p7304_p4 }
 0x151   : > { %p7302_p2 = pneg %p7301_p0 }
 0x152   : > { %p7308_p9 = por %p7307_p8, %p7306_p6 }
 0x154   : > { %p7309_p1 = pnand %p7308_p9, %p7302_p2 }
 0x156   : > { %7312 = shalt.err (!%p7309_p1)
}
 0x157   : > { %s7313_s14 = scalar_lea.vmem %s7878_s19, 128  ;;  %s7437_s17 = smov [#allocation3]  }
 0x158   : > { %p7314_p3 = scmp.ne.s32.totalorder %s7878_s19, %s7313_s14  ;;  %s7318_s12 = sshll.u32 %s7437_s17, 4  ;;  %s7319_s12 = int_to_ptr.vmem [resolvable:$false] %s7318_s12 }
 0x159   : > { %s7320_s21 = scalar_lea.vmem %s7319_s12, 256  ;;  %p7321_p0 = scmp.lt.s32.totalorder %s7878_s19, %s7319_s12 }
 0x15a   : > { %p7316_p11 = pnand %p7314_p3, %p7300_p13  ;;  %p7322_p4 = scmp.lt.s32.totalorder %s7320_s21, %s7313_s14 }
 0x15c   : > { %p7317_p12 = pneg %p7316_p11  ;;  %p7323_p7 = por %p7322_p4, %p7321_p0 }
 0x15e   : > { %p7324_p6 = pnand %p7323_p7, %p7317_p12 }
 0x160   : > { %7327 = shalt.err (!%p7324_p6)
}
 0x161   : > { %6782 = dma.hbm_to_vmem [thread:$0]  (!%p7880_p5), %s7875_s16, 128, %s7878_s19, %s868_s18  }
 0x162   : > { %s889_s15 = scalar_lea.vmem [#allocation5], %s7869_s26  ;;  %s886_s2 = scalar_lea.sflag [#allocation6], %s885_s7 }
 0x163   : > { %s896_s5 = sshll.u32 %s889_s15, 4  ;;  %s7328_s9 = scalar_lea.hbm %s7887_s4, 128  ;;  %s897_s5 = int_to_ptr.vmem [resolvable:$true] %s896_s5 }
 0x164   : > { %p7329_p2 = scmp.ne.s32.totalorder %s7887_s4, %s7328_s9  ;;  %s7333_s17 = scalar_lea.hbm %s8769_s8, 256 }
 0x165   : > { %p7334_p1 = scmp.lt.u32.totalorder %s7887_s4, %s8769_s8  ;;  %p7335_p3 = scmp.lt.u32.totalorder %s7333_s17, %s7328_s9 }
 0x166   : > { %p7331_p8 = pnand %p7329_p2, %p7300_p13  ;;  %p7337_p12 = scmp.lt.u32.totalorder %s7328_s9, %s7887_s4 }
 0x167   : > { %p7336_p11 = por %p7335_p3, %p7334_p1 }
 0x168   : > { %p7332_p9 = pneg %p7331_p8 }
 0x169   : > { %p7338_p0 = por %p7337_p12, %p7336_p11 }
 0x16b   : > { %p7339_p4 = pnand %p7338_p0, %p7332_p9 }
 0x16d   : > { %7342 = shalt.err (!%p7339_p4)
}
 0x16e   : > { %s7343_s6 = scalar_lea.vmem %s897_s5, 128  ;;  %s7438_s26 = smov [#allocation5]  }
 0x16f   : > { %p7344_p7 = scmp.ne.s32.totalorder %s897_s5, %s7343_s6  ;;  %s7348_s16 = sshll.u32 %s7438_s26, 4  ;;  %s7349_s16 = int_to_ptr.vmem [resolvable:$false] %s7348_s16 }
 0x170   : > { %s7350_s19 = scalar_lea.vmem %s7349_s16, 256  ;;  %p7351_p8 = scmp.lt.s32.totalorder %s897_s5, %s7349_s16 }
 0x171   : > { %p7346_p6 = pnand %p7344_p7, %p7300_p13  ;;  %p7352_p10 = scmp.lt.s32.totalorder %s7350_s19, %s7343_s6 }
 0x173   : > { %p7347_p2 = pneg %p7346_p6  ;;  %p7353_p1 = por %p7352_p10, %p7351_p8 }
 0x175   : > { %p7354_p3 = pnand %p7353_p1, %p7347_p2 }
 0x177   : > { %7357 = shalt.err (!%p7354_p3)
}
 0x178   : > { %6785 = dma.hbm_to_vmem [thread:$0]  (!%p7880_p5), %s7887_s4, 128, %s897_s5, %s886_s2  }
 0x179   : > { %p8770_p9 = scmp.ne.s32.totalorder %s8751_s11, 0 }
 0x17a   : > { %s907_s7 = sand.u32 (!%p8770_p9), 1, %s7412_s30   ;;  %p8771_p13 = scmp.ne.s32.totalorder (!%p8770_p9), %s8766_s23, 0 }
 0x17b   : > { %905 = sbr.rel (%p8770_p9) target bundleno = 10731 (0x29eb), region = 132  ;;  %s7940_s18 = sshll.u32 (!%p8770_p9), %s907_s7, 3 }
 0x17c   : > { %s908_s15 = scalar_lea.sflag (!%p8770_p9), [#allocation4], %s907_s7  ;;  %s911_s9 = scalar_lea.vmem (!%p8770_p9), [#allocation3], %s7940_s18 }
 0x182   : > { %7375 = dma.done.wait (%p8771_p13), %s908_s15, 128  }
 0x183   : > { %7377 = vsyncadd (%p8771_p13), %s908_s15, 4294967168  ;;  %s916_s25 = sand.u32 1, %s7611_s0   ;;  %s920_s11 = scalar_lea.vmem [#allocation5], %s7940_s18 }
 0x184   : > { %s917_s4 = scalar_lea.sflag [#allocation6], %s916_s25 }
 0x185   : > { %7379 = dma.done.wait (%p8771_p13), %s917_s4, 128  }
 0x186   : > { %7381 = vsyncadd (%p8771_p13), %s917_s4, 4294967168  ;;  %p8772_p10 = scmp.eq.s32.totalorder %s7611_s0, 0 }
 0x188   : > { %7383 = dma.done.wait (%p8772_p10), [#allocation6], 128   ;;  %p8773_p5 = pmov %p8772_p10 }
 0x18a   : > { %7385 = vsyncadd (%p8773_p5), [#allocation6], 4294967168  ;;  %p8774_p11 = pmov %p8773_p5 }
 0x18b   : > { %p8775_p12 = pmov %p8773_p5 }
 0x18c   : > { %7387 = dma.done.wait (%p8774_p11), [#allocation9], 2176  }
 0x18d   : > { %7389 = vsyncadd (%p8775_p12), [#allocation9], 4294965120  ;;  %p8776_p0 = pmov %p8773_p5 }
 0x18f   : > { %7391 = dma.done.wait (%p8776_p0), [#allocation12], 2112   ;;  %p8777_p4 = pmov %p8776_p0 }
 0x190   : > { %p8778_p7 = pmov %p8776_p0 }
 0x191   : > { %7393 = vsyncadd (%p8777_p4), [#allocation12], 4294965184 }
 0x192   : > { %7395 = dma.done.wait (%p8778_p7), [#allocation15], 4096   ;;  %p8779_p6 = pmov %p8776_p0 }
 0x193   : > { %p8780_p2 = pmov %p8776_p0 }
 0x194   : > { %7397 = vsyncadd (%p8779_p6), [#allocation15], 4294963200 }
 0x195   : > { %7399 = dma.done.wait (%p8780_p2), [#allocation18], 3072   ;;  %p8781_p8 = pmov %p8776_p0 }
 0x196   : > { %p8782_p1 = pmov %p8776_p0 }
 0x197   : > { %7401 = vsyncadd (%p8781_p8), [#allocation18], 4294964224 }
 0x198   : > { %7403 = dma.done.wait (%p8782_p1), [#allocation21], 1024   ;;  %p8783_p3 = pmov %p8776_p0 }
 0x199   : > { %v7439_v1 = vmov 0.0|0.0   ;;  %vm7440_vm0 = vmmov 0   ;;  %v7441_v2 = vmov 0.0   ;;  %v1055_v3 = vld [vmem:[#allocation10] sm:$0xff]  ;;  %v1056_v4 = vld [vmem:[#allocation10 + $0x8] sm:$0xff]  ;;  %v1057_v5 = vld [vmem:[#allocation10 + $0x10] sm:$0xff] }
 0x19a   : > { %7405 = vsyncadd (%p8783_p3), [#allocation21], 4294966272  ;;  %6494 = vmatprep.subr.bf16.mxu1 %v7439_v1  ;;  %6050 = vmatprep.mubr.msk.f32.mxu1 %vm7440_vm0, %v7441_v2  ;;  %v6495_v6 = vpack.c.bf16 %v1056_v4, %v1055_v3  ;;  %v1058_v7 = vld [vmem:[#allocation10 + $0x18] sm:$0xff]  ;;  %v7983_v9 = vld [vmem:[#allocation7] sm:$0xff]  ;;  %vm1066_vm1 = vcmask 261120   ;;  %s8784_s2 = sld [smem:[#allocation36_spill]] }
 0x19b   : > { %6506 = vmatprep.subr.bf16.mxu0 %v7439_v1  ;;  %6072 = vmatprep.mubr.msk.f32.mxu0 %vm7440_vm0, %v7441_v2  ;;  %v6498_v8 = vpack.c.bf16 %v1058_v7, %v1057_v5  ;;  %v1052_v10 = vld [vmem:[%s920_s11] sm:$0xff]  ;;  %v1142_v15 = vld [vmem:[#allocation11 + $0x10] sm:$0xff]  ;;  %v1143_v16 = vld [vmem:[#allocation11 + $0x18] sm:$0xff]  ;;  %s8785_s17 = sld [smem:[#allocation33_spill]]  ;;  %s8786_s14 = sld [smem:[#allocation39_spill]]  ;;  %vm1453_vm2 = vcmask 64512  }
 0x19c   : > { %6496 = vmatpush3.bf16.msra.mxu1 %v6495_v6  ;;  %v1140_v11 = vld [vmem:[#allocation11] sm:$0xff]  ;;  %v1141_v12 = vld [vmem:[#allocation11 + $0x8] sm:$0xff]  ;;  %v7987_v13 = vadd.f32 %v1052_v10, %v7983_v9  ;;  %v6504_v17 = vpack.c.bf16 %v1143_v16, %v1142_v15  ;;  %v1051_v18 = vld [vmem:[%s911_s9] sm:$0xff]  ;;  %s8787_s15 = sld [smem:[#allocation40_spill]]  ;;  %vm1679_vm3 = vcmask 523264   ;;  %s8788_s4 = sld [smem:[#allocation42_spill]] }
 0x19d   : > { %6497 = vmatprep.subr.bf16.mxu1 %v7439_v1  ;;  %v6501_v14 = vpack.c.bf16 %v1141_v12, %v1140_v11  ;;  %v1054_v19 = vadd.f32 %v1051_v18, %v7983_v9  ;;  %v5634_v26 = vld [vmem:[#allocation13] ss:$0 sm:$0xff]  ;;  %s8789_s12 = sld [smem:[#allocation43_spill]]  ;;  %s8790_s26 = sld [smem:[#allocation45_spill]]  ;;  %vm5416_vm4 = vcmask 7168  }
 0x19e   : > { %s8791_s7 = sld [smem:[#allocation47_spill]]  ;;  %s8792_s25 = sld [smem:[#allocation48_spill]] }
 0x19f   : > { %s8793_s5 = sld [smem:[#allocation49_spill]]  ;;  %s8794_s23 = sld [smem:[#allocation51_spill]] }
 0x1a0   : > { %6499 = vmatpush3.bf16.msra.mxu1 %v6498_v8  ;;  %v5632_v20 = vld [vmem:[%s8784_s2] ss:$0 sm:$0xff]  ;;  %s8795_s6 = sld [smem:[#allocation52_spill]]  ;;  %s8796_s18 = sld [smem:[#allocation53_spill]] }
 0x1a1   : > { %6500 = vmatprep.subr.bf16.mxu1 %v7439_v1  ;;  %v8005_v22 = vld [vmem:[%s8785_s17] sm:$0xff]  ;;  %v8012_v30 = vld [vmem:[%s8785_s17 + $0x8] sm:$0xff]  ;;  %v8018_v31 = vld [vmem:[%s8785_s17 + $0x10] sm:$0xff]  ;;  %p1037_p9 = scmp.lt.s32.totalorder %s7611_s0, 1  ;;  %s8798_s16 = sld [smem:[#allocation55_spill]] }
 0x1a2   : > { %v8027_v34 = vld [vmem:[%s8785_s17 + $0x18] sm:$0xff]  ;;  %v8033_v35 = vld [vmem:[%s8785_s17 + $0x20] sm:$0xff]  ;;  %v8041_v38 = vld [vmem:[%s8785_s17 + $0x28] sm:$0xff] }
 0x1a3   : > { %6051 = vmatmul.mubr.msk.f32.vlgmr.msra.gmra.mrb[0].mxu1 %vm1066_vm1, %v7987_v13  ;;  %v8047_v39 = vld [vmem:[%s8785_s17 + $0x30] sm:$0xff]  ;;  %v8055_v42 = vld [vmem:[%s8785_s17 + $0x38] sm:$0xff]  ;;  %v1224_v44 = vld [vmem:[%s8786_s14] sm:$0xff]  ;;  %s8804_s0 = smov (!%p1037_p9, %s7611_s0), 1 }
 0x1a4   : > { %6502 = vmatpush3.bf16.msra.mxu1 %v6501_v14  ;;  %6061 = vmatprep.mubr.msk.f32.mxu1 %vm7440_vm0, %v7441_v2  ;;  %v1225_v45 = vld [vmem:[%s8786_s14 + $0x8] sm:$0xff]  ;;  %v1226_v46 = vld [vmem:[%s8786_s14 + $0x10] sm:$0xff]  ;;  %v1227_v48 = vld [vmem:[%s8786_s14 + $0x18] sm:$0xff]  ;;  %s5631_s10 = sshll.u32 %s8804_s0, 3 }
 0x1a5   : > { %6503 = vmatprep.subr.bf16.mxu1 %v7439_v1  ;;  %v6507_v47 = vpack.c.bf16 %v1225_v45, %v1224_v44  ;;  %v6510_v49 = vpack.c.bf16 %v1227_v48, %v1226_v46 }
 0x1a7   : > { %6508 = vmatpush3.bf16.msra.mxu0 %v6507_v47  ;;  %s1040_s19 = scalar_lea.vmem %s8798_s16, %s5631_s10 }
 0x1a8   : > { %6505 = vmatpush3.bf16.msra.mxu1 %v6504_v17  ;;  %6509 = vmatprep.subr.bf16.mxu0 %v7439_v1 }
 0x1ab   : > { %6062 = vmatmul.mubr.msk.f32.vlgmr.msra.gmra.mrb[2].mxu1 %vm1066_vm1, %v1054_v19  ;;  %6511 = vmatpush3.bf16.msra.mxu0 %v6510_v49 }
 0x1ae   : > { %6073 = vmatmul.mubr.msk.f32.vlgmr.msra.gmra.mrb[0].mxu0 %vm1066_vm1, %v1054_v19 }
 0x276   : > { %v1136_v21 = vpop.f32.mrb[0].mxu1 }
 0x277   : > { %v1137_v23 = vadd.f32 %v5632_v20, %v1136_v21  ;;  %v6052_v24 = vpop.f32.mrb[1].mxu1 }
 0x279   : > { %v1305_v25 = vmul.f32 %v1137_v23, %v8005_v22  ;;  %v1306_v32 = vmul.f32 %v1137_v23, %v8012_v30  ;;  %v1307_v33 = vmul.f32 %v1137_v23, %v8018_v31  ;;  %v1308_v36 = vmul.f32 %v1137_v23, %v8027_v34 }
 0x27a   : > { %v1309_v37 = vmul.f32 %v1137_v23, %v8033_v35  ;;  %v1310_v40 = vmul.f32 %v1137_v23, %v8041_v38  ;;  %v1311_v41 = vmul.f32 %v1137_v23, %v8047_v39  ;;  %v1312_v43 = vmul.f32 %v1137_v23, %v8055_v42 }
 0x27b   : > { %6077 = vmatprep.mubr.msk.f32.mxu1 %vm1066_vm1, %v1305_v25 }
 0x27e   : > { %v1220_v27 = vpop.f32.mrb[2].mxu1 }
 0x27f   : > { %v1221_v28 = vadd.f32 %v5634_v26, %v1220_v27  ;;  %v6063_v29 = vpop.f32.mrb[3].mxu1 }
 0x281   : > { %6075 = vmatprep.subr.msk.mxu1 %vm1066_vm1, %v1221_v28 }
 0x282   : > { %6076 = vmatpush3.xpose.msk.msra.mxu1 %vm1066_vm1, %v1221_v28 }
 0x283   : > { %6512 = vmatprep.subr.bf16.mxu1 %v7439_v1 }
 0x285   : > { %6078 = vmatmul.mubr.msk.f32.vlgmr.msra.gmra.mrb[4].mxu1 %vm1066_vm1, %v1306_v32 }
 0x286   : > { %6080 = vmatprep.mubr.msk.f32.mxu1 %vm1066_vm1, %v1307_v33 }
 0x289   : > { %6081 = vmatmul.mubr.msk.f32.gmra.mrb[6].mxu1 %vm1066_vm1, %v1308_v36 }
 0x28a   : > { %6083 = vmatprep.mubr.msk.f32.mxu1 %vm1066_vm1, %v1309_v37 }
 0x28d   : > { %6084 = vmatmul.mubr.msk.f32.gmra.mrb[8].mxu1 %vm1066_vm1, %v1310_v40 }
 0x28e   : > { %6086 = vmatprep.mubr.msk.f32.mxu1 %vm1066_vm1, %v1311_v41 }
 0x291   : > { %6087 = vmatmul.mubr.msk.f32.gmra.mrb[10].mxu1 %vm1066_vm1, %v1312_v43 }
 0x292   : > { %6119 = vmatprep.mubr.msk.f32.mxu1 %vm7440_vm0, %v7441_v2 }
 0x358   : > { %v6079_v50 = vpop.f32.mrb[4].mxu1 }
 0x359   : > { %v1406_v51 = vpop.f32.mrb[5].mxu1  ;;  %v1446_v53 = vmul.f32 0.5, %v6079_v50 }
 0x35a   : > { %v1445_v52 = vmul.f32 0.5, %v1406_v51 }
 0x35b   : > { %v1457_v60 = vsel %vm1453_vm2, %v1446_v53, -inf }
 0x35c   : > { %v6082_v54 = vpop.f32.mrb[6].mxu1  ;;  %v1454_v55 = vsel %vm1453_vm2, %v1445_v52, -inf }
 0x35d   : > { %1455 = vmax.xlane.f32.xlu0 %v1454_v55  ;;  %v1416_v56 = vpop.f32.mrb[7].mxu1  ;;  %v1448_v58 = vmul.f32 0.5, %v6082_v54 }
 0x35e   : > { %v1447_v57 = vmul.f32 0.5, %v1416_v56 }
 0x35f   : > { %v1463_v4 = vsel %vm1453_vm2, %v1448_v58, -inf }
 0x360   : > { %v6085_v59 = vpop.f32.mrb[8].mxu1  ;;  %v1460_v61 = vsel %vm1453_vm2, %v1447_v57, -inf }
 0x361   : > { %1458 = vmax.xlane.f32.xlu0 %v1457_v60  ;;  %1461 = vmax.xlane.f32.xlu1 %v1460_v61  ;;  %v1426_v62 = vpop.f32.mrb[9].mxu1  ;;  %v1450_v0 = vmul.f32 0.5, %v6085_v59 }
 0x362   : > { %v1449_v63 = vmul.f32 0.5, %v1426_v62  ;;  %v5636_v62 = vld [vmem:[%s8787_s15] ss:$0 sm:$0xff] }
 0x363   : > { %v1469_v10 = vsel %vm1453_vm2, %v1450_v0, -inf }
 0x364   : > { %v6088_v3 = vpop.f32.mrb[10].mxu1  ;;  %v1466_v5 = vsel %vm1453_vm2, %v1449_v63, -inf }
 0x365   : > { %1464 = vmax.xlane.f32.xlu1 %v1463_v4  ;;  %1467 = vmax.xlane.f32.xlu0 %v1466_v5  ;;  %v1436_v6 = vpop.f32.mrb[11].mxu1  ;;  %v1452_v8 = vmul.f32 0.5, %v6088_v3 }
 0x366   : > { %v1451_v7 = vmul.f32 0.5, %v1436_v6 }
 0x367   : > { %v1475_v12 = vsel %vm1453_vm2, %v1452_v8, -inf }
 0x368   : > { %v1472_v11 = vsel %vm1453_vm2, %v1451_v7, -inf }
 0x369   : > { %1470 = vmax.xlane.f32.xlu1 %v1469_v10  ;;  %1473 = vmax.xlane.f32.xlu0 %v1472_v11 }
 0x36d   : > { %1476 = vmax.xlane.f32.xlu1 %v1475_v12 }
 0x3ea   : > { %v1456_v14 = vpop.xlane.xlu0 %1455 }
 0x3eb   : > { %v1478_v15 = vsub.f32 %v1445_v52, %v1456_v14 }
 0x3ed   : > { %v1486_v16 = vmul.f32 1.442695, %v1478_v15 }
 0x3ee   : > { %v1459_v17 = vpop.xlane.xlu0 %1458  ;;  %v1462_v18 = vpop.xlane.xlu1 %1461 }
 0x3ef   : > { %6857 = vpow2.f32 %v1486_v16  ;;  %v1479_v19 = vsub.f32 %v1446_v53, %v1459_v17  ;;  %v1480_v20 = vsub.f32 %v1447_v57, %v1462_v18 }
 0x3f1   : > { %v1488_v21 = vmul.f32 1.442695, %v1479_v19  ;;  %v1490_v23 = vmul.f32 1.442695, %v1480_v20 }
 0x3f2   : > { %v1465_v24 = vpop.xlane.xlu1 %1464  ;;  %v1468_v25 = vpop.xlane.xlu0 %1467 }
 0x3f3   : > { %6859 = vpow2.f32 %v1488_v21  ;;  %v1481_v26 = vsub.f32 %v1448_v58, %v1465_v24  ;;  %v1482_v27 = vsub.f32 %v1449_v63, %v1468_v25  ;;  %v1301_v63 = vpop.f32.mrb[0].mxu0 }
 0x3f4   : > { %6861 = vpow2.f32 %v1490_v23  ;;  %v6074_v3 = vpop.f32.mrb[1].mxu0 }
 0x3f5   : > { %v1492_v28 = vmul.f32 1.442695, %v1481_v26  ;;  %v1494_v29 = vmul.f32 1.442695, %v1482_v27 }
 0x3f6   : > { %v1471_v32 = vpop.xlane.xlu1 %1470  ;;  %v1474_v33 = vpop.xlane.xlu0 %1473 }
 0x3f7   : > { %6863 = vpow2.f32 %v1492_v28  ;;  %v1483_v36 = vsub.f32 %v1450_v0, %v1471_v32  ;;  %v1484_v37 = vsub.f32 %v1451_v7, %v1474_v33  ;;  %v1302_v0 = vadd.f32 %v5636_v62, %v1301_v63  ;;  %v1753_v33 = vld [vmem:[#allocation14] sm:$0xff] }
 0x3f8   : > { %6865 = vpow2.f32 %v1494_v29 }
 0x3f9   : > { %v6858_v40 = vpop.eup %6857  ;;  %v1496_v41 = vmul.f32 1.442695, %v1483_v36  ;;  %v1498_v43 = vmul.f32 1.442695, %v1484_v37  ;;  %6089 = vmatprep.subr.mxu0 %v1302_v0  ;;  %v1754_v36 = vld [vmem:[#allocation14 + $0x8] sm:$0xff]  ;;  %v1755_v37 = vld [vmem:[#allocation14 + $0x10] sm:$0xff] }
 0x3fa   : > { %v1477_v44 = vpop.xlane.xlu1 %1476  ;;  %v1502_v45 = vsel %vm1453_vm2, %v6858_v40, 0.0  ;;  %6090 = vmatpush3.msra.mxu0 %v1302_v0  ;;  %v8120_v0 = vld [vmem:[#allocation8] sm:$0xff] }
 0x3fb   : > { %6867 = vpow2.f32 %v1496_v41  ;;  %v1485_v46 = vsub.f32 %v1452_v8, %v1477_v44  ;;  %1503 = vadd.xlane.f32.xlu0 %v1502_v45  ;;  %6524 = vmatprep.subr.bf16.mxu0 %v7439_v1  ;;  %v1756_v41 = vld [vmem:[#allocation14 + $0x18] sm:$0xff] }
 0x3fc   : > { %6869 = vpow2.f32 %v1498_v43  ;;  %v6528_v43 = vpack.c.bf16 %v1756_v41, %v1755_v37 }
 0x3fd   : > { %v6860_v47 = vpop.eup %6859  ;;  %v1500_v48 = vmul.f32 1.442695, %v1485_v46 }
 0x3fe   : > { %v6862_v49 = vpop.eup %6861  ;;  %v1505_v50 = vsel %vm1453_vm2, %v6860_v47, 0.0 }
 0x3ff   : > { %6871 = vpow2.f32 %v1500_v48  ;;  %1506 = vadd.xlane.f32.xlu1 %v1505_v50  ;;  %v1508_v51 = vsel %vm1453_vm2, %v6862_v49, 0.0 }
 0x400   : > { %1509 = vadd.xlane.f32.xlu0 %v1508_v51 }
 0x401   : > { %v6864_v52 = vpop.eup %6863 }
 0x402   : > { %v6866_v53 = vpop.eup %6865  ;;  %v1511_v54 = vsel %vm1453_vm2, %v6864_v52, 0.0 }
 0x403   : > { %1512 = vadd.xlane.f32.xlu1 %v1511_v54  ;;  %v1514_v55 = vsel %vm1453_vm2, %v6866_v53, 0.0 }
 0x404   : > { %1515 = vadd.xlane.f32.xlu0 %v1514_v55 }
 0x405   : > { %v6868_v56 = vpop.eup %6867 }
 0x406   : > { %v6870_v57 = vpop.eup %6869  ;;  %v1517_v58 = vsel %vm1453_vm2, %v6868_v56, 0.0 }
 0x407   : > { %1518 = vadd.xlane.f32.xlu1 %v1517_v58  ;;  %v1520_v59 = vsel %vm1453_vm2, %v6870_v57, 0.0 }
 0x408   : > { %1521 = vadd.xlane.f32.xlu0 %v1520_v59 }
 0x409   : > { %v6872_v60 = vpop.eup %6871 }
 0x40a   : > { %v1523_v61 = vsel %vm1453_vm2, %v6872_v60, 0.0 }
 0x40b   : > { %1524 = vadd.xlane.f32.xlu1 %v1523_v61 }
 0x488   : > { %v1504_v4 = vpop.xlane.xlu0 %1503 }
 0x489   : > { %6873 = vrcp.f32 %v1504_v4 }
 0x48c   : > { %v1507_v5 = vpop.xlane.xlu1 %1506 }
 0x48d   : > { %6875 = vrcp.f32 %v1507_v5  ;;  %v1510_v6 = vpop.xlane.xlu0 %1509  ;;  %v5656_v5 = vld [vmem:[%s8788_s4] ss:$0 sm:$0xff] }
 0x48e   : > { %6877 = vrcp.f32 %v1510_v6 }
 0x490   : > { %v1513_v7 = vpop.xlane.xlu1 %1512 }
 0x491   : > { %6879 = vrcp.f32 %v1513_v7  ;;  %v1516_v8 = vpop.xlane.xlu0 %1515 }
 0x492   : > { %6881 = vrcp.f32 %v1516_v8 }
 0x493   : > { %v6874_v10 = vpop.eup %6873 }
 0x494   : > { %v1519_v11 = vpop.xlane.xlu1 %1518  ;;  %v1534_v12 = vmul.f32 %v6874_v10, %v6858_v40  ;;  %v6525_v40 = vpack.c.bf16 %v1754_v36, %v1753_v33  ;;  %v5658_v36 = vld [vmem:[%s8683_s13] ss:$0 sm:$0xff] }
 0x495   : > { %6883 = vrcp.f32 %v1519_v11  ;;  %v1522_v14 = vpop.xlane.xlu0 %1521 }
 0x496   : > { %6885 = vrcp.f32 %v1522_v14  ;;  %6091 = vmatprep.mubr.msk.f32.mxu0 %vm1453_vm2, %v1534_v12 }
 0x497   : > { %v6876_v15 = vpop.eup %6875 }
 0x498   : > { %v6878_v16 = vpop.eup %6877  ;;  %v1535_v17 = vmul.f32 %v6876_v15, %v6860_v47  ;;  %v1525_v18 = vpop.xlane.xlu1 %1524 }
 0x499   : > { %6887 = vrcp.f32 %v1525_v18  ;;  %v1536_v19 = vmul.f32 %v6878_v16, %v6862_v49  ;;  %v1868_v18 = vld [vmem:[#allocation16] sm:$0xff] }
 0x49a   : > { %6092 = vmatmul.mubr.msk.f32.vlgmr.msra.gmra.mrb[2].mxu0 %vm1453_vm2, %v1535_v17 }
 0x49b   : > { %v6880_v20 = vpop.eup %6879  ;;  %6094 = vmatprep.mubr.msk.f32.mxu0 %vm1453_vm2, %v1536_v19  ;;  %6526 = vmatpush3.bf16.msra.mxu0 %v6525_v40  ;;  %v1869_v19 = vld [vmem:[#allocation16 + $0x8] sm:$0xff] }
 0x49c   : > { %v6882_v21 = vpop.eup %6881  ;;  %v1537_v23 = vmul.f32 %v6880_v20, %v6864_v52  ;;  %6527 = vmatprep.subr.bf16.mxu0 %v7439_v1  ;;  %v6531_v20 = vpack.c.bf16 %v1869_v19, %v1868_v18  ;;  %v5659_v40 = vld [vmem:[%s8789_s12] ss:$0 sm:$0xff] }
 0x49d   : > { %v1538_v24 = vmul.f32 %v6882_v21, %v6866_v53  ;;  %v1870_v21 = vld [vmem:[#allocation16 + $0x10] sm:$0xff] }
 0x49e   : > { %6095 = vmatmul.mubr.msk.f32.gmra.mrb[4].mxu0 %vm1453_vm2, %v1537_v23  ;;  %v1871_v23 = vld [vmem:[#allocation16 + $0x18] sm:$0xff] }
 0x49f   : > { %v6884_v25 = vpop.eup %6883  ;;  %6097 = vmatprep.mubr.msk.f32.mxu0 %vm1453_vm2, %v1538_v24  ;;  %6529 = vmatpush3.bf16.msra.mxu0 %v6528_v43  ;;  %v6534_v24 = vpack.c.bf16 %v1871_v23, %v1870_v21  ;;  %v5665_v23 = vld [vmem:[%s8793_s5] ss:$0 sm:$0xff] }
 0x4a0   : > { %v6886_v26 = vpop.eup %6885  ;;  %v1539_v27 = vmul.f32 %v6884_v25, %v6868_v56  ;;  %6536 = vmatprep.subr.bf16.mxu0 %v7439_v1  ;;  %v1953_v25 = vld [vmem:[#allocation17] sm:$0xff] }
 0x4a1   : > { %v1540_v28 = vmul.f32 %v6886_v26, %v6870_v57  ;;  %v1954_v26 = vld [vmem:[#allocation17 + $0x8] sm:$0xff] }
 0x4a2   : > { %6098 = vmatmul.mubr.msk.f32.gmra.mrb[6].mxu0 %vm1453_vm2, %v1539_v27  ;;  %v6537_v27 = vpack.c.bf16 %v1954_v26, %v1953_v25 }
 0x4a3   : > { %v6888_v29 = vpop.eup %6887  ;;  %6100 = vmatprep.mubr.msk.f32.mxu0 %vm1453_vm2, %v1540_v28 }
 0x4a4   : > { %v1541_v32 = vmul.f32 %v6888_v29, %v6872_v60 }
 0x4a6   : > { %6101 = vmatmul.mubr.msk.f32.gmra.mrb[8].mxu0 %vm1453_vm2, %v1541_v32 }
 0x4a7   : > { %6130 = vmatprep.mubr.msk.f32.mxu0 %vm7440_vm0, %v7441_v2 }
 0x56d   : > { %v6093_v44 = vpop.f32.mrb[2].mxu0 }
 0x56e   : > { %v1672_v45 = vmul.f32 %v6093_v44, %v8012_v30  ;;  %v1632_v46 = vpop.f32.mrb[3].mxu0  ;;  %v1955_v44 = vld [vmem:[#allocation17 + $0x10] sm:$0xff] }
 0x56f   : > { %v1671_v47 = vmul.f32 %v1632_v46, %v8005_v22 }
 0x571   : > { %v6513_v48 = vpack.c.bf16 %v1672_v45, %v1671_v47  ;;  %v6096_v49 = vpop.f32.mrb[4].mxu0  ;;  %v1956_v45 = vld [vmem:[#allocation17 + $0x18] sm:$0xff]  ;;  %v5660_v47 = vld [vmem:[%s8790_s26] ss:$0 sm:$0xff] }
 0x572   : > { %v1674_v50 = vmul.f32 %v6096_v49, %v8027_v34  ;;  %v1642_v51 = vpop.f32.mrb[5].mxu0  ;;  %v6540_v46 = vpack.c.bf16 %v1956_v45, %v1955_v44 }
 0x573   : > { %v1673_v52 = vmul.f32 %v1642_v51, %v8018_v31  ;;  %6514 = vmatpush3.bf16.msra.mxu1 %v6513_v48 }
 0x574   : > { %6515 = vmatprep.subr.bf16.mxu1 %v7439_v1 }
 0x575   : > { %v6516_v53 = vpack.c.bf16 %v1674_v50, %v1673_v52  ;;  %v6099_v54 = vpop.f32.mrb[6].mxu0  ;;  %v5662_v52 = vld [vmem:[%s8791_s7] ss:$0 sm:$0xff] }
 0x576   : > { %v1676_v55 = vmul.f32 %v6099_v54, %v8041_v38  ;;  %v1652_v56 = vpop.f32.mrb[7].mxu0 }
 0x577   : > { %v1675_v57 = vmul.f32 %v1652_v56, %v8033_v35  ;;  %6517 = vmatpush3.bf16.msra.mxu1 %v6516_v53 }
 0x578   : > { %6518 = vmatprep.subr.bf16.mxu1 %v7439_v1 }
 0x579   : > { %v6519_v58 = vpack.c.bf16 %v1676_v55, %v1675_v57  ;;  %v6102_v59 = vpop.f32.mrb[8].mxu0 }
 0x57a   : > { %v1678_v60 = vmul.f32 %v6102_v59, %v8055_v42  ;;  %v1662_v61 = vpop.f32.mrb[9].mxu0 }
 0x57b   : > { %v1677_v62 = vmul.f32 %v1662_v61, %v8047_v39  ;;  %6520 = vmatpush3.bf16.msra.mxu1 %v6519_v58 }
 0x57c   : > { %6521 = vmatprep.subr.bf16.mxu1 %v7439_v1 }
 0x57d   : > { %v6522_v63 = vpack.c.bf16 %v1678_v60, %v1677_v62 }
 0x57f   : > { %6523 = vmatpush3.bf16.msra.mxu1 %v6522_v63  ;;  %v2155_v63 = vld [vmem:[#allocation11 + $0x20] sm:$0xff] }
 0x580   : > { %6530 = vmatprep.subr.bf16.mxu1 %v7439_v1 }
 0x582   : > { %6120 = vmatmul.mubr.msk.f32.vlgmr.msra.gmra.mrb[12].mxu1 %vm1679_vm3, %v8120_v0 }
 0x583   : > { %6141 = vmatprep.mubr.msk.f32.mxu1 %vm7440_vm0, %v7441_v2  ;;  %6532 = vmatpush3.bf16.msra.mxu1 %v6531_v20  ;;  %v5664_v20 = vld [vmem:[%s8792_s25] ss:$0 sm:$0xff] }
 0x584   : > { %6533 = vmatprep.subr.bf16.mxu1 %v7439_v1 }
 0x587   : > { %6535 = vmatpush3.bf16.msra.mxu1 %v6534_v24 }
 0x588   : > { %6542 = vmatprep.subr.bf16.mxu1 %v7439_v1 }
 0x655   : > { %v1749_v3 = vpop.f32.mrb[12].mxu1 }
 0x656   : > { %v6121_v4 = vpop.f32.mrb[13].mxu1  ;;  %6131 = vmatmul.mubr.msk.f32.vlgmr.msra.gmra.mrb[10].mxu0 %vm1066_vm1, %v1749_v3  ;;  %v2156_v3 = vld [vmem:[#allocation11 + $0x28] sm:$0xff] }
 0x657   : > { %6152 = vmatprep.mubr.msk.f32.mxu0 %vm7440_vm0, %v7441_v2  ;;  %6538 = vmatpush3.bf16.msra.mxu0 %v6537_v27  ;;  %v6549_v4 = vpack.c.bf16 %v2156_v3, %v2155_v63  ;;  %v5669_v27 = vld [vmem:[#allocation13 + $0x1] ss:$0 sm:$0xff] }
 0x658   : > { %6539 = vmatprep.subr.bf16.mxu0 %v7439_v1 }
 0x65b   : > { %6541 = vmatpush3.bf16.msra.mxu0 %v6540_v46 }
 0x65c   : > { %6548 = vmatprep.subr.bf16.mxu0 %v7439_v1 }
 0x729   : > { %v1833_v6 = vpop.f32.mrb[10].mxu0 }
 0x72a   : > { %v1834_v7 = vadd.f32 %v5656_v5, %v1833_v6  ;;  %v6132_v8 = vpop.f32.mrb[11].mxu0  ;;  %v2069_v5 = vld [vmem:[#allocation10 + $0x20] sm:$0xff]  ;;  %v2070_v6 = vld [vmem:[#allocation10 + $0x28] sm:$0xff] }
 0x72b   : > { %v2157_v8 = vld [vmem:[#allocation11 + $0x30] sm:$0xff] }
 0x72c   : > { %v1837_v10 = vadd.f32 %v1834_v7, %v7987_v13  ;;  %v6543_v7 = vpack.c.bf16 %v2070_v6, %v2069_v5 }
 0x72e   : > { %v1840_v11 = vsel %vm1066_vm1, %v1837_v10, 0.0 }
 0x72f   : > { %1841 = vadd.xlane.f32.xlu0 %v1840_v11 }
 0x7bc   : > { %v1842_v12 = vpop.xlane.xlu0 %1841 }
 0x7bd   : > { %v1844_v14 = vmul.f32 0.03125, %v1842_v12  ;;  %v2071_v12 = vld [vmem:[#allocation10 + $0x30] sm:$0xff] }
 0x7bf   : > { %v1845_v15 = vsub.f32 %v1837_v10, %v1844_v14  ;;  %v2158_v10 = vld [vmem:[#allocation11 + $0x38] sm:$0xff] }
 0x7c0   : > { %v6552_v11 = vpack.c.bf16 %v2158_v10, %v2157_v8  ;;  %v2072_v14 = vld [vmem:[#allocation10 + $0x38] sm:$0xff] }
 0x7c1   : > { %v1846_v16 = vmul.f32 %v1845_v15, %v1845_v15 }
 0x7c3   : > { %v1847_v17 = vsel %vm1066_vm1, %v1846_v16, 0.0 }
 0x7c4   : > { %1848 = vadd.xlane.f32.xlu1 %v1847_v17 }
 0x851   : > { %v1849_v28 = vpop.xlane.xlu1 %1848 }
 0x852   : > { %v1850_v29 = vmul.f32 0.03125, %v1849_v28 }
 0x854   : > { %v1851_v32 = vadd.f32 1e-05, %v1850_v29 }
 0x856   : > { %6889 = vrsqrt.f32 %v1851_v32 }
 0x860   : > { %v6890_v33 = vpop.eup %6889 }
 0x861   : > { %v1853_v37 = vmul.f32 %v6890_v33, %v1845_v15  ;;  %v6546_v15 = vpack.c.bf16 %v2072_v14, %v2071_v12 }
 0x863   : > { %v1860_v41 = vmul.f32 %v5658_v36, %v1853_v37 }
 0x865   : > { %v1867_v43 = vadd.f32 %v5659_v40, %v1860_v41 }
 0x867   : > { %6142 = vmatmul.mubr.msk.f32.vlgmr.msra.gmra.mrb[14].mxu1 %vm1066_vm1, %v1867_v43 }
 0x868   : > { %6163 = vmatprep.mubr.msk.f32.mxu1 %vm7440_vm0, %v7441_v2  ;;  %6544 = vmatpush3.bf16.msra.mxu1 %v6543_v7 }
 0x869   : > { %6545 = vmatprep.subr.bf16.mxu1 %v7439_v1 }
 0x86c   : > { %6547 = vmatpush3.bf16.msra.mxu1 %v6546_v15 }
 0x86d   : > { %6554 = vmatprep.subr.bf16.mxu1 %v7439_v1 }
 0x93a   : > { %v1948_v48 = vpop.f32.mrb[14].mxu1 }
 0x93b   : > { %v1949_v49 = vadd.f32 %v5660_v47, %v1948_v48  ;;  %v6143_v50 = vpop.f32.mrb[15].mxu1  ;;  %v5671_v48 = vld [vmem:[%s8786_s14 + $0x20] sm:$0xff] }
 0x93c   : > { %v5673_v50 = vld [vmem:[%s8786_s14 + $0x30] sm:$0xff] }
 0x93d   : > { %v1952_v51 = vmax.f32 %v1949_v49, 0.0  ;;  %v5672_v49 = vld [vmem:[%s8786_s14 + $0x28] sm:$0xff] }
 0x93f   : > { %6153 = vmatmul.mubr.msk.f32.vlgmr.msra.gmra.mrb[12].mxu0 %vm1066_vm1, %v1952_v51  ;;  %v6555_v51 = vpack.c.bf16 %v5672_v49, %v5671_v48 }
 0x940   : > { %6174 = vmatprep.mubr.msk.f32.mxu0 %vm7440_vm0, %v7441_v2  ;;  %6550 = vmatpush3.bf16.msra.mxu0 %v6549_v4 }
 0x941   : > { %6551 = vmatprep.subr.bf16.mxu0 %v7439_v1 }
 0x944   : > { %6553 = vmatpush3.bf16.msra.mxu0 %v6552_v11 }
 0x947   : > { %6175 = vmatmul.mubr.msk.f32.vlgmr.msra.gmra.mrb[14].mxu0 %vm1066_vm1, %v7987_v13 }
 0xa12   : > { %v2033_v53 = vpop.f32.mrb[12].mxu0 }
 0xa13   : > { %v2034_v54 = vadd.f32 %v5662_v52, %v2033_v53  ;;  %v6154_v55 = vpop.f32.mrb[13].mxu0  ;;  %v5674_v52 = vld [vmem:[%s8786_s14 + $0x38] sm:$0xff] }
 0xa14   : > { %v6558_v53 = vpack.c.bf16 %v5674_v52, %v5673_v50 }
 0xa15   : > { %v2037_v56 = vadd.f32 %v2034_v54, %v1867_v43 }
 0xa17   : > { %v2040_v57 = vsel %vm1066_vm1, %v2037_v56, 0.0 }
 0xa18   : > { %2041 = vadd.xlane.f32.xlu0 %v2040_v57 }
 0xa1a   : > { %v2233_v28 = vpop.f32.mrb[14].mxu0 }
 0xa1b   : > { %v2234_v29 = vadd.f32 %v5669_v27, %v2233_v28  ;;  %v6176_v32 = vpop.f32.mrb[15].mxu0 }
 0xa1d   : > { %6188 = vmatprep.subr.msk.mxu0 %vm1066_vm1, %v2234_v29 }
 0xa1e   : > { %6189 = vmatpush3.xpose.msk.msra.mxu0 %vm1066_vm1, %v2234_v29 }
 0xa1f   : > { %6560 = vmatprep.subr.bf16.mxu0 %v7439_v1 }
 0xaa5   : > { %v2042_v58 = vpop.xlane.xlu0 %2041 }
 0xaa6   : > { %v2043_v59 = vmul.f32 0.03125, %v2042_v58 }
 0xaa8   : > { %v2044_v60 = vsub.f32 %v2037_v56, %v2043_v59 }
 0xaaa   : > { %v2045_v61 = vmul.f32 %v2044_v60, %v2044_v60 }
 0xaac   : > { %v2046_v62 = vsel %vm1066_vm1, %v2045_v61, 0.0 }
 0xaad   : > { %2047 = vadd.xlane.f32.xlu1 %v2046_v62 }
 0xb3a   : > { %v2048_v16 = vpop.xlane.xlu1 %2047 }
 0xb3b   : > { %v2049_v17 = vmul.f32 0.03125, %v2048_v16 }
 0xb3d   : > { %v2050_v18 = vadd.f32 1e-05, %v2049_v17 }
 0xb3f   : > { %6891 = vrsqrt.f32 %v2050_v18 }
 0xb49   : > { %v6892_v19 = vpop.eup %6891 }
 0xb4a   : > { %v2052_v21 = vmul.f32 %v6892_v19, %v2044_v60 }
 0xb4c   : > { %v2059_v24 = vmul.f32 %v5664_v20, %v2052_v21 }
 0xb4e   : > { %v2066_v25 = vadd.f32 %v5665_v23, %v2059_v24 }
 0xb50   : > { %v8172_v26 = vadd.f32 %v2066_v25, %v7983_v9  ;;  %v5667_v9 = vld [vmem:[%s8784_s2 + $0x1] ss:$0 sm:$0xff] }
 0xb52   : > { %6164 = vmatmul.mubr.msk.f32.vlgmr.msra.gmra.mrb[16].mxu1 %vm1066_vm1, %v8172_v26 }
 0xb53   : > { %6185 = vmatprep.mubr.msk.f32.mxu1 %vm7440_vm0, %v7441_v2  ;;  %6556 = vmatpush3.bf16.msra.mxu1 %v6555_v51 }
 0xb54   : > { %6557 = vmatprep.subr.bf16.mxu1 %v7439_v1 }
 0xb57   : > { %6559 = vmatpush3.bf16.msra.mxu1 %v6558_v53 }
 0xb5a   : > { %6186 = vmatmul.mubr.msk.f32.vlgmr.msra.gmra.mrb[18].mxu1 %vm1066_vm1, %v7987_v13 }
 0xc25   : > { %v2150_v33 = vpop.f32.mrb[16].mxu1 }
 0xc26   : > { %v2151_v36 = vadd.f32 %v5667_v9, %v2150_v33  ;;  %v6165_v37 = vpop.f32.mrb[17].mxu1 }
 0xc28   : > { %v2320_v40 = vmul.f32 %v2151_v36, %v8005_v22  ;;  %v2321_v41 = vmul.f32 %v2151_v36, %v8012_v30  ;;  %v2322_v43 = vmul.f32 %v2151_v36, %v8018_v31  ;;  %v2323_v44 = vmul.f32 %v2151_v36, %v8027_v34 }
 0xc29   : > { %v2324_v45 = vmul.f32 %v2151_v36, %v8033_v35  ;;  %v2325_v22 = vmul.f32 %v2151_v36, %v8041_v38  ;;  %v2326_v46 = vmul.f32 %v2151_v36, %v8047_v39  ;;  %v2327_v47 = vmul.f32 %v2151_v36, %v8055_v42 }
 0xc2a   : > { %6190 = vmatprep.mubr.msk.f32.mxu0 %vm1066_vm1, %v2320_v40 }
 0xc2b   : > { %6191 = vmatmul.mubr.msk.f32.vlgmr.msra.gmra.mrb[16].mxu0 %vm1066_vm1, %v2321_v41 }
 0xc2c   : > { %6193 = vmatprep.mubr.msk.f32.mxu0 %vm1066_vm1, %v2322_v43 }
 0xc2f   : > { %6194 = vmatmul.mubr.msk.f32.gmra.mrb[18].mxu0 %vm1066_vm1, %v2323_v44 }
 0xc30   : > { %6196 = vmatprep.mubr.msk.f32.mxu0 %vm1066_vm1, %v2324_v45 }
 0xc33   : > { %6197 = vmatmul.mubr.msk.f32.gmra.mrb[20].mxu0 %vm1066_vm1, %v2325_v22 }
 0xc34   : > { %6199 = vmatprep.mubr.msk.f32.mxu0 %vm1066_vm1, %v2326_v46 }
 0xc37   : > { %6200 = vmatmul.mubr.msk.f32.gmra.mrb[22].mxu0 %vm1066_vm1, %v2327_v47 }
 0xc38   : > { %6232 = vmatprep.mubr.msk.f32.mxu0 %vm7440_vm0, %v7441_v2 }
 0xcfe   : > { %v6192_v54 = vpop.f32.mrb[16].mxu0 }
 0xcff   : > { %v2461_v55 = vmul.f32 0.5, %v6192_v54  ;;  %v2421_v56 = vpop.f32.mrb[17].mxu0 }
 0xd00   : > { %v2460_v57 = vmul.f32 0.5, %v2421_v56 }
 0xd01   : > { %v2471_v58 = vsel %vm1453_vm2, %v2461_v55, -inf }
 0xd02   : > { %2472 = vmax.xlane.f32.xlu1 %v2471_v58  ;;  %v6195_v59 = vpop.f32.mrb[18].mxu0  ;;  %v2468_v60 = vsel %vm1453_vm2, %v2460_v57, -inf }
 0xd03   : > { %v2463_v61 = vmul.f32 0.5, %v6195_v59  ;;  %2469 = vmax.xlane.f32.xlu0 %v2468_v60  ;;  %v2431_v62 = vpop.f32.mrb[19].mxu0 }
 0xd04   : > { %v2462_v63 = vmul.f32 0.5, %v2431_v62 }
 0xd05   : > { %v2477_v3 = vsel %vm1453_vm2, %v2463_v61, -inf }
 0xd06   : > { %2478 = vmax.xlane.f32.xlu1 %v2477_v3  ;;  %v6198_v4 = vpop.f32.mrb[20].mxu0  ;;  %v2474_v13 = vsel %vm1453_vm2, %v2462_v63, -inf }
 0xd07   : > { %v2465_v5 = vmul.f32 0.5, %v6198_v4  ;;  %2475 = vmax.xlane.f32.xlu0 %v2474_v13  ;;  %v2441_v6 = vpop.f32.mrb[21].mxu0  ;;  %v5676_v4 = vld [vmem:[%s8787_s15 + $0x1] ss:$0 sm:$0xff]  ;;  %v2316_v13 = vpop.f32.mrb[18].mxu1 }
 0xd08   : > { %v2464_v7 = vmul.f32 0.5, %v2441_v6  ;;  %v6187_v6 = vpop.f32.mrb[19].mxu1 }
 0xd09   : > { %v2483_v8 = vsel %vm1453_vm2, %v2465_v5, -inf }
 0xd0a   : > { %2484 = vmax.xlane.f32.xlu1 %v2483_v8  ;;  %v6201_v10 = vpop.f32.mrb[22].mxu0  ;;  %v2480_v11 = vsel %vm1453_vm2, %v2464_v7, -inf }
 0xd0b   : > { %v2467_v12 = vmul.f32 0.5, %v6201_v10  ;;  %2481 = vmax.xlane.f32.xlu0 %v2480_v11  ;;  %v2451_v14 = vpop.f32.mrb[23].mxu0 }
 0xd0c   : > { %v2466_v15 = vmul.f32 0.5, %v2451_v14 }
 0xd0d   : > { %v2489_v16 = vsel %vm1453_vm2, %v2467_v12, -inf }
 0xd0e   : > { %2490 = vmax.xlane.f32.xlu1 %v2489_v16  ;;  %v2486_v17 = vsel %vm1453_vm2, %v2466_v15, -inf }
 0xd0f   : > { %2487 = vmax.xlane.f32.xlu0 %v2486_v17 }
 0xd8f   : > { %v2473_v18 = vpop.xlane.xlu1 %2472 }
 0xd90   : > { %v2493_v19 = vsub.f32 %v2461_v55, %v2473_v18  ;;  %v2470_v20 = vpop.xlane.xlu0 %2469 }
 0xd91   : > { %v2492_v21 = vsub.f32 %v2460_v57, %v2470_v20 }
 0xd92   : > { %v2502_v23 = vmul.f32 1.442695, %v2493_v19 }
 0xd93   : > { %v2500_v24 = vmul.f32 1.442695, %v2492_v21  ;;  %v2479_v25 = vpop.xlane.xlu1 %2478 }
 0xd94   : > { %6893 = vpow2.f32 %v2502_v23  ;;  %v2495_v27 = vsub.f32 %v2463_v61, %v2479_v25  ;;  %v2476_v28 = vpop.xlane.xlu0 %2475 }
 0xd95   : > { %6895 = vpow2.f32 %v2500_v24  ;;  %v2494_v29 = vsub.f32 %v2462_v63, %v2476_v28 }
 0xd96   : > { %v2506_v32 = vmul.f32 1.442695, %v2495_v27 }
 0xd97   : > { %v2504_v9 = vmul.f32 1.442695, %v2494_v29  ;;  %v2485_v33 = vpop.xlane.xlu1 %2484 }
 0xd98   : > { %6897 = vpow2.f32 %v2506_v32  ;;  %v2497_v36 = vsub.f32 %v2465_v5, %v2485_v33  ;;  %v2482_v37 = vpop.xlane.xlu0 %2481  ;;  %v2317_v5 = vadd.f32 %v5676_v4, %v2316_v13 }
 0xd99   : > { %6899 = vpow2.f32 %v2504_v9  ;;  %v2496_v40 = vsub.f32 %v2464_v7, %v2482_v37 }
 0xd9a   : > { %v2510_v41 = vmul.f32 1.442695, %v2497_v36  ;;  %6202 = vmatprep.subr.mxu1 %v2317_v5 }
 0xd9b   : > { %v2508_v43 = vmul.f32 1.442695, %v2496_v40  ;;  %v2491_v44 = vpop.xlane.xlu1 %2490  ;;  %6203 = vmatpush3.msra.mxu1 %v2317_v5  ;;  %v2764_v40 = vld [vmem:[#allocation14 + $0x20] sm:$0xff] }
 0xd9c   : > { %6901 = vpow2.f32 %v2510_v41  ;;  %v2499_v45 = vsub.f32 %v2467_v12, %v2491_v44  ;;  %v2488_v22 = vpop.xlane.xlu0 %2487  ;;  %6572 = vmatprep.subr.bf16.mxu1 %v7439_v1  ;;  %v2765_v41 = vld [vmem:[#allocation14 + $0x28] sm:$0xff] }
 0xd9d   : > { %6903 = vpow2.f32 %v2508_v43  ;;  %v2498_v46 = vsub.f32 %v2466_v15, %v2488_v22  ;;  %v2766_v43 = vld [vmem:[#allocation14 + $0x30] sm:$0xff]  ;;  %v6573_v44 = vpack.c.bf16 %v2765_v41, %v2764_v40  ;;  %v5704_v40 = vld [vmem:[%s8790_s26 + $0x1] ss:$0 sm:$0xff]  ;;  %v3174_v41 = vld [vmem:[#allocation11 + $0x40] sm:$0xff] }
 0xd9e   : > { %v6894_v47 = vpop.eup %6893  ;;  %v2514_v48 = vmul.f32 1.442695, %v2499_v45  ;;  %v2767_v45 = vld [vmem:[#allocation14 + $0x38] sm:$0xff] }
 0xd9f   : > { %v6896_v49 = vpop.eup %6895  ;;  %v2512_v50 = vmul.f32 1.442695, %v2498_v46  ;;  %v2519_v51 = vsel %vm1453_vm2, %v6894_v47, 0.0  ;;  %v6576_v22 = vpack.c.bf16 %v2767_v45, %v2766_v43  ;;  %v3175_v43 = vld [vmem:[#allocation11 + $0x48] sm:$0xff] }
 0xda0   : > { %6905 = vpow2.f32 %v2514_v48  ;;  %2520 = vadd.xlane.f32.xlu1 %v2519_v51  ;;  %v2516_v52 = vsel %vm1453_vm2, %v6896_v49, 0.0 }
 0xda1   : > { %6907 = vpow2.f32 %v2512_v50  ;;  %2517 = vadd.xlane.f32.xlu0 %v2516_v52 }
 0xda2   : > { %v6898_v53 = vpop.eup %6897 }
 0xda3   : > { %v6900_v54 = vpop.eup %6899  ;;  %v2525_v55 = vsel %vm1453_vm2, %v6898_v53, 0.0 }
 0xda4   : > { %2526 = vadd.xlane.f32.xlu1 %v2525_v55  ;;  %v2522_v56 = vsel %vm1453_vm2, %v6900_v54, 0.0 }
 0xda5   : > { %2523 = vadd.xlane.f32.xlu0 %v2522_v56 }
 0xda6   : > { %v6902_v57 = vpop.eup %6901 }
 0xda7   : > { %v6904_v58 = vpop.eup %6903  ;;  %v2531_v59 = vsel %vm1453_vm2, %v6902_v57, 0.0 }
 0xda8   : > { %2532 = vadd.xlane.f32.xlu1 %v2531_v59  ;;  %v2528_v60 = vsel %vm1453_vm2, %v6904_v58, 0.0 }
 0xda9   : > { %2529 = vadd.xlane.f32.xlu0 %v2528_v60 }
 0xdaa   : > { %v6906_v61 = vpop.eup %6905 }
 0xdab   : > { %v6908_v62 = vpop.eup %6907  ;;  %v2537_v63 = vsel %vm1453_vm2, %v6906_v61, 0.0 }
 0xdac   : > { %2538 = vadd.xlane.f32.xlu1 %v2537_v63  ;;  %v2534_v3 = vsel %vm1453_vm2, %v6908_v62, 0.0 }
 0xdad   : > { %2535 = vadd.xlane.f32.xlu0 %v2534_v3 }
 0xe2d   : > { %v2521_v7 = vpop.xlane.xlu1 %2520 }
 0xe2e   : > { %6909 = vrcp.f32 %v2521_v7  ;;  %v2518_v8 = vpop.xlane.xlu0 %2517 }
 0xe2f   : > { %6911 = vrcp.f32 %v2518_v8 }
 0xe31   : > { %v2527_v10 = vpop.xlane.xlu1 %2526 }
 0xe32   : > { %6913 = vrcp.f32 %v2527_v10  ;;  %v2524_v11 = vpop.xlane.xlu0 %2523 }
 0xe33   : > { %6915 = vrcp.f32 %v2524_v11  ;;  %v2882_v11 = vld [vmem:[#allocation16 + $0x20] sm:$0xff] }
 0xe35   : > { %v2533_v12 = vpop.xlane.xlu1 %2532 }
 0xe36   : > { %6917 = vrcp.f32 %v2533_v12  ;;  %v2530_v14 = vpop.xlane.xlu0 %2529  ;;  %v2883_v12 = vld [vmem:[#allocation16 + $0x28] sm:$0xff] }
 0xe37   : > { %6919 = vrcp.f32 %v2530_v14  ;;  %v6579_v14 = vpack.c.bf16 %v2883_v12, %v2882_v11  ;;  %v5718_v12 = vld [vmem:[%s8786_s14 + $0x40] sm:$0xff] }
 0xe38   : > { %v6910_v15 = vpop.eup %6909 }
 0xe39   : > { %v6912_v16 = vpop.eup %6911  ;;  %v2539_v17 = vpop.xlane.xlu1 %2538  ;;  %v2549_v20 = vmul.f32 %v6910_v15, %v6894_v47  ;;  %v2884_v15 = vld [vmem:[#allocation16 + $0x30] sm:$0xff] }
 0xe3a   : > { %6921 = vrcp.f32 %v2539_v17  ;;  %v2536_v18 = vpop.xlane.xlu0 %2535  ;;  %v2548_v19 = vmul.f32 %v6912_v16, %v6896_v49  ;;  %v8253_v49 = vld [vmem:[%s8785_s17] sm:$0xff]  ;;  %v2885_v16 = vld [vmem:[#allocation16 + $0x38] sm:$0xff] }
 0xe3b   : > { %6923 = vrcp.f32 %v2536_v18  ;;  %v6582_v17 = vpack.c.bf16 %v2885_v16, %v2884_v15  ;;  %v2969_v18 = vld [vmem:[#allocation17 + $0x20] sm:$0xff] }
 0xe3c   : > { %v6914_v21 = vpop.eup %6913  ;;  %6204 = vmatprep.mubr.msk.f32.mxu1 %vm1453_vm2, %v2548_v19  ;;  %v2970_v19 = vld [vmem:[#allocation17 + $0x28] sm:$0xff] }
 0xe3d   : > { %v6916_v23 = vpop.eup %6915  ;;  %6205 = vmatmul.mubr.msk.f32.vlgmr.msra.gmra.mrb[20].mxu1 %vm1453_vm2, %v2549_v20  ;;  %v2551_v25 = vmul.f32 %v6914_v21, %v6898_v53  ;;  %v6585_v20 = vpack.c.bf16 %v2970_v19, %v2969_v18  ;;  %v5720_v19 = vld [vmem:[%s8786_s14 + $0x50] sm:$0xff] }
 0xe3e   : > { %v2550_v24 = vmul.f32 %v6916_v23, %v6900_v54  ;;  %6574 = vmatpush3.bf16.msra.mxu1 %v6573_v44 }
 0xe3f   : > { %6575 = vmatprep.subr.bf16.mxu1 %v7439_v1 }
 0xe40   : > { %v6918_v27 = vpop.eup %6917  ;;  %6207 = vmatprep.mubr.msk.f32.mxu1 %vm1453_vm2, %v2550_v24 }
 0xe41   : > { %v6920_v28 = vpop.eup %6919  ;;  %6208 = vmatmul.mubr.msk.f32.gmra.mrb[22].mxu1 %vm1453_vm2, %v2551_v25  ;;  %v2553_v32 = vmul.f32 %v6918_v27, %v6902_v57  ;;  %v5701_v27 = vld [vmem:[%s8683_s13 + $0x1] ss:$0 sm:$0xff] }
 0xe42   : > { %v2552_v29 = vmul.f32 %v6920_v28, %v6904_v58  ;;  %6577 = vmatpush3.bf16.msra.mxu1 %v6576_v22 }
 0xe43   : > { %6584 = vmatprep.subr.bf16.mxu1 %v7439_v1 }
 0xe44   : > { %v6922_v9 = vpop.eup %6921  ;;  %6210 = vmatprep.mubr.msk.f32.mxu1 %vm1453_vm2, %v2552_v29  ;;  %v5702_v29 = vld [vmem:[%s8789_s12 + $0x1] ss:$0 sm:$0xff] }
 0xe45   : > { %v6924_v33 = vpop.eup %6923  ;;  %6211 = vmatmul.mubr.msk.f32.gmra.mrb[24].mxu1 %vm1453_vm2, %v2553_v32  ;;  %v2555_v37 = vmul.f32 %v6922_v9, %v6906_v61 }
 0xe46   : > { %v2554_v36 = vmul.f32 %v6924_v33, %v6908_v62  ;;  %v2971_v33 = vld [vmem:[#allocation17 + $0x30] sm:$0xff] }
 0xe48   : > { %6213 = vmatprep.mubr.msk.f32.mxu1 %vm1453_vm2, %v2554_v36  ;;  %v2972_v36 = vld [vmem:[#allocation17 + $0x38] sm:$0xff] }
 0xe49   : > { %6214 = vmatmul.mubr.msk.f32.gmra.mrb[26].mxu1 %vm1453_vm2, %v2555_v37  ;;  %v6588_v37 = vpack.c.bf16 %v2972_v36, %v2971_v33  ;;  %v5723_v33 = vld [vmem:[%s8787_s15 + $0x2] ss:$0 sm:$0xff] }
 0xe4a   : > { %6243 = vmatprep.mubr.msk.f32.mxu1 %vm7440_vm0, %v7441_v2 }
 0xf10   : > { %v6206_v46 = vpop.f32.mrb[20].mxu1 }
 0xf11   : > { %v2686_v47 = vmul.f32 %v6206_v46, %v8012_v30  ;;  %v2646_v48 = vpop.f32.mrb[21].mxu1  ;;  %v6597_v46 = vpack.c.bf16 %v3175_v43, %v3174_v41 }
 0xf12   : > { %v2685_v50 = vmul.f32 %v8253_v49, %v2646_v48  ;;  %v3176_v48 = vld [vmem:[#allocation11 + $0x50] sm:$0xff] }
 0xf14   : > { %v6561_v51 = vpack.c.bf16 %v2686_v47, %v2685_v50  ;;  %v6209_v52 = vpop.f32.mrb[22].mxu1  ;;  %v3177_v50 = vld [vmem:[#allocation11 + $0x58] sm:$0xff] }
 0xf15   : > { %v2688_v53 = vmul.f32 %v6209_v52, %v8027_v34  ;;  %v2656_v54 = vpop.f32.mrb[23].mxu1  ;;  %v5707_v52 = vld [vmem:[%s8791_s7 + $0x1] ss:$0 sm:$0xff] }
 0xf16   : > { %v2687_v55 = vmul.f32 %v2656_v54, %v8018_v31  ;;  %6562 = vmatpush3.bf16.msra.mxu0 %v6561_v51  ;;  %v6600_v51 = vpack.c.bf16 %v3177_v50, %v3176_v48  ;;  %v8395_v50 = vld [vmem:[%s8785_s17 + $0x38] sm:$0xff] }
 0xf17   : > { %6563 = vmatprep.subr.bf16.mxu0 %v7439_v1 }
 0xf18   : > { %v6564_v56 = vpack.c.bf16 %v2688_v53, %v2687_v55  ;;  %v6212_v30 = vpop.f32.mrb[24].mxu1 }
 0xf19   : > { %v2690_v57 = vmul.f32 %v6212_v30, %v8041_v38  ;;  %v2666_v58 = vpop.f32.mrb[25].mxu1 }
 0xf1a   : > { %v2689_v59 = vmul.f32 %v2666_v58, %v8033_v35  ;;  %6565 = vmatpush3.bf16.msra.mxu0 %v6564_v56 }
 0xf1b   : > { %6566 = vmatprep.subr.bf16.mxu0 %v7439_v1 }
 0xf1c   : > { %v6567_v60 = vpack.c.bf16 %v2690_v57, %v2689_v59  ;;  %v6215_v61 = vpop.f32.mrb[26].mxu1  ;;  %v5716_v57 = vld [vmem:[#allocation13 + $0x2] ss:$0 sm:$0xff] }
 0xf1d   : > { %v2692_v34 = vmul.f32 %v6215_v61, %v8055_v42  ;;  %v2676_v62 = vpop.f32.mrb[27].mxu1 }
 0xf1e   : > { %v2691_v31 = vmul.f32 %v2676_v62, %v8047_v39  ;;  %6568 = vmatpush3.bf16.msra.mxu0 %v6567_v60  ;;  %v5697_v39 = vld [vmem:[%s8788_s4 + $0x1] ss:$0 sm:$0xff] }
 0xf1f   : > { %6569 = vmatprep.subr.bf16.mxu0 %v7439_v1 }
 0xf20   : > { %v6570_v63 = vpack.c.bf16 %v2692_v34, %v2691_v31 }
 0xf22   : > { %6571 = vmatpush3.bf16.msra.mxu0 %v6570_v63 }
 0xf23   : > { %6578 = vmatprep.subr.bf16.mxu0 %v7439_v1 }
 0xf25   : > { %6233 = vmatmul.mubr.msk.f32.vlgmr.msra.gmra.mrb[24].mxu0 %vm1679_vm3, %v8120_v0 }
 0xf26   : > { %6254 = vmatprep.mubr.msk.f32.mxu0 %vm7440_vm0, %v7441_v2  ;;  %6580 = vmatpush3.bf16.msra.mxu0 %v6579_v14  ;;  %v5719_v14 = vld [vmem:[%s8786_s14 + $0x48] sm:$0xff] }
 0xf27   : > { %6581 = vmatprep.subr.bf16.mxu0 %v7439_v1  ;;  %v6603_v16 = vpack.c.bf16 %v5719_v14, %v5718_v12 }
 0xf2a   : > { %6583 = vmatpush3.bf16.msra.mxu0 %v6582_v17  ;;  %v8323_v17 = vld [vmem:[#allocation7] sm:$0xff] }
 0xf2b   : > { %6590 = vmatprep.subr.bf16.mxu0 %v7439_v1 }
 0xff8   : > { %v2759_v35 = vpop.f32.mrb[24].mxu0 }
 0xff9   : > { %v6234_v38 = vpop.f32.mrb[25].mxu0  ;;  %6244 = vmatmul.mubr.msk.f32.vlgmr.msra.gmra.mrb[28].mxu1 %vm1066_vm1, %v2759_v35  ;;  %v3088_v35 = vld [vmem:[#allocation10 + $0x40] sm:$0xff] }
 0xffa   : > { %6265 = vmatprep.mubr.msk.f32.mxu1 %vm7440_vm0, %v7441_v2  ;;  %6586 = vmatpush3.bf16.msra.mxu1 %v6585_v20  ;;  %v3089_v38 = vld [vmem:[#allocation10 + $0x48] sm:$0xff] }
 0xffb   : > { %6587 = vmatprep.subr.bf16.mxu1 %v7439_v1  ;;  %v5721_v20 = vld [vmem:[%s8786_s14 + $0x58] sm:$0xff] }
 0xffe   : > { %6589 = vmatpush3.bf16.msra.mxu1 %v6588_v37  ;;  %v8366_v37 = vld [vmem:[%s8785_s17 + $0x18] sm:$0xff] }
 0xfff   : > { %6596 = vmatprep.subr.bf16.mxu1 %v7439_v1 }
0x10cc   : > { %v2845_v42 = vpop.f32.mrb[28].mxu1 }
0x10cd   : > { %v2846_v3 = vadd.f32 %v5697_v39, %v2845_v42  ;;  %v6245_v4 = vpop.f32.mrb[29].mxu1  ;;  %v6591_v39 = vpack.c.bf16 %v3089_v38, %v3088_v35  ;;  %v3090_v42 = vld [vmem:[#allocation10 + $0x50] sm:$0xff] }
0x10cf   : > { %v2849_v13 = vadd.f32 %v2846_v3, %v8172_v26  ;;  %v3091_v3 = vld [vmem:[#allocation10 + $0x58] sm:$0xff] }
0x10d0   : > { %v6594_v4 = vpack.c.bf16 %v3091_v3, %v3090_v42 }
0x10d1   : > { %v2854_v0 = vsel %vm1066_vm1, %v2849_v13, 0.0 }
0x10d2   : > { %2855 = vadd.xlane.f32.xlu0 %v2854_v0 }
0x115f   : > { %v2856_v5 = vpop.xlane.xlu0 %2855 }
0x1160   : > { %v2857_v6 = vmul.f32 0.03125, %v2856_v5 }
0x1162   : > { %v2858_v7 = vsub.f32 %v2849_v13, %v2857_v6 }
0x1164   : > { %v2859_v8 = vmul.f32 %v2858_v7, %v2858_v7 }
0x1166   : > { %v2860_v10 = vsel %vm1066_vm1, %v2859_v8, 0.0 }
0x1167   : > { %2861 = vadd.xlane.f32.xlu1 %v2860_v10  ;;  %v5712_v10 = vld [vmem:[%s8793_s5 + $0x1] ss:$0 sm:$0xff] }
0x11f4   : > { %v2862_v21 = vpop.xlane.xlu1 %2861 }
0x11f5   : > { %v2863_v23 = vmul.f32 0.03125, %v2862_v21  ;;  %v6606_v21 = vpack.c.bf16 %v5721_v20, %v5720_v19 }
0x11f7   : > { %v2864_v24 = vadd.f32 1e-05, %v2863_v23  ;;  %v5714_v23 = vld [vmem:[%s8784_s2 + $0x2] ss:$0 sm:$0xff] }
0x11f9   : > { %6925 = vrsqrt.f32 %v2864_v24 }
0x1203   : > { %v6926_v25 = vpop.eup %6925 }
0x1204   : > { %v2866_v28 = vmul.f32 %v6926_v25, %v2858_v7  ;;  %v5711_v7 = vld [vmem:[%s8792_s25 + $0x1] ss:$0 sm:$0xff] }
0x1206   : > { %v2873_v32 = vmul.f32 %v5701_v27, %v2866_v28 }
0x1208   : > { %v2880_v9 = vadd.f32 %v5702_v29, %v2873_v32  ;;  %v8348_v29 = vld [vmem:[%s8785_s17 + $0x8] sm:$0xff] }
0x120a   : > { %6255 = vmatmul.mubr.msk.f32.vlgmr.msra.gmra.mrb[26].mxu0 %vm1066_vm1, %v2880_v9 }
0x120b   : > { %6276 = vmatprep.mubr.msk.f32.mxu0 %vm7440_vm0, %v7441_v2  ;;  %6592 = vmatpush3.bf16.msra.mxu0 %v6591_v39 }
0x120c   : > { %6593 = vmatprep.subr.bf16.mxu0 %v7439_v1 }
0x120f   : > { %6595 = vmatpush3.bf16.msra.mxu0 %v6594_v4 }
0x1210   : > { %6602 = vmatprep.subr.bf16.mxu0 %v7439_v1 }
0x12dd   : > { %v2963_v44 = vpop.f32.mrb[26].mxu0 }
0x12de   : > { %v2964_v45 = vadd.f32 %v5704_v40, %v2963_v44  ;;  %v6256_v22 = vpop.f32.mrb[27].mxu0  ;;  %v8372_v44 = vld [vmem:[%s8785_s17 + $0x20] sm:$0xff] }
0x12df   : > { %v8380_v22 = vld [vmem:[%s8785_s17 + $0x28] sm:$0xff] }
0x12e0   : > { %v2967_v47 = vmax.f32 %v2964_v45, 0.0 }
0x12e2   : > { %6266 = vmatmul.mubr.msk.f32.vlgmr.msra.gmra.mrb[30].mxu1 %vm1066_vm1, %v2967_v47  ;;  %v8386_v47 = vld [vmem:[%s8785_s17 + $0x30] sm:$0xff] }
0x12e3   : > { %6598 = vmatpush3.bf16.msra.mxu1 %v6597_v46  ;;  %6287 = vmatprep.mubr.msk.f32.mxu1 %vm7440_vm0, %v7441_v2 }
0x12e4   : > { %6599 = vmatprep.subr.bf16.mxu1 %v7439_v1 }
0x12e7   : > { %6601 = vmatpush3.bf16.msra.mxu1 %v6600_v51 }
0x12ea   : > { %6288 = vmatmul.mubr.msk.f32.vlgmr.msra.gmra.mrb[32].mxu1 %vm1066_vm1, %v8172_v26 }
0x13b5   : > { %v3050_v53 = vpop.f32.mrb[30].mxu1 }
0x13b6   : > { %v3051_v54 = vadd.f32 %v5707_v52, %v3050_v53  ;;  %v6267_v55 = vpop.f32.mrb[31].mxu1 }
0x13b8   : > { %v3054_v56 = vadd.f32 %v3051_v54, %v2880_v9 }
0x13ba   : > { %v3059_v30 = vsel %vm1066_vm1, %v3054_v56, 0.0 }
0x13bb   : > { %3060 = vadd.xlane.f32.xlu0 %v3059_v30 }
0x13bd   : > { %v3252_v58 = vpop.f32.mrb[32].mxu1 }
0x13be   : > { %v3253_v59 = vadd.f32 %v5716_v57, %v3252_v58  ;;  %v6289_v60 = vpop.f32.mrb[33].mxu1 }
0x13c0   : > { %6301 = vmatprep.subr.msk.mxu1 %vm1066_vm1, %v3253_v59 }
0x13c1   : > { %6302 = vmatpush3.xpose.msk.msra.mxu1 %vm1066_vm1, %v3253_v59 }
0x13c2   : > { %6608 = vmatprep.subr.bf16.mxu1 %v7439_v1 }
0x1448   : > { %v3061_v61 = vpop.xlane.xlu0 %3060 }
0x1449   : > { %v3062_v34 = vmul.f32 0.03125, %v3061_v61 }
0x144b   : > { %v3063_v62 = vsub.f32 %v3054_v56, %v3062_v34 }
0x144d   : > { %v3064_v31 = vmul.f32 %v3063_v62, %v3063_v62 }
0x144f   : > { %v3065_v63 = vsel %vm1066_vm1, %v3064_v31, 0.0 }
0x1450   : > { %3066 = vadd.xlane.f32.xlu1 %v3065_v63 }
0x14dd   : > { %v3067_v13 = vpop.xlane.xlu1 %3066 }
0x14de   : > { %v3068_v0 = vmul.f32 0.03125, %v3067_v13 }
0x14e0   : > { %v3069_v5 = vadd.f32 1e-05, %v3068_v0 }
0x14e2   : > { %6927 = vrsqrt.f32 %v3069_v5 }
0x14ec   : > { %v6928_v6 = vpop.eup %6927 }
0x14ed   : > { %v3071_v8 = vmul.f32 %v6928_v6, %v3063_v62 }
0x14ef   : > { %v3078_v11 = vmul.f32 %v5711_v7, %v3071_v8 }
0x14f1   : > { %v3085_v15 = vadd.f32 %v5712_v10, %v3078_v11 }
0x14f3   : > { %v8326_v18 = vadd.f32 %v8323_v17, %v3085_v15 }
0x14f5   : > { %6277 = vmatmul.mubr.msk.f32.vlgmr.msra.gmra.mrb[28].mxu0 %vm1066_vm1, %v8326_v18 }
0x14f6   : > { %6604 = vmatpush3.bf16.msra.mxu0 %v6603_v16  ;;  %6298 = vmatprep.mubr.msk.f32.mxu0 %vm7440_vm0, %v7441_v2 }
0x14f7   : > { %6605 = vmatprep.subr.bf16.mxu0 %v7439_v1 }
0x14fa   : > { %6607 = vmatpush3.bf16.msra.mxu0 %v6606_v21 }
0x14fd   : > { %6299 = vmatmul.mubr.msk.f32.vlgmr.msra.gmra.mrb[30].mxu0 %vm1066_vm1, %v8172_v26  ;;  %v8355_v26 = vld [vmem:[%s8785_s17 + $0x10] sm:$0xff] }
0x15c8   : > { %v3169_v24 = vpop.f32.mrb[28].mxu0 }
0x15c9   : > { %v3170_v25 = vadd.f32 %v5714_v23, %v3169_v24  ;;  %v6278_v27 = vpop.f32.mrb[29].mxu0 }
0x15cb   : > { %v3339_v28 = vmul.f32 %v8253_v49, %v3170_v25  ;;  %v3340_v32 = vmul.f32 %v8348_v29, %v3170_v25  ;;  %v3341_v9 = vmul.f32 %v8355_v26, %v3170_v25  ;;  %v3342_v40 = vmul.f32 %v8366_v37, %v3170_v25 }
0x15cc   : > { %v3343_v45 = vmul.f32 %v8372_v44, %v3170_v25  ;;  %v3344_v46 = vmul.f32 %v8380_v22, %v3170_v25  ;;  %v3345_v48 = vmul.f32 %v8386_v47, %v3170_v25  ;;  %v3346_v51 = vmul.f32 %v8395_v50, %v3170_v25 }
0x15cd   : > { %6303 = vmatprep.mubr.msk.f32.mxu1 %vm1066_vm1, %v3339_v28 }
0x15ce   : > { %6304 = vmatmul.mubr.msk.f32.vlgmr.msra.gmra.mrb[34].mxu1 %vm1066_vm1, %v3340_v32 }
0x15cf   : > { %6306 = vmatprep.mubr.msk.f32.mxu1 %vm1066_vm1, %v3341_v9 }
0x15d0   : > { %v3335_v36 = vpop.f32.mrb[30].mxu0 }
0x15d1   : > { %v3336_v41 = vadd.f32 %v5723_v33, %v3335_v36  ;;  %v6300_v43 = vpop.f32.mrb[31].mxu0 }
0x15d2   : > { %6307 = vmatmul.mubr.msk.f32.gmra.mrb[36].mxu1 %vm1066_vm1, %v3342_v40 }
0x15d3   : > { %6315 = vmatprep.subr.mxu0 %v3336_v41  ;;  %6309 = vmatprep.mubr.msk.f32.mxu1 %vm1066_vm1, %v3343_v45 }
0x15d4   : > { %6316 = vmatpush3.msra.mxu0 %v3336_v41 }
0x15d5   : > { %6620 = vmatprep.subr.bf16.mxu0 %v7439_v1 }
0x15d6   : > { %6310 = vmatmul.mubr.msk.f32.gmra.mrb[38].mxu1 %vm1066_vm1, %v3344_v46 }
0x15d7   : > { %6312 = vmatprep.mubr.msk.f32.mxu1 %vm1066_vm1, %v3345_v48 }
0x15da   : > { %6313 = vmatmul.mubr.msk.f32.gmra.mrb[40].mxu1 %vm1066_vm1, %v3346_v51 }
0x15db   : > { %6345 = vmatprep.mubr.msk.f32.mxu1 %vm7440_vm0, %v7441_v2 }
0x16a1   : > { %v6305_v52 = vpop.f32.mrb[34].mxu1 }
0x16a2   : > { %v3480_v53 = vmul.f32 0.5, %v6305_v52  ;;  %v3440_v54 = vpop.f32.mrb[35].mxu1 }
0x16a3   : > { %v3479_v55 = vmul.f32 0.5, %v3440_v54 }
0x16a4   : > { %v3490_v56 = vsel %vm1453_vm2, %v3480_v53, -inf }
0x16a5   : > { %3491 = vmax.xlane.f32.xlu1 %v3490_v56  ;;  %v6308_v30 = vpop.f32.mrb[36].mxu1  ;;  %v3487_v57 = vsel %vm1453_vm2, %v3479_v55, -inf }
0x16a6   : > { %v3482_v58 = vmul.f32 0.5, %v6308_v30  ;;  %3488 = vmax.xlane.f32.xlu0 %v3487_v57  ;;  %v3450_v59 = vpop.f32.mrb[37].mxu1 }
0x16a7   : > { %v3481_v60 = vmul.f32 0.5, %v3450_v59 }
0x16a8   : > { %v3496_v61 = vsel %vm1453_vm2, %v3482_v58, -inf }
0x16a9   : > { %3497 = vmax.xlane.f32.xlu1 %v3496_v61  ;;  %v6311_v34 = vpop.f32.mrb[38].mxu1  ;;  %v3493_v62 = vsel %vm1453_vm2, %v3481_v60, -inf }
0x16aa   : > { %v3484_v31 = vmul.f32 0.5, %v6311_v34  ;;  %3494 = vmax.xlane.f32.xlu0 %v3493_v62  ;;  %v3460_v63 = vpop.f32.mrb[39].mxu1 }
0x16ab   : > { %v3483_v35 = vmul.f32 0.5, %v3460_v63 }
0x16ac   : > { %v3502_v38 = vsel %vm1453_vm2, %v3484_v31, -inf }
0x16ad   : > { %3503 = vmax.xlane.f32.xlu1 %v3502_v38  ;;  %v6314_v39 = vpop.f32.mrb[40].mxu1  ;;  %v3499_v42 = vsel %vm1453_vm2, %v3483_v35, -inf }
0x16ae   : > { %v3486_v3 = vmul.f32 0.5, %v6314_v39  ;;  %3500 = vmax.xlane.f32.xlu0 %v3499_v42  ;;  %v3470_v4 = vpop.f32.mrb[41].mxu1 }
0x16af   : > { %v3485_v13 = vmul.f32 0.5, %v3470_v4 }
0x16b0   : > { %v3508_v0 = vsel %vm1453_vm2, %v3486_v3, -inf }
0x16b1   : > { %3509 = vmax.xlane.f32.xlu1 %v3508_v0  ;;  %v3505_v5 = vsel %vm1453_vm2, %v3485_v13, -inf }
0x16b2   : > { %3506 = vmax.xlane.f32.xlu0 %v3505_v5 }
0x1732   : > { %v3492_v6 = vpop.xlane.xlu1 %3491 }
0x1733   : > { %v3512_v7 = vsub.f32 %v3480_v53, %v3492_v6  ;;  %v3489_v8 = vpop.xlane.xlu0 %3488 }
0x1734   : > { %v3511_v10 = vsub.f32 %v3479_v55, %v3489_v8 }
0x1735   : > { %v3521_v11 = vmul.f32 1.442695, %v3512_v7 }
0x1736   : > { %v3519_v12 = vmul.f32 1.442695, %v3511_v10  ;;  %v3498_v14 = vpop.xlane.xlu1 %3497 }
0x1737   : > { %6929 = vpow2.f32 %v3521_v11  ;;  %v3514_v15 = vsub.f32 %v3482_v58, %v3498_v14  ;;  %v3495_v16 = vpop.xlane.xlu0 %3494 }
0x1738   : > { %6931 = vpow2.f32 %v3519_v12  ;;  %v3513_v19 = vsub.f32 %v3481_v60, %v3495_v16 }
0x1739   : > { %v3525_v20 = vmul.f32 1.442695, %v3514_v15 }
0x173a   : > { %v3523_v21 = vmul.f32 1.442695, %v3513_v19  ;;  %v3504_v23 = vpop.xlane.xlu1 %3503 }
0x173b   : > { %6933 = vpow2.f32 %v3525_v20  ;;  %v3516_v24 = vsub.f32 %v3484_v31, %v3504_v23  ;;  %v3501_v25 = vpop.xlane.xlu0 %3500  ;;  %v3783_v23 = vld [vmem:[#allocation14 + $0x40] sm:$0xff] }
0x173c   : > { %6935 = vpow2.f32 %v3523_v21  ;;  %v3515_v27 = vsub.f32 %v3483_v35, %v3501_v25  ;;  %v3785_v25 = vld [vmem:[#allocation14 + $0x50] sm:$0xff] }
0x173d   : > { %v3529_v28 = vmul.f32 1.442695, %v3516_v24  ;;  %v3784_v24 = vld [vmem:[#allocation14 + $0x48] sm:$0xff] }
0x173e   : > { %v3527_v32 = vmul.f32 1.442695, %v3515_v27  ;;  %v3510_v9 = vpop.xlane.xlu1 %3509  ;;  %v6621_v27 = vpack.c.bf16 %v3784_v24, %v3783_v23  ;;  %v5748_v24 = vld [vmem:[%s8683_s13 + $0x2] ss:$0 sm:$0xff] }
0x173f   : > { %6937 = vpow2.f32 %v3529_v28  ;;  %v3518_v33 = vsub.f32 %v3486_v3, %v3510_v9  ;;  %v3507_v36 = vpop.xlane.xlu0 %3506  ;;  %v3786_v28 = vld [vmem:[#allocation14 + $0x58] sm:$0xff] }
0x1740   : > { %6939 = vpow2.f32 %v3527_v32  ;;  %v3517_v40 = vsub.f32 %v3485_v13, %v3507_v36  ;;  %v6624_v32 = vpack.c.bf16 %v3786_v28, %v3785_v25 }
0x1741   : > { %v6930_v41 = vpop.eup %6929  ;;  %v3533_v43 = vmul.f32 1.442695, %v3518_v33 }
0x1742   : > { %v6932_v45 = vpop.eup %6931  ;;  %v3531_v46 = vmul.f32 1.442695, %v3517_v40  ;;  %v3538_v48 = vsel %vm1453_vm2, %v6930_v41, 0.0 }
0x1743   : > { %6941 = vpow2.f32 %v3533_v43  ;;  %3539 = vadd.xlane.f32.xlu1 %v3538_v48  ;;  %v3535_v51 = vsel %vm1453_vm2, %v6932_v45, 0.0 }
0x1744   : > { %6943 = vpow2.f32 %v3531_v46  ;;  %3536 = vadd.xlane.f32.xlu0 %v3535_v51 }
0x1745   : > { %v6934_v52 = vpop.eup %6933 }
0x1746   : > { %v6936_v53 = vpop.eup %6935  ;;  %v3544_v54 = vsel %vm1453_vm2, %v6934_v52, 0.0 }
0x1747   : > { %3545 = vadd.xlane.f32.xlu1 %v3544_v54  ;;  %v3541_v55 = vsel %vm1453_vm2, %v6936_v53, 0.0 }
0x1748   : > { %3542 = vadd.xlane.f32.xlu0 %v3541_v55 }
0x1749   : > { %v6938_v56 = vpop.eup %6937 }
0x174a   : > { %v6940_v30 = vpop.eup %6939  ;;  %v3550_v57 = vsel %vm1453_vm2, %v6938_v56, 0.0 }
0x174b   : > { %3551 = vadd.xlane.f32.xlu1 %v3550_v57  ;;  %v3547_v58 = vsel %vm1453_vm2, %v6940_v30, 0.0 }
0x174c   : > { %3548 = vadd.xlane.f32.xlu0 %v3547_v58 }
0x174d   : > { %v6942_v59 = vpop.eup %6941 }
0x174e   : > { %v6944_v60 = vpop.eup %6943  ;;  %v3556_v61 = vsel %vm1453_vm2, %v6942_v59, 0.0 }
0x174f   : > { %3557 = vadd.xlane.f32.xlu1 %v3556_v61  ;;  %v3553_v34 = vsel %vm1453_vm2, %v6944_v60, 0.0  ;;  %v8441_v61 = vld [vmem:[#allocation8] sm:$0xff] }
0x1750   : > { %3554 = vadd.xlane.f32.xlu0 %v3553_v34 }
0x17d0   : > { %v3540_v62 = vpop.xlane.xlu1 %3539 }
0x17d1   : > { %6945 = vrcp.f32 %v3540_v62  ;;  %v3537_v31 = vpop.xlane.xlu0 %3536 }
0x17d2   : > { %6947 = vrcp.f32 %v3537_v31  ;;  %v5744_v31 = vld [vmem:[%s8788_s4 + $0x2] ss:$0 sm:$0xff] }
0x17d4   : > { %v3546_v63 = vpop.xlane.xlu1 %3545 }
0x17d5   : > { %6949 = vrcp.f32 %v3546_v63  ;;  %v3543_v35 = vpop.xlane.xlu0 %3542 }
0x17d6   : > { %6951 = vrcp.f32 %v3543_v35 }
0x17d8   : > { %v3552_v38 = vpop.xlane.xlu1 %3551 }
0x17d9   : > { %6953 = vrcp.f32 %v3552_v38  ;;  %v3549_v39 = vpop.xlane.xlu0 %3548 }
0x17da   : > { %6955 = vrcp.f32 %v3549_v39 }
0x17db   : > { %v6946_v42 = vpop.eup %6945 }
0x17dc   : > { %v6948_v3 = vpop.eup %6947  ;;  %v3558_v4 = vpop.xlane.xlu1 %3557  ;;  %v3568_v5 = vmul.f32 %v6946_v42, %v6930_v41 }
0x17dd   : > { %6957 = vrcp.f32 %v3558_v4  ;;  %v3555_v13 = vpop.xlane.xlu0 %3554  ;;  %v3567_v0 = vmul.f32 %v6948_v3, %v6932_v45 }
0x17de   : > { %6959 = vrcp.f32 %v3555_v13 }
0x17df   : > { %v6950_v6 = vpop.eup %6949  ;;  %6317 = vmatprep.mubr.msk.f32.mxu0 %vm1453_vm2, %v3567_v0 }
0x17e0   : > { %v6952_v7 = vpop.eup %6951  ;;  %6318 = vmatmul.mubr.msk.f32.vlgmr.msra.gmra.mrb[32].mxu0 %vm1453_vm2, %v3568_v5  ;;  %v3570_v10 = vmul.f32 %v6950_v6, %v6934_v52  ;;  %v3901_v6 = vld [vmem:[#allocation16 + $0x40] sm:$0xff] }
0x17e1   : > { %v3569_v8 = vmul.f32 %v6952_v7, %v6936_v53  ;;  %6622 = vmatpush3.bf16.msra.mxu0 %v6621_v27  ;;  %v3902_v7 = vld [vmem:[#allocation16 + $0x48] sm:$0xff] }
0x17e2   : > { %6623 = vmatprep.subr.bf16.mxu0 %v7439_v1  ;;  %v5749_v27 = vld [vmem:[%s8789_s12 + $0x2] ss:$0 sm:$0xff] }
0x17e3   : > { %v6954_v11 = vpop.eup %6953  ;;  %6320 = vmatprep.mubr.msk.f32.mxu0 %vm1453_vm2, %v3569_v8  ;;  %v6627_v8 = vpack.c.bf16 %v3902_v7, %v3901_v6  ;;  %v4110_v6 = vld [vmem:[#allocation10 + $0x78] sm:$0xff] }
0x17e4   : > { %v6956_v12 = vpop.eup %6955  ;;  %6321 = vmatmul.mubr.msk.f32.gmra.mrb[34].mxu0 %vm1453_vm2, %v3570_v10  ;;  %v3572_v15 = vmul.f32 %v6954_v11, %v6938_v56  ;;  %v3903_v10 = vld [vmem:[#allocation16 + $0x50] sm:$0xff]  ;;  %v3904_v11 = vld [vmem:[#allocation16 + $0x58] sm:$0xff] }
0x17e5   : > { %v3571_v14 = vmul.f32 %v6956_v12, %v6940_v30  ;;  %6625 = vmatpush3.bf16.msra.mxu0 %v6624_v32  ;;  %v6630_v12 = vpack.c.bf16 %v3904_v11, %v3903_v10 }
0x17e6   : > { %6632 = vmatprep.subr.bf16.mxu0 %v7439_v1 }
0x17e7   : > { %v6958_v16 = vpop.eup %6957  ;;  %6323 = vmatprep.mubr.msk.f32.mxu0 %vm1453_vm2, %v3571_v14  ;;  %v3988_v14 = vld [vmem:[#allocation17 + $0x40] sm:$0xff] }
0x17e8   : > { %v6960_v19 = vpop.eup %6959  ;;  %6324 = vmatmul.mubr.msk.f32.gmra.mrb[36].mxu0 %vm1453_vm2, %v3572_v15  ;;  %v3574_v21 = vmul.f32 %v6958_v16, %v6942_v59  ;;  %v3989_v15 = vld [vmem:[#allocation17 + $0x48] sm:$0xff] }
0x17e9   : > { %v3573_v20 = vmul.f32 %v6960_v19, %v6944_v60  ;;  %v6633_v16 = vpack.c.bf16 %v3989_v15, %v3988_v14  ;;  %v5758_v14 = vld [vmem:[%s8792_s25 + $0x2] ss:$0 sm:$0xff] }
0x17eb   : > { %6326 = vmatprep.mubr.msk.f32.mxu0 %vm1453_vm2, %v3573_v20 }
0x17ec   : > { %6327 = vmatmul.mubr.msk.f32.gmra.mrb[38].mxu0 %vm1453_vm2, %v3574_v21 }
0x17ed   : > { %6356 = vmatprep.mubr.msk.f32.mxu0 %vm7440_vm0, %v7441_v2 }
0x18b3   : > { %v6319_v9 = vpop.f32.mrb[32].mxu0 }
0x18b4   : > { %v3705_v33 = vmul.f32 %v8348_v29, %v6319_v9  ;;  %v3665_v36 = vpop.f32.mrb[33].mxu0  ;;  %v3990_v9 = vld [vmem:[#allocation17 + $0x50] sm:$0xff] }
0x18b5   : > { %v3704_v40 = vmul.f32 %v8253_v49, %v3665_v36 }
0x18b7   : > { %v6609_v41 = vpack.c.bf16 %v3705_v33, %v3704_v40  ;;  %v6322_v43 = vpop.f32.mrb[34].mxu0  ;;  %v3991_v33 = vld [vmem:[#allocation17 + $0x58] sm:$0xff]  ;;  %v5751_v40 = vld [vmem:[%s8790_s26 + $0x2] ss:$0 sm:$0xff] }
0x18b8   : > { %v3707_v45 = vmul.f32 %v8366_v37, %v6322_v43  ;;  %v3675_v46 = vpop.f32.mrb[35].mxu0  ;;  %v6636_v36 = vpack.c.bf16 %v3991_v33, %v3990_v9  ;;  %v4194_v43 = vld [vmem:[#allocation11 + $0x68] sm:$0xff] }
0x18b9   : > { %v3706_v48 = vmul.f32 %v8355_v26, %v3675_v46  ;;  %6610 = vmatpush3.bf16.msra.mxu1 %v6609_v41  ;;  %v4193_v41 = vld [vmem:[#allocation11 + $0x60] sm:$0xff] }
0x18ba   : > { %6611 = vmatprep.subr.bf16.mxu1 %v7439_v1 }
0x18bb   : > { %v6612_v51 = vpack.c.bf16 %v3707_v45, %v3706_v48  ;;  %v6325_v52 = vpop.f32.mrb[36].mxu0 }
0x18bc   : > { %v3709_v53 = vmul.f32 %v8380_v22, %v6325_v52  ;;  %v3685_v54 = vpop.f32.mrb[37].mxu0 }
0x18bd   : > { %v3708_v55 = vmul.f32 %v8372_v44, %v3685_v54  ;;  %6613 = vmatpush3.bf16.msra.mxu1 %v6612_v51  ;;  %v6645_v51 = vpack.c.bf16 %v4194_v43, %v4193_v41  ;;  %v4196_v54 = vld [vmem:[#allocation11 + $0x78] sm:$0xff] }
0x18be   : > { %6614 = vmatprep.subr.bf16.mxu1 %v7439_v1 }
0x18bf   : > { %v6615_v56 = vpack.c.bf16 %v3709_v53, %v3708_v55  ;;  %v6328_v30 = vpop.f32.mrb[38].mxu0  ;;  %v4195_v53 = vld [vmem:[#allocation11 + $0x70] sm:$0xff] }
0x18c0   : > { %v3711_v57 = vmul.f32 %v8395_v50, %v6328_v30  ;;  %v3695_v58 = vpop.f32.mrb[39].mxu0  ;;  %v6648_v55 = vpack.c.bf16 %v4196_v54, %v4195_v53 }
0x18c1   : > { %v3710_v59 = vmul.f32 %v8386_v47, %v3695_v58  ;;  %6616 = vmatpush3.bf16.msra.mxu1 %v6615_v56  ;;  %v5754_v56 = vld [vmem:[%s8791_s7 + $0x2] ss:$0 sm:$0xff] }
0x18c2   : > { %6617 = vmatprep.subr.bf16.mxu1 %v7439_v1 }
0x18c3   : > { %v6618_v60 = vpack.c.bf16 %v3711_v57, %v3710_v59 }
0x18c5   : > { %6619 = vmatpush3.bf16.msra.mxu1 %v6618_v60 }
0x18c6   : > { %6626 = vmatprep.subr.bf16.mxu1 %v7439_v1 }
0x18c8   : > { %6346 = vmatmul.mubr.msk.f32.vlgmr.msra.gmra.mrb[42].mxu1 %vm1679_vm3, %v8441_v61 }
0x18c9   : > { %6367 = vmatprep.mubr.msk.f32.mxu1 %vm7440_vm0, %v7441_v2  ;;  %6628 = vmatpush3.bf16.msra.mxu1 %v6627_v8 }
0x18ca   : > { %6629 = vmatprep.subr.bf16.mxu1 %v7439_v1 }
0x18cd   : > { %6631 = vmatpush3.bf16.msra.mxu1 %v6630_v12 }
0x18ce   : > { %6638 = vmatprep.subr.bf16.mxu1 %v7439_v1 }
0x199b   : > { %v3778_v34 = vpop.f32.mrb[42].mxu1 }
0x199c   : > { %v6347_v62 = vpop.f32.mrb[43].mxu1  ;;  %6357 = vmatmul.mubr.msk.f32.vlgmr.msra.gmra.mrb[40].mxu0 %vm1066_vm1, %v3778_v34  ;;  %v5763_v34 = vld [vmem:[#allocation13 + $0x3] ss:$0 sm:$0xff] }
0x199d   : > { %6378 = vmatprep.mubr.msk.f32.mxu0 %vm7440_vm0, %v7441_v2  ;;  %6634 = vmatpush3.bf16.msra.mxu0 %v6633_v16  ;;  %v5759_v16 = vld [vmem:[%s8793_s5 + $0x2] ss:$0 sm:$0xff] }
0x199e   : > { %6635 = vmatprep.subr.bf16.mxu0 %v7439_v1 }
0x19a1   : > { %6637 = vmatpush3.bf16.msra.mxu0 %v6636_v36 }
0x19a2   : > { %6644 = vmatprep.subr.bf16.mxu0 %v7439_v1 }
0x1a6f   : > { %v3864_v63 = vpop.f32.mrb[40].mxu0 }
0x1a70   : > { %v3865_v35 = vadd.f32 %v5744_v31, %v3864_v63  ;;  %v6358_v38 = vpop.f32.mrb[41].mxu0 }
0x1a72   : > { %v3868_v39 = vadd.f32 %v3865_v35, %v8326_v18 }
0x1a74   : > { %v3873_v42 = vsel %vm1066_vm1, %v3868_v39, 0.0 }
0x1a75   : > { %3874 = vadd.xlane.f32.xlu0 %v3873_v42 }
0x1b02   : > { %v3875_v3 = vpop.xlane.xlu0 %3874 }
0x1b03   : > { %v3876_v4 = vmul.f32 0.03125, %v3875_v3 }
0x1b05   : > { %v3877_v13 = vsub.f32 %v3868_v39, %v3876_v4  ;;  %v4107_v4 = vld [vmem:[#allocation10 + $0x60] sm:$0xff] }
0x1b07   : > { %v3878_v0 = vmul.f32 %v3877_v13, %v3877_v13 }
0x1b09   : > { %v3879_v5 = vsel %vm1066_vm1, %v3878_v0, 0.0 }
0x1b0a   : > { %3880 = vadd.xlane.f32.xlu1 %v3879_v5  ;;  %v4109_v5 = vld [vmem:[#allocation10 + $0x70] sm:$0xff] }
0x1b0b   : > { %v6642_v7 = vpack.c.bf16 %v4110_v6, %v4109_v5 }
0x1b97   : > { %v3881_v19 = vpop.xlane.xlu1 %3880 }
0x1b98   : > { %v3882_v20 = vmul.f32 0.03125, %v3881_v19 }
0x1b9a   : > { %v3883_v21 = vadd.f32 1e-05, %v3882_v20  ;;  %v5765_v20 = vld [vmem:[%s8786_s14 + $0x60] sm:$0xff] }
0x1b9c   : > { %6961 = vrsqrt.f32 %v3883_v21  ;;  %v5766_v21 = vld [vmem:[%s8786_s14 + $0x68] sm:$0xff] }
0x1ba6   : > { %v6962_v23 = vpop.eup %6961 }
0x1ba7   : > { %v3885_v25 = vmul.f32 %v6962_v23, %v3877_v13  ;;  %v4108_v13 = vld [vmem:[#allocation10 + $0x68] sm:$0xff] }
0x1ba8   : > { %v6639_v0 = vpack.c.bf16 %v4108_v13, %v4107_v4 }
0x1ba9   : > { %v3892_v28 = vmul.f32 %v5748_v24, %v3885_v25  ;;  %v6651_v24 = vpack.c.bf16 %v5766_v21, %v5765_v20 }
0x1bab   : > { %v3899_v32 = vadd.f32 %v5749_v27, %v3892_v28  ;;  %v5767_v27 = vld [vmem:[%s8786_s14 + $0x70] sm:$0xff]  ;;  %v5768_v28 = vld [vmem:[%s8786_s14 + $0x78] sm:$0xff] }
0x1bad   : > { %6368 = vmatmul.mubr.msk.f32.vlgmr.msra.gmra.mrb[44].mxu1 %vm1066_vm1, %v3899_v32 }
0x1bae   : > { %6389 = vmatprep.mubr.msk.f32.mxu1 %vm7440_vm0, %v7441_v2  ;;  %6640 = vmatpush3.bf16.msra.mxu1 %v6639_v0 }
0x1baf   : > { %6641 = vmatprep.subr.bf16.mxu1 %v7439_v1 }
0x1bb2   : > { %6643 = vmatpush3.bf16.msra.mxu1 %v6642_v7 }
0x1bb3   : > { %6650 = vmatprep.subr.bf16.mxu1 %v7439_v1 }
0x1c80   : > { %v3982_v45 = vpop.f32.mrb[44].mxu1 }
0x1c81   : > { %v3983_v46 = vadd.f32 %v5751_v40, %v3982_v45  ;;  %v6369_v48 = vpop.f32.mrb[45].mxu1 }
0x1c83   : > { %v3986_v52 = vmax.f32 %v3983_v46, 0.0 }
0x1c85   : > { %6379 = vmatmul.mubr.msk.f32.vlgmr.msra.gmra.mrb[42].mxu0 %vm1066_vm1, %v3986_v52 }
0x1c86   : > { %6646 = vmatpush3.bf16.msra.mxu0 %v6645_v51  ;;  %6400 = vmatprep.mubr.msk.f32.mxu0 %vm7440_vm0, %v7441_v2 }
0x1c87   : > { %6647 = vmatprep.subr.bf16.mxu0 %v7439_v1 }
0x1c8a   : > { %6649 = vmatpush3.bf16.msra.mxu0 %v6648_v55 }
0x1c8d   : > { %6401 = vmatmul.mubr.msk.f32.vlgmr.msra.gmra.mrb[44].mxu0 %vm1066_vm1, %v8326_v18 }
0x1d58   : > { %v4069_v30 = vpop.f32.mrb[42].mxu0 }
0x1d59   : > { %v4070_v57 = vadd.f32 %v5754_v56, %v4069_v30  ;;  %v6380_v58 = vpop.f32.mrb[43].mxu0 }
0x1d5b   : > { %v4073_v59 = vadd.f32 %v4070_v57, %v3899_v32  ;;  %v6654_v32 = vpack.c.bf16 %v5768_v28, %v5767_v27 }
0x1d5d   : > { %v4078_v60 = vsel %vm1066_vm1, %v4073_v59, 0.0 }
0x1d5e   : > { %4079 = vadd.xlane.f32.xlu0 %v4078_v60 }
0x1d60   : > { %v4271_v62 = vpop.f32.mrb[44].mxu0 }
0x1d61   : > { %v4272_v31 = vadd.f32 %v5763_v34, %v4271_v62  ;;  %v6402_v63 = vpop.f32.mrb[45].mxu0 }
0x1d63   : > { %6414 = vmatprep.subr.msk.mxu0 %vm1066_vm1, %v4272_v31 }
0x1d64   : > { %6415 = vmatpush3.xpose.msk.msra.mxu0 %vm1066_vm1, %v4272_v31 }
0x1d65   : > { %6656 = vmatprep.subr.bf16.mxu0 %v7439_v1 }
0x1deb   : > { %v4080_v35 = vpop.xlane.xlu0 %4079 }
0x1dec   : > { %v4081_v38 = vmul.f32 0.03125, %v4080_v35 }
0x1dee   : > { %v4082_v39 = vsub.f32 %v4073_v59, %v4081_v38 }
0x1df0   : > { %v4083_v42 = vmul.f32 %v4082_v39, %v4082_v39 }
0x1df2   : > { %v4084_v3 = vsel %vm1066_vm1, %v4083_v42, 0.0 }
0x1df3   : > { %4085 = vadd.xlane.f32.xlu1 %v4084_v3 }
0x1e80   : > { %v4086_v8 = vpop.xlane.xlu1 %4085 }
0x1e81   : > { %v4087_v10 = vmul.f32 0.03125, %v4086_v8 }
0x1e83   : > { %v4088_v11 = vadd.f32 1e-05, %v4087_v10 }
0x1e85   : > { %6963 = vrsqrt.f32 %v4088_v11 }
0x1e8f   : > { %v6964_v12 = vpop.eup %6963 }
0x1e90   : > { %v4090_v15 = vmul.f32 %v6964_v12, %v4082_v39 }
0x1e92   : > { %v4097_v19 = vmul.f32 %v5758_v14, %v4090_v15 }
0x1e94   : > { %v8500_v23 = vadd.f32 %v5759_v16, %v4097_v19 }
0x1e96   : > { %v8504_v25 = vadd.f32 %v8323_v17, %v8500_v23  ;;  %v5761_v17 = vld [vmem:[%s8784_s2 + $0x3] ss:$0 sm:$0xff] }
0x1e98   : > { %6390 = vmatmul.mubr.msk.f32.vlgmr.msra.gmra.mrb[46].mxu1 %vm1066_vm1, %v8504_v25 }
0x1e99   : > { %6652 = vmatpush3.bf16.msra.mxu1 %v6651_v24  ;;  %6411 = vmatprep.mubr.msk.f32.mxu1 %vm7440_vm0, %v7441_v2 }
0x1e9a   : > { %6653 = vmatprep.subr.bf16.mxu1 %v7439_v1 }
0x1e9d   : > { %6655 = vmatpush3.bf16.msra.mxu1 %v6654_v32 }
0x1ea0   : > { %6412 = vmatmul.mubr.msk.f32.vlgmr.msra.gmra.mrb[48].mxu1 %vm1066_vm1, %v8326_v18  ;;  %v5770_v18 = vld [vmem:[%s8787_s15 + $0x3] ss:$0 sm:$0xff] }
0x1f6b   : > { %v4188_v9 = vpop.f32.mrb[46].mxu1 }
0x1f6c   : > { %v4189_v33 = vadd.f32 %v5761_v17, %v4188_v9  ;;  %v6391_v36 = vpop.f32.mrb[47].mxu1 }
0x1f6e   : > { %v4358_v40 = vmul.f32 %v8253_v49, %v4189_v33  ;;  %v4359_v41 = vmul.f32 %v8348_v29, %v4189_v33  ;;  %v4360_v43 = vmul.f32 %v8355_v26, %v4189_v33  ;;  %v4361_v46 = vmul.f32 %v8366_v37, %v4189_v33 }
0x1f6f   : > { %v4362_v49 = vmul.f32 %v8372_v44, %v4189_v33  ;;  %v4363_v52 = vmul.f32 %v8380_v22, %v4189_v33  ;;  %v4364_v53 = vmul.f32 %v8386_v47, %v4189_v33  ;;  %v4365_v54 = vmul.f32 %v8395_v50, %v4189_v33 }
0x1f70   : > { %6416 = vmatprep.mubr.msk.f32.mxu0 %vm1066_vm1, %v4358_v40 }
0x1f71   : > { %6417 = vmatmul.mubr.msk.f32.vlgmr.msra.gmra.mrb[46].mxu0 %vm1066_vm1, %v4359_v41 }
0x1f72   : > { %6419 = vmatprep.mubr.msk.f32.mxu0 %vm1066_vm1, %v4360_v43 }
0x1f73   : > { %v4354_v45 = vpop.f32.mrb[48].mxu1 }
0x1f74   : > { %v4355_v48 = vadd.f32 %v5770_v18, %v4354_v45  ;;  %v6413_v51 = vpop.f32.mrb[49].mxu1 }
0x1f75   : > { %6420 = vmatmul.mubr.msk.f32.gmra.mrb[48].mxu0 %vm1066_vm1, %v4361_v46 }
0x1f76   : > { %6428 = vmatprep.subr.mxu1 %v4355_v48  ;;  %6422 = vmatprep.mubr.msk.f32.mxu0 %vm1066_vm1, %v4362_v49 }
0x1f77   : > { %6429 = vmatpush3.msra.mxu1 %v4355_v48 }
0x1f78   : > { %6668 = vmatprep.subr.bf16.mxu1 %v7439_v1 }
0x1f79   : > { %6423 = vmatmul.mubr.msk.f32.gmra.mrb[50].mxu0 %vm1066_vm1, %v4363_v52 }
0x1f7a   : > { %6425 = vmatprep.mubr.msk.f32.mxu0 %vm1066_vm1, %v4364_v53 }
0x1f7d   : > { %6426 = vmatmul.mubr.msk.f32.gmra.mrb[52].mxu0 %vm1066_vm1, %v4365_v54 }
0x1f7e   : > { %6458 = vmatprep.mubr.msk.f32.mxu0 %vm7440_vm0, %v7441_v2 }
0x2044   : > { %v6418_v55 = vpop.f32.mrb[46].mxu0 }
0x2045   : > { %v4499_v56 = vmul.f32 0.5, %v6418_v55  ;;  %v4459_v30 = vpop.f32.mrb[47].mxu0 }
0x2046   : > { %v4498_v57 = vmul.f32 0.5, %v4459_v30 }
0x2047   : > { %v4509_v58 = vsel %vm1453_vm2, %v4499_v56, -inf }
0x2048   : > { %4510 = vmax.xlane.f32.xlu1 %v4509_v58  ;;  %v6421_v59 = vpop.f32.mrb[48].mxu0  ;;  %v4506_v60 = vsel %vm1453_vm2, %v4498_v57, -inf }
0x2049   : > { %v4501_v34 = vmul.f32 0.5, %v6421_v59  ;;  %4507 = vmax.xlane.f32.xlu0 %v4506_v60  ;;  %v4469_v62 = vpop.f32.mrb[49].mxu0 }
0x204a   : > { %v4500_v31 = vmul.f32 0.5, %v4469_v62 }
0x204b   : > { %v4515_v63 = vsel %vm1453_vm2, %v4501_v34, -inf }
0x204c   : > { %4516 = vmax.xlane.f32.xlu1 %v4515_v63  ;;  %v6424_v35 = vpop.f32.mrb[50].mxu0  ;;  %v4512_v38 = vsel %vm1453_vm2, %v4500_v31, -inf }
0x204d   : > { %v4503_v39 = vmul.f32 0.5, %v6424_v35  ;;  %4513 = vmax.xlane.f32.xlu0 %v4512_v38  ;;  %v4479_v42 = vpop.f32.mrb[51].mxu0 }
0x204e   : > { %v4502_v3 = vmul.f32 0.5, %v4479_v42 }
0x204f   : > { %v4521_v4 = vsel %vm1453_vm2, %v4503_v39, -inf }
0x2050   : > { %4522 = vmax.xlane.f32.xlu1 %v4521_v4  ;;  %v6427_v13 = vpop.f32.mrb[52].mxu0  ;;  %v4518_v0 = vsel %vm1453_vm2, %v4502_v3, -inf }
0x2051   : > { %v4505_v5 = vmul.f32 0.5, %v6427_v13  ;;  %4519 = vmax.xlane.f32.xlu0 %v4518_v0  ;;  %v4489_v6 = vpop.f32.mrb[53].mxu0 }
0x2052   : > { %v4504_v7 = vmul.f32 0.5, %v4489_v6 }
0x2053   : > { %v4527_v8 = vsel %vm1453_vm2, %v4505_v5, -inf }
0x2054   : > { %4528 = vmax.xlane.f32.xlu1 %v4527_v8  ;;  %v4524_v10 = vsel %vm1453_vm2, %v4504_v7, -inf }
0x2055   : > { %4525 = vmax.xlane.f32.xlu0 %v4524_v10 }
0x20d5   : > { %v4511_v11 = vpop.xlane.xlu1 %4510 }
0x20d6   : > { %v4531_v12 = vsub.f32 %v4499_v56, %v4511_v11  ;;  %v4508_v14 = vpop.xlane.xlu0 %4507 }
0x20d7   : > { %v4530_v15 = vsub.f32 %v4498_v57, %v4508_v14 }
0x20d8   : > { %v4540_v16 = vmul.f32 1.442695, %v4531_v12 }
0x20d9   : > { %v4538_v19 = vmul.f32 1.442695, %v4530_v15  ;;  %v4517_v20 = vpop.xlane.xlu1 %4516 }
0x20da   : > { %6965 = vpow2.f32 %v4540_v16  ;;  %v4533_v21 = vsub.f32 %v4501_v34, %v4517_v20  ;;  %v4514_v24 = vpop.xlane.xlu0 %4513 }
0x20db   : > { %6967 = vpow2.f32 %v4538_v19  ;;  %v4532_v27 = vsub.f32 %v4500_v31, %v4514_v24 }
0x20dc   : > { %v4544_v28 = vmul.f32 1.442695, %v4533_v21 }
0x20dd   : > { %v4542_v32 = vmul.f32 1.442695, %v4532_v27  ;;  %v4523_v17 = vpop.xlane.xlu1 %4522 }
0x20de   : > { %6969 = vpow2.f32 %v4544_v28  ;;  %v4535_v9 = vsub.f32 %v4503_v39, %v4523_v17  ;;  %v4520_v33 = vpop.xlane.xlu0 %4519  ;;  %v4802_v17 = vld [vmem:[#allocation14 + $0x60] sm:$0xff] }
0x20df   : > { %6971 = vpow2.f32 %v4542_v32  ;;  %v4534_v36 = vsub.f32 %v4502_v3, %v4520_v33  ;;  %v4804_v33 = vld [vmem:[#allocation14 + $0x70] sm:$0xff] }
0x20e0   : > { %v4548_v40 = vmul.f32 1.442695, %v4535_v9  ;;  %v4803_v9 = vld [vmem:[#allocation14 + $0x68] sm:$0xff] }
0x20e1   : > { %v4546_v41 = vmul.f32 1.442695, %v4534_v36  ;;  %v4529_v43 = vpop.xlane.xlu1 %4528  ;;  %v6669_v36 = vpack.c.bf16 %v4803_v9, %v4802_v17 }
0x20e2   : > { %6973 = vpow2.f32 %v4548_v40  ;;  %v4537_v18 = vsub.f32 %v4505_v5, %v4529_v43  ;;  %v4526_v45 = vpop.xlane.xlu0 %4525  ;;  %v4805_v40 = vld [vmem:[#allocation14 + $0x78] sm:$0xff] }
0x20e3   : > { %6975 = vpow2.f32 %v4546_v41  ;;  %v4536_v46 = vsub.f32 %v4504_v7, %v4526_v45  ;;  %v6672_v41 = vpack.c.bf16 %v4805_v40, %v4804_v33  ;;  %v5801_v40 = vld [vmem:[%s8791_s7 + $0x3] ss:$0 sm:$0xff] }
0x20e4   : > { %v6966_v48 = vpop.eup %6965  ;;  %v4552_v51 = vmul.f32 1.442695, %v4537_v18 }
0x20e5   : > { %v6968_v49 = vpop.eup %6967  ;;  %v4550_v52 = vmul.f32 1.442695, %v4536_v46  ;;  %v4557_v53 = vsel %vm1453_vm2, %v6966_v48, 0.0  ;;  %v7017_v46 = vld [vmem:[%s8785_s17] sm:$0xff] }
0x20e6   : > { %6977 = vpow2.f32 %v4552_v51  ;;  %4558 = vadd.xlane.f32.xlu1 %v4557_v53  ;;  %v4554_v54 = vsel %vm1453_vm2, %v6968_v49, 0.0 }
0x20e7   : > { %6979 = vpow2.f32 %v4550_v52  ;;  %4555 = vadd.xlane.f32.xlu0 %v4554_v54 }
0x20e8   : > { %v6970_v55 = vpop.eup %6969 }
0x20e9   : > { %v6972_v56 = vpop.eup %6971  ;;  %v4563_v30 = vsel %vm1453_vm2, %v6970_v55, 0.0 }
0x20ea   : > { %4564 = vadd.xlane.f32.xlu1 %v4563_v30  ;;  %v4560_v57 = vsel %vm1453_vm2, %v6972_v56, 0.0 }
0x20eb   : > { %4561 = vadd.xlane.f32.xlu0 %v4560_v57 }
0x20ec   : > { %v6974_v58 = vpop.eup %6973 }
0x20ed   : > { %v6976_v59 = vpop.eup %6975  ;;  %v4569_v60 = vsel %vm1453_vm2, %v6974_v58, 0.0 }
0x20ee   : > { %4570 = vadd.xlane.f32.xlu1 %v4569_v60  ;;  %v4566_v34 = vsel %vm1453_vm2, %v6976_v59, 0.0 }
0x20ef   : > { %4567 = vadd.xlane.f32.xlu0 %v4566_v34 }
0x20f0   : > { %v6978_v62 = vpop.eup %6977 }
0x20f1   : > { %v6980_v31 = vpop.eup %6979  ;;  %v4575_v63 = vsel %vm1453_vm2, %v6978_v62, 0.0 }
0x20f2   : > { %4576 = vadd.xlane.f32.xlu1 %v4575_v63  ;;  %v4572_v35 = vsel %vm1453_vm2, %v6980_v31, 0.0 }
0x20f3   : > { %4573 = vadd.xlane.f32.xlu0 %v4572_v35 }
0x2173   : > { %v4559_v38 = vpop.xlane.xlu1 %4558 }
0x2174   : > { %6981 = vrcp.f32 %v4559_v38  ;;  %v4556_v39 = vpop.xlane.xlu0 %4555 }
0x2175   : > { %6983 = vrcp.f32 %v4556_v39 }
0x2177   : > { %v4565_v42 = vpop.xlane.xlu1 %4564 }
0x2178   : > { %6985 = vrcp.f32 %v4565_v42  ;;  %v4562_v3 = vpop.xlane.xlu0 %4561 }
0x2179   : > { %6987 = vrcp.f32 %v4562_v3 }
0x217b   : > { %v4571_v4 = vpop.xlane.xlu1 %4570 }
0x217c   : > { %6989 = vrcp.f32 %v4571_v4  ;;  %v4568_v13 = vpop.xlane.xlu0 %4567  ;;  %v4920_v4 = vld [vmem:[#allocation16 + $0x60] sm:$0xff] }
0x217d   : > { %6991 = vrcp.f32 %v4568_v13  ;;  %v4921_v13 = vld [vmem:[#allocation16 + $0x68] sm:$0xff] }
0x217e   : > { %v6982_v0 = vpop.eup %6981 }
0x217f   : > { %v6984_v5 = vpop.eup %6983  ;;  %v4577_v6 = vpop.xlane.xlu1 %4576  ;;  %v4587_v10 = vmul.f32 %v6982_v0, %v6966_v48  ;;  %v6675_v0 = vpack.c.bf16 %v4921_v13, %v4920_v4  ;;  %v5131_v4 = vld [vmem:[#allocation19 + $0x38] sm:$0xff] }
0x2180   : > { %6993 = vrcp.f32 %v4577_v6  ;;  %v4574_v7 = vpop.xlane.xlu0 %4573  ;;  %v4586_v8 = vmul.f32 %v6984_v5, %v6968_v49  ;;  %v4922_v5 = vld [vmem:[#allocation16 + $0x70] sm:$0xff]  ;;  %v4923_v6 = vld [vmem:[#allocation16 + $0x78] sm:$0xff] }
0x2181   : > { %6995 = vrcp.f32 %v4574_v7  ;;  %v6678_v7 = vpack.c.bf16 %v4923_v6, %v4922_v5 }
0x2182   : > { %v6986_v11 = vpop.eup %6985  ;;  %6430 = vmatprep.mubr.msk.f32.mxu1 %vm1453_vm2, %v4586_v8  ;;  %v5008_v8 = vld [vmem:[#allocation17 + $0x68] sm:$0xff] }
0x2183   : > { %v6988_v12 = vpop.eup %6987  ;;  %6431 = vmatmul.mubr.msk.f32.vlgmr.msra.gmra.mrb[50].mxu1 %vm1453_vm2, %v4587_v10  ;;  %v4589_v15 = vmul.f32 %v6986_v11, %v6970_v55 }
0x2184   : > { %v4588_v14 = vmul.f32 %v6988_v12, %v6972_v56  ;;  %6670 = vmatpush3.bf16.msra.mxu1 %v6669_v36 }
0x2185   : > { %6671 = vmatprep.subr.bf16.mxu1 %v7439_v1 }
0x2186   : > { %v6990_v16 = vpop.eup %6989  ;;  %6433 = vmatprep.mubr.msk.f32.mxu1 %vm1453_vm2, %v4588_v14 }
0x2187   : > { %v6992_v19 = vpop.eup %6991  ;;  %6434 = vmatmul.mubr.msk.f32.gmra.mrb[52].mxu1 %vm1453_vm2, %v4589_v15  ;;  %v4591_v21 = vmul.f32 %v6990_v16, %v6974_v58  ;;  %v5795_v16 = vld [vmem:[%s8683_s13 + $0x3] ss:$0 sm:$0xff] }
0x2188   : > { %v4590_v20 = vmul.f32 %v6992_v19, %v6976_v59  ;;  %6673 = vmatpush3.bf16.msra.mxu1 %v6672_v41 }
0x2189   : > { %6680 = vmatprep.subr.bf16.mxu1 %v7439_v1 }
0x218a   : > { %v6994_v24 = vpop.eup %6993  ;;  %6436 = vmatprep.mubr.msk.f32.mxu1 %vm1453_vm2, %v4590_v20  ;;  %v5796_v20 = vld [vmem:[%s8789_s12 + $0x3] ss:$0 sm:$0xff] }
0x218b   : > { %v6996_v27 = vpop.eup %6995  ;;  %6437 = vmatmul.mubr.msk.f32.gmra.mrb[54].mxu1 %vm1453_vm2, %v4591_v21  ;;  %v4593_v32 = vmul.f32 %v6994_v24, %v6978_v62 }
0x218c   : > { %v4592_v28 = vmul.f32 %v6996_v27, %v6980_v31  ;;  %v5010_v27 = vld [vmem:[#allocation17 + $0x78] sm:$0xff] }
0x218e   : > { %6439 = vmatprep.mubr.msk.f32.mxu1 %vm1453_vm2, %v4592_v28 }
0x218f   : > { %6440 = vmatmul.mubr.msk.f32.gmra.mrb[56].mxu1 %vm1453_vm2, %v4593_v32  ;;  %v5798_v32 = vld [vmem:[%s8790_s26 + $0x3] ss:$0 sm:$0xff] }
0x2190   : > { %6469 = vmatprep.mubr.msk.f32.mxu1 %vm7440_vm0, %v7441_v2 }
0x2256   : > { %v6432_v43 = vpop.f32.mrb[50].mxu1 }
0x2257   : > { %v4724_v18 = vmul.f32 %v8348_v29, %v6432_v43  ;;  %v4684_v45 = vpop.f32.mrb[51].mxu1 }
0x2258   : > { %v4723_v48 = vmul.f32 %v7017_v46, %v4684_v45 }
0x225a   : > { %v6657_v51 = vpack.c.bf16 %v4724_v18, %v4723_v48  ;;  %v6435_v49 = vpop.f32.mrb[52].mxu1 }
0x225b   : > { %v4726_v52 = vmul.f32 %v8366_v37, %v6435_v49  ;;  %v4694_v53 = vpop.f32.mrb[53].mxu1 }
0x225c   : > { %v4725_v54 = vmul.f32 %v8355_v26, %v4694_v53  ;;  %6658 = vmatpush3.bf16.msra.mxu0 %v6657_v51 }
0x225d   : > { %6659 = vmatprep.subr.bf16.mxu0 %v7439_v1 }
0x225e   : > { %v6660_v55 = vpack.c.bf16 %v4726_v52, %v4725_v54  ;;  %v6438_v56 = vpop.f32.mrb[54].mxu1  ;;  %v5133_v54 = vld [vmem:[#allocation20 + $0x8] sm:$0xff] }
0x225f   : > { %v4728_v29 = vmul.f32 %v8380_v22, %v6438_v56  ;;  %v4704_v30 = vpop.f32.mrb[55].mxu1 }
0x2260   : > { %v4727_v57 = vmul.f32 %v8372_v44, %v4704_v30  ;;  %6661 = vmatpush3.bf16.msra.mxu0 %v6660_v55  ;;  %v5135_v55 = vld [vmem:[#allocation20 + $0x18] sm:$0xff]  ;;  %v5134_v30 = vld [vmem:[#allocation20 + $0x10] sm:$0xff] }
0x2261   : > { %6662 = vmatprep.subr.bf16.mxu0 %v7439_v1  ;;  %v6686_v56 = vpack.c.bf16 %v5135_v55, %v5133_v54 }
0x2262   : > { %v6663_v58 = vpack.c.bf16 %v4728_v29, %v4727_v57  ;;  %v6441_v59 = vpop.f32.mrb[56].mxu1  ;;  %v5132_v29 = vld [vmem:[#allocation20] sm:$0xff] }
0x2263   : > { %v4730_v37 = vmul.f32 %v8395_v50, %v6441_v59  ;;  %v4714_v60 = vpop.f32.mrb[57].mxu1  ;;  %v6688_v57 = vpack.c.bf16 %v5134_v30, %v5132_v29  ;;  %v5139_v59 = vld [vmem:[#allocation20 + $0x38] sm:$0xff] }
0x2264   : > { %v4729_v26 = vmul.f32 %v8386_v47, %v4714_v60  ;;  %6664 = vmatpush3.bf16.msra.mxu0 %v6663_v58  ;;  %v5791_v47 = vld [vmem:[%s8788_s4 + $0x3] ss:$0 sm:$0xff]  ;;  %v5136_v60 = vld [vmem:[#allocation20 + $0x20] sm:$0xff] }
0x2265   : > { %6665 = vmatprep.subr.bf16.mxu0 %v7439_v1  ;;  %v5137_v58 = vld [vmem:[#allocation20 + $0x28] sm:$0xff] }
0x2266   : > { %v6666_v34 = vpack.c.bf16 %v4730_v37, %v4729_v26  ;;  %v6690_v37 = vpack.c.bf16 %v5139_v59, %v5137_v58  ;;  %v5138_v26 = vld [vmem:[#allocation20 + $0x30] sm:$0xff] }
0x2268   : > { %6667 = vmatpush3.bf16.msra.mxu0 %v6666_v34  ;;  %v6692_v34 = vpack.c.bf16 %v5138_v26, %v5136_v60 }
0x2269   : > { %6674 = vmatprep.subr.bf16.mxu0 %v7439_v1 }
0x226b   : > { %6459 = vmatmul.mubr.msk.f32.vlgmr.msra.gmra.mrb[54].mxu0 %vm1679_vm3, %v8441_v61 }
0x226c   : > { %6480 = vmatprep.mubr.msk.f32.mxu0 %vm7440_vm0, %v7441_v2  ;;  %6676 = vmatpush3.bf16.msra.mxu0 %v6675_v0 }
0x226d   : > { %6677 = vmatprep.subr.bf16.mxu0 %v7439_v1 }
0x2270   : > { %6679 = vmatpush3.bf16.msra.mxu0 %v6678_v7  ;;  %v5128_v7 = vld [vmem:[#allocation19 + $0x20] sm:$0xff] }
0x2271   : > { %6687 = vmatprep.subr.bf16.mxu0 %v6686_v56 }
0x233e   : > { %v4797_v44 = vpop.f32.mrb[54].mxu0 }
0x233f   : > { %v6460_v22 = vpop.f32.mrb[55].mxu0  ;;  %6470 = vmatmul.mubr.msk.f32.vlgmr.msra.gmra.mrb[58].mxu1 %vm1066_vm1, %v4797_v44  ;;  %v5125_v44 = vld [vmem:[#allocation19 + $0x8] sm:$0xff] }
0x2340   : > { %6491 = vmatprep.mubr.msk.f32.mxu1 %vm7440_vm0, %v7441_v2  ;;  %v5127_v22 = vld [vmem:[#allocation19 + $0x18] sm:$0xff] }
0x2412   : > { %v4883_v50 = vpop.f32.mrb[58].mxu1 }
0x2413   : > { %v4884_v62 = vadd.f32 %v5791_v47, %v4883_v50  ;;  %v6471_v31 = vpop.f32.mrb[59].mxu1  ;;  %v6694_v47 = vpack.c.bf16 %v5127_v22, %v5125_v44 }
0x2415   : > { %v4887_v63 = vadd.f32 %v4884_v62, %v8504_v25  ;;  %v5007_v25 = vld [vmem:[#allocation17 + $0x60] sm:$0xff] }
0x2416   : > { %v6681_v10 = vpack.c.bf16 %v5008_v8, %v5007_v25  ;;  %v5130_v25 = vld [vmem:[#allocation19 + $0x30] sm:$0xff] }
0x2417   : > { %v4892_v61 = vsel %vm1066_vm1, %v4887_v63, 0.0  ;;  %v6700_v8 = vpack.c.bf16 %v5130_v25, %v5128_v7 }
0x2418   : > { %4893 = vadd.xlane.f32.xlu0 %v4892_v61  ;;  %6682 = vmatpush3.bf16.msra.mxu1 %v6681_v10  ;;  %v5805_v61 = vld [vmem:[%s8792_s25 + $0x3] ss:$0 sm:$0xff]  ;;  %v5290_v10 = vlaneseq }
0x2419   : > { %6683 = vmatprep.subr.bf16.mxu1 %v7439_v1  ;;  %v5009_v1 = vld [vmem:[#allocation17 + $0x70] sm:$0xff] }
0x241a   : > { %v6684_v28 = vpack.c.bf16 %v5010_v27, %v5009_v1 }
0x241c   : > { %6685 = vmatpush3.bf16.msra.mxu1 %v6684_v28 }
0x24a5   : > { %v4894_v35 = vpop.xlane.xlu0 %4893 }
0x24a6   : > { %v4895_v38 = vmul.f32 0.03125, %v4894_v35 }
0x24a8   : > { %v4896_v39 = vsub.f32 %v4887_v63, %v4895_v38  ;;  %v5124_v38 = vld [vmem:[#allocation19] sm:$0xff] }
0x24aa   : > { %v4897_v42 = vmul.f32 %v4896_v39, %v4896_v39 }
0x24ac   : > { %v4898_v3 = vsel %vm1066_vm1, %v4897_v42, 0.0  ;;  %v5806_v42 = vld [vmem:[%s8793_s5 + $0x3] ss:$0 sm:$0xff] }
0x24ad   : > { %4899 = vadd.xlane.f32.xlu1 %v4898_v3  ;;  %v5129_v3 = vld [vmem:[#allocation19 + $0x28] sm:$0xff] }
0x24ae   : > { %v6698_v6 = vpack.c.bf16 %v5131_v4, %v5129_v3 }
0x253a   : > { %v4900_v11 = vpop.xlane.xlu1 %4899 }
0x253b   : > { %v4901_v12 = vmul.f32 0.03125, %v4900_v11  ;;  %v5291_v11 = vshrl.u32 %v5290_v10, 7 }
0x253d   : > { %v4902_v14 = vadd.f32 1e-05, %v4901_v12  ;;  %v8628_v12 = vsub.s32 0, %v5291_v11 }
0x253f   : > { %6997 = vrsqrt.f32 %v4902_v14  ;;  %v5288_v14 = vld [vmem:[%s8794_s23] sm:$0x3]  ;;  %s8797_s23 = sld [smem:[#allocation54_spill]] }
0x2549   : > { %v6998_v15 = vpop.eup %6997 }
0x254a   : > { %v4904_v19 = vmul.f32 %v6998_v15, %v4896_v39  ;;  %v5126_v39 = vld [vmem:[#allocation19 + $0x10] sm:$0xff]  ;;  %v8633_v15 = vsub.s32 1, %v5291_v11 }
0x254b   : > { %v6696_v0 = vpack.c.bf16 %v5126_v39, %v5124_v38 }
0x254c   : > { %v4911_v21 = vmul.f32 %v5795_v16, %v4904_v19  ;;  %v5302_v16 = vld [vmem:[%s8795_s6] sm:$0x3]  ;;  %v5297_v19 = vrot.slane %v5288_v14, %v8633_v15 }
0x254e   : > { %v4918_v24 = vadd.f32 %v5796_v20, %v4911_v21  ;;  %v5307_v20 = vrot.slane %v5302_v16, %v8628_v12 }
0x2550   : > { %6481 = vmatmul.mubr.msk.f32.vlgmr.msra.gmra.mrb[56].mxu0 %vm1066_vm1, %v4918_v24 }
0x2551   : > { %5207 = vmatprep.mubr.f32.mxu0 %v7441_v2  ;;  %6689 = vmatpush1.bf16.msra.mxu0 %v6688_v57 }
0x2552   : > { %6691 = vmatprep.subr.bf16.mxu0 %v6690_v37 }
0x2555   : > { %6693 = vmatpush1.bf16.msra.mxu0 %v6692_v34 }
0x2556   : > { %6695 = vmatprep.subr.bf16.mxu0 %v6694_v47 }
0x2623   : > { %v5001_v17 = vpop.f32.mrb[56].mxu0 }
0x2624   : > { %v5002_v9 = vadd.f32 %v5798_v32, %v5001_v17  ;;  %v6482_v33 = vpop.f32.mrb[57].mxu0 }
0x2626   : > { %v5005_v36 = vmax.f32 %v5002_v9, 0.0 }
0x2628   : > { %6492 = vmatmul.mubr.msk.f32.vlgmr.msra.gmra.mrb[60].mxu1 %vm1066_vm1, %v5005_v36 }
0x26fb   : > { %v5088_v41 = vpop.f32.mrb[60].mxu1 }
0x26fc   : > { %v5089_v43 = vadd.f32 %v5801_v40, %v5088_v41  ;;  %v6493_v18 = vpop.f32.mrb[61].mxu1 }
0x26fe   : > { %v5092_v45 = vadd.f32 %v5089_v43, %v4918_v24  ;;  %v5311_v24 = vrot.slane %v5302_v16, %v8633_v15 }
0x2700   : > { %v5097_v46 = vsel %vm1066_vm1, %v5092_v45, 0.0 }
0x2701   : > { %5098 = vadd.xlane.f32.xlu0 %v5097_v46 }
0x278e   : > { %v5099_v48 = vpop.xlane.xlu0 %5098 }
0x278f   : > { %v5100_v51 = vmul.f32 0.03125, %v5099_v48 }
0x2791   : > { %v5101_v49 = vsub.f32 %v5092_v45, %v5100_v51 }
0x2793   : > { %v5102_v52 = vmul.f32 %v5101_v49, %v5101_v49 }
0x2795   : > { %v5103_v53 = vsel %vm1066_vm1, %v5102_v52, 0.0 }
0x2796   : > { %5104 = vadd.xlane.f32.xlu1 %v5103_v53 }
0x2823   : > { %v5105_v50 = vpop.xlane.xlu1 %5104 }
0x2824   : > { %v5106_v62 = vmul.f32 0.03125, %v5105_v50 }
0x2826   : > { %v5107_v31 = vadd.f32 1e-05, %v5106_v62 }
0x2828   : > { %6999 = vrsqrt.f32 %v5107_v31 }
0x2832   : > { %v7000_v63 = vpop.eup %6999 }
0x2833   : > { %v5109_v35 = vmul.f32 %v7000_v63, %v5101_v49 }
0x2835   : > { %v5116_v13 = vmul.f32 %v5805_v61, %v5109_v35 }
0x2837   : > { %v5123_v5 = vadd.f32 %v5806_v42, %v5116_v13 }
0x2839   : > { %5807 = vmatmul.mubr.msk.f32.vlgmr.msra.gmra.mrb[58].mxu0 %vm1066_vm1, %v5123_v5 }
0x283a   : > { %6697 = vmatpush1.bf16.msra.mxu0 %v6696_v0  ;;  %5281 = vmatprep.mubr.f32.mxu0 %v7441_v2  ;;  %v5293_v2 = vrot.slane %v5288_v14, %v8628_v12 }
0x283b   : > { %6699 = vmatprep.subr.bf16.mxu0 %v6698_v6 }
0x283e   : > { %6701 = vmatpush1.bf16.msra.mxu0 %v6700_v8 }
0x2841   : > { %5808 = vmatmul.mubr.msk.f32.vlgmr.msra.gmra.mrb[58].mxu0 %vm1066_vm1, %v8500_v23  ;;  %v5316_v23 = vld [vmem:[%s8796_s18] sm:$0x3] }
0x2842   : > { %v5321_v27 = vrot.slane %v5316_v23, %v8628_v12  ;;  %v5325_v17 = vrot.slane %v5316_v23, %v8633_v15 }
0x2914   : > { %v5283_v21 = vpop.f32.mrb[58].mxu0 }
0x2915   : > { %v5300_v1 = vadd.f32 %v5293_v2, %v5283_v21  ;;  %v5285_v28 = vpop.f32.mrb[59].mxu0 }
0x2916   : > { %v5301_v32 = vadd.f32 %v5297_v19, %v5285_v28  ;;  %v5390_v19 = vld [vmem:[%s8797_s23] sm:$0x3] }
0x2917   : > { %v5314_v9 = vmul.f32 %v5307_v20, %v5300_v1  ;;  %v5395_v28 = vrot.slane %v5390_v19, %v8628_v12 }
0x2918   : > { %v5315_v33 = vmul.f32 %v5311_v24, %v5301_v32 }
0x2919   : > { %v5328_v36 = vadd.f32 %v5321_v27, %v5314_v9  ;;  %v5399_v9 = vrot.slane %v5390_v19, %v8633_v15 }
0x291a   : > { %v5329_v40 = vadd.f32 %v5325_v17, %v5315_v33 }
0x291b   : > { %v5332_v41 = vmul.f32 0.70710677, %v5328_v36  ;;  %v5330_v1 = vmul.f32 0.5, %v5328_v36 }
0x291c   : > { %v5333_v43 = vmul.f32 0.70710677, %v5329_v40  ;;  %v5331_v32 = vmul.f32 0.5, %v5329_v40 }
0x291d   : > { %v5809_v18 = vclamps-f32 %v5332_v41, 4.0 }
0x291e   : > { %v5810_v45 = vclamps-f32 %v5333_v43, 4.0 }
0x291f   : > { %v5338_v46 = vmul.f32 %v5809_v18, %v5809_v18 }
0x2920   : > { %v5339_v48 = vmul.f32 %v5810_v45, %v5810_v45 }
0x2921   : > { %v5356_v51 = vmul.f32 -1.1791603e-07, %v5338_v46  ;;  %v5340_v49 = vmul.f32 0.00022905065, %v5338_v46 }
0x2922   : > { %v5357_v52 = vmul.f32 -1.1791603e-07, %v5339_v48  ;;  %v5341_v53 = vmul.f32 0.00022905065, %v5339_v48 }
0x2923   : > { %v5358_v54 = vadd.f32 2.3547966e-05, %v5356_v51  ;;  %v5342_v29 = vadd.f32 0.003408291, %v5340_v49 }
0x2924   : > { %v5359_v55 = vadd.f32 2.3547966e-05, %v5357_v52  ;;  %v5343_v57 = vadd.f32 0.003408291, %v5341_v53 }
0x2925   : > { %v5360_v56 = vmul.f32 %v5358_v54, %v5338_v46  ;;  %v5344_v60 = vmul.f32 %v5342_v29, %v5338_v46 }
0x2926   : > { %v5361_v30 = vmul.f32 %v5359_v55, %v5339_v48  ;;  %v5345_v34 = vmul.f32 %v5343_v57, %v5339_v48 }
0x2927   : > { %v5362_v58 = vadd.f32 0.0010179626, %v5360_v56  ;;  %v5346_v50 = vadd.f32 0.050955694, %v5344_v60 }
0x2928   : > { %v5363_v59 = vadd.f32 0.0010179626, %v5361_v30  ;;  %v5347_v31 = vadd.f32 0.050955694, %v5345_v34 }
0x2929   : > { %v5364_v37 = vmul.f32 %v5362_v58, %v5338_v46  ;;  %v5348_v38 = vmul.f32 %v5346_v50, %v5338_v46 }
0x292a   : > { %v5365_v26 = vmul.f32 %v5363_v59, %v5339_v48  ;;  %v5349_v42 = vmul.f32 %v5347_v31, %v5339_v48 }
0x292b   : > { %v5366_v44 = vadd.f32 0.01407047, %v5364_v37  ;;  %v5350_v0 = vadd.f32 0.18520832, %v5348_v38 }
0x292c   : > { %v5367_v22 = vadd.f32 0.01407047, %v5365_v26  ;;  %v5351_v6 = vadd.f32 0.18520832, %v5349_v42 }
0x292d   : > { %v5368_v47 = vmul.f32 %v5366_v44, %v5338_v46  ;;  %v5352_v8 = vmul.f32 %v5350_v0, %v5338_v46 }
0x292e   : > { %v5369_v62 = vmul.f32 %v5367_v22, %v5339_v48  ;;  %v5353_v10 = vmul.f32 %v5351_v6, %v5339_v48 }
0x292f   : > { %v5370_v63 = vadd.f32 0.11098505, %v5368_v47  ;;  %v5354_v11 = vadd.f32 1.1283791, %v5352_v8 }
0x2930   : > { %v5371_v61 = vadd.f32 0.11098505, %v5369_v62  ;;  %v5355_v14 = vadd.f32 1.1283791, %v5353_v10 }
0x2931   : > { %v5372_v35 = vmul.f32 %v5370_v63, %v5338_v46  ;;  %v5380_v16 = vmul.f32 %v5809_v18, %v5354_v11 }
0x2932   : > { %v5373_v39 = vmul.f32 %v5371_v61, %v5339_v48  ;;  %v5381_v23 = vmul.f32 %v5810_v45, %v5355_v14 }
0x2933   : > { %v5374_v3 = vadd.f32 0.49746925, %v5372_v35 }
0x2934   : > { %v5375_v4 = vadd.f32 0.49746925, %v5373_v39 }
0x2935   : > { %v5376_v13 = vmul.f32 %v5374_v3, %v5338_v46  ;;  %v5811_v46 = vld [vmem:[#allocation2] ss:$0 sm:$0xff] }
0x2936   : > { %v5377_v5 = vmul.f32 %v5375_v4, %v5339_v48 }
0x2937   : > { %v5378_v7 = vadd.f32 1.0, %v5376_v13 }
0x2938   : > { %v5379_v25 = vadd.f32 1.0, %v5377_v5 }
0x2939   : > { %7001 = vrcp.f32 %v5378_v7 }
0x293a   : > { %7003 = vrcp.f32 %v5379_v25 }
0x2943   : > { %v7002_v2 = vpop.eup %7001 }
0x2944   : > { %v7004_v20 = vpop.eup %7003  ;;  %v5383_v21 = vmul.f32 %v7002_v2, %v5380_v16 }
0x2945   : > { %v5385_v24 = vmul.f32 %v7004_v20, %v5381_v23 }
0x2946   : > { %v5386_v27 = vadd.f32 1.0, %v5383_v21 }
0x2947   : > { %v5387_v17 = vadd.f32 1.0, %v5385_v24 }
0x2948   : > { %v5388_v33 = vmul.f32 %v5386_v27, %v5330_v1 }
0x2949   : > { %v5389_v41 = vmul.f32 %v5387_v17, %v5331_v32 }
0x294a   : > { %v5402_v43 = vmul.f32 %v5395_v28, %v5388_v33 }
0x294b   : > { %v5403_v18 = vmul.f32 %v5399_v9, %v5389_v41 }
0x294d   : > { %v5404_v45 = vadd.f32 %v5403_v18, %v5402_v43 }
0x294f   : > { %5405 = vadd.xlane.f32.xlu0 %v5404_v45 }
0x29dc   : > { %v5406_v48 = vpop.xlane.xlu0 %5405 }
0x29dd   : > { %v5414_v51 = vadd.f32 %v5811_v46, %v5406_v48 }
0x29df   : > { %7005 = vtanh.f32 %v5414_v51 }
0x29e9   : > { %v7006_v12 = vpop.eup %7005 }
0x29ea   : > { %5417 = vst.msk [vmem:[%s1040_s19] sm:$0xff] %vm5416_vm4, %v7006_v12 }
0x29eb PF: > { %p48_p13 = scmp.ge.s32.totalorder %s7848_s29, 4   ;;  %s8799_s9 = smov %s7412_s30 }
0x29ec   : > { %s8800_s30 = smov %s7416_s3  ;;  %s8801_s3 = smov %s7859_s20 }
0x29ed   : > { %s8802_s6 = smov %s7848_s29  ;;  %50 = sbr.rel (!%p48_p13) target bundleno = 37 (0x25), region = 273 }
0x29f4   :  { %5437 = vsyncpa [#allocation4], 1 }
0x29f5   :  { %5439 = vsyncpa [#allocation4 + $0x1], 1 }
0x29f6   :  { %5440 = vsyncpa [#allocation6], 1 }
0x29f7   :  { %5442 = vsyncpa [#allocation6 + $0x1], 1 }
0x29f8   :  { %5443 = vsyncpa [#allocation9], 1 }
0x29f9   :  { %5444 = vsyncpa [#allocation12], 1 }
0x29fa   :  { %5445 = vsyncpa [#allocation15], 1 }
0x29fb   :  { %5446 = vsyncpa [#allocation18], 1 }
0x29fc   :  { %5447 = vsyncpa [#allocation21], 1 }

</bundles_post_ra>
